<compile_context>
chip_gen: v7x
topology: tpu7x:2x2x1
jax: 0.10.0
libtpu: 0.0.40
codegen_flags: <defaults>
</compile_context>

<pallas_src>
import jax
import jax.numpy as jnp
import numpy as np
from jax import lax
from jax.experimental import pallas as pl
from jax.experimental.pallas import tpu as pltpu

LANE = 128
SUBLANE = 8


def _round_up(x, m):
    return ((x + m - 1) // m) * m


def _pick_time_chunk(T, max_chunk=32):
    """Largest chunk <= max_chunk dividing T; bounds the gx scratch working set."""
    if T <= max_chunk:
        return T
    for c in range(max_chunk, 0, -1):
        if T % c == 0:
            return c
    return T


def _pick_batch_tile(b_pad):
    """Split the batch across TensorCores (v7x megacore) when each tile stays
    sublane-aligned; the LSTM recurrence is independent per batch row."""
    if b_pad >= 2 * SUBLANE and (b_pad // 2) % SUBLANE == 0:
        return b_pad // 2
    return b_pad


# ----------------------------------------------------------------------------
# Fused kernel (factory closes over static shapes / layer count)
# ----------------------------------------------------------------------------
def make_fused_lstm_kernel(T, B_TILE, H_PAD, num_layers, t_chunk):
    n_chunks = T // t_chunk
    G3 = 3 * H_PAD
    unroll = min(t_chunk, 8)  # partial unroll: LLO visibility without vreg spills

    def kernel(*refs):
        x_ref = refs[0]                           # (T, B_TILE, D)          f32
        layer_refs = refs[1:1 + 3 * num_layers]   # per layer: wih, whh, bias
        fc_w_ref = refs[1 + 3 * num_layers]       # (H_PAD, O)              bf16
        fc_b_ref = refs[2 + 3 * num_layers]       # (1, O)                  f32
        out_ref = refs[3 + 3 * num_layers]        # (B_TILE, O)             f32
        hseq = refs[4 + 3 * num_layers]           # VMEM (T*B_TILE, H_PAD)  f32
        gx = refs[5 + 3 * num_layers]             # VMEM (t_chunk*B_TILE, 4*H_PAD) f32

        h_last = None
        for layer in range(num_layers):
            wih = layer_refs[3 * layer + 0][...]   # (D_in, 4*H_PAD) bf16
            whh = layer_refs[3 * layer + 1][...]   # (H_PAD, 4*H_PAD) bf16
            bias = layer_refs[3 * layer + 2][...]  # (1, 4*H_PAD)     f32
            write_seq = layer < num_layers - 1     # last layer: nobody reads hseq

            h = jnp.zeros((B_TILE, H_PAD), jnp.bfloat16)
            c = jnp.zeros((B_TILE, H_PAD), jnp.float32)

            for chunk in range(n_chunks):
                t0 = chunk * t_chunk
                # Hoisted input projection for this time chunk: one bf16-operand MXU
                # GEMM with f32 accumulation, bias folded in once (off the serial path).
                if layer == 0:
                    xin = x_ref[pl.ds(t0, t_chunk), :, :]
                    xin = xin.reshape(t_chunk * B_TILE, xin.shape[-1])
                else:
                    xin = hseq[pl.ds(t0 * B_TILE, t_chunk * B_TILE), :]
                gx[...] = (
                    jnp.dot(xin.astype(jnp.bfloat16), wih,
                            preferred_element_type=jnp.float32)
                    + bias
                )

                def step(t, carry, whh=whh, t0=t0, write_seq=write_seq):
                    h, c = carry
                    row = pl.multiple_of(t * B_TILE, B_TILE)
                    gates = gx[pl.ds(row, B_TILE), :] + jnp.dot(
                        h, whh, preferred_element_type=jnp.float32)
                    # Gates packed [i | f | o | g] in 128-aligned H_PAD blocks:
                    # one contiguous sigmoid over (B, 3*H_PAD), tanh on the last block.
                    sig = jax.nn.sigmoid(gates[:, :G3])
                    i_g = sig[:, 0 * H_PAD:1 * H_PAD]
                    f_g = sig[:, 1 * H_PAD:2 * H_PAD]
                    o_g = sig[:, 2 * H_PAD:3 * H_PAD]
                    g_g = jnp.tanh(gates[:, G3:])
                    c_new = f_g * c + i_g * g_g
                    h_f32 = o_g * jnp.tanh(c_new)
                    if write_seq:
                        srow = pl.multiple_of((t0 + t) * B_TILE, B_TILE)
                        hseq[pl.ds(srow, B_TILE), :] = h_f32
                    return (h_f32.astype(jnp.bfloat16), c_new)

                h, c = lax.fori_loop(0, t_chunk, step, (h, c), unroll=unroll)

            h_last = h

        # FC head + sigmoid on the last timestep of the top layer, fused in-kernel.
        logits = jnp.dot(h_last, fc_w_ref[...],
                         preferred_element_type=jnp.float32) + fc_b_ref[...]
        out_ref[...] = jax.nn.sigmoid(logits).astype(out_ref.dtype)

    return kernel


# ----------------------------------------------------------------------------
# Wrapper
# ----------------------------------------------------------------------------
@jax.jit
def discriminative_lstm_forward(x_btd, packed):
    """Matches DiscriminativeLSTM.forward: x (B, T, D) -> out (B * output_dim,)."""
    B, T, D = x_btd.shape
    H_PAD = packed["lstm"][0][1].shape[0]
    O = packed["fc_w_t"].shape[1]
    L = len(packed["lstm"])

    B_pad = _round_up(max(B, SUBLANE), SUBLANE)
    B_TILE = _pick_batch_tile(B_pad)
    n_btiles = B_pad // B_TILE
    t_chunk = _pick_time_chunk(T)

    # batch_first -> time-major 3D (T, B, D); pad batch to a sublane multiple.
    x_tbd = jnp.transpose(x_btd, (1, 0, 2))
    if B_pad != B:
        x_tbd = jnp.pad(x_tbd, ((0, 0), (0, B_pad - B), (0, 0)))
    x_tbd = x_tbd.astype(jnp.float32)

    inputs = [x_tbd]
    in_specs = [pl.BlockSpec((T, B_TILE, D), lambda b: (0, b, 0))]
    for layer_params in packed["lstm"]:
        for w in layer_params:
            inputs.append(w)
            in_specs.append(pl.BlockSpec(w.shape, lambda b: (0, 0)))
    for w in (packed["fc_w_t"], packed["fc_b"]):
        inputs.append(w)
        in_specs.append(pl.BlockSpec(w.shape, lambda b: (0, 0)))

    hseq_rows = T * B_TILE if L > 1 else SUBLANE   # hseq unused when L == 1
    scratch_shapes = [
        pltpu.VMEM((hseq_rows, H_PAD), jnp.float32),              # inter-layer hidden seq
        pltpu.VMEM((t_chunk * B_TILE, 4 * H_PAD), jnp.float32),   # chunked input gates
    ]

    # Explicit VMEM budget: blocks (double-buffer headroom) + scratch + margin,
    # clamped to v7x's 64 MiB physical ceiling.
    weight_bytes = sum(int(np.prod(w.shape)) * w.dtype.itemsize for w in inputs[1:])
    x_block_bytes = T * B_TILE * D * x_tbd.dtype.itemsize
    out_block_bytes = B_TILE * O * 4
    scratch_bytes = hseq_rows * H_PAD * 4 + t_chunk * B_TILE * 4 * H_PAD * 4
    vmem_needed = 2 * (x_block_bytes + out_block_bytes + weight_bytes) + scratch_bytes
    vmem_limit = int(min(max(vmem_needed + (2 << 20), 16 << 20), 64 << 20))

    out = pl.pallas_call(
        make_fused_lstm_kernel(T, B_TILE, H_PAD, L, t_chunk),
        out_shape=jax.ShapeDtypeStruct((B_pad, O), jnp.float32),
        grid_spec=pltpu.PrefetchScalarGridSpec(
            num_scalar_prefetch=0,
            grid=(n_btiles,),
            in_specs=in_specs,
            out_specs=pl.BlockSpec((B_TILE, O), lambda b: (b, 0)),
            scratch_shapes=scratch_shapes,
        ),
        compiler_params=pltpu.CompilerParams(
            dimension_semantics=("parallel",),
            vmem_limit_bytes=vmem_limit,
        ),
    )(*inputs)
    return out[:B].reshape(-1)


# ----------------------------------------------------------------------------
# Parameters: raw (PyTorch layout) + kernel packing
# ----------------------------------------------------------------------------
def init_raw_params(key, input_dim, hidden_dim, layer_dim, output_dim):
    """PyTorch nn.LSTM / nn.Linear default init: U(-1/sqrt(H), 1/sqrt(H)),
    gate row order [i | f | g | o]."""
    bound = 1.0 / np.sqrt(hidden_dim)
    raw = {"lstm": []}
    for layer in range(layer_dim):
        d_in = input_dim if layer == 0 else hidden_dim
        key, k1, k2, k3, k4 = jax.random.split(key, 5)
        w_ih = jax.random.uniform(k1, (4 * hidden_dim, d_in), jnp.float32, -bound, bound)
        w_hh = jax.random.uniform(k2, (4 * hidden_dim, hidden_dim), jnp.float32, -bound, bound)
        b_ih = jax.random.uniform(k3, (4 * hidden_dim,), jnp.float32, -bound, bound)
        b_hh = jax.random.uniform(k4, (4 * hidden_dim,), jnp.float32, -bound, bound)
        raw["lstm"].append((w_ih, w_hh, b_ih, b_hh))
    key, k5, k6 = jax.random.split(key, 3)
    raw["fc_w"] = jax.random.uniform(k5, (output_dim, hidden_dim), jnp.float32, -bound, bound)
    raw["fc_b"] = jax.random.uniform(k6, (output_dim,), jnp.float32, -bound, bound)
    return raw


def pack_params(raw, hidden_dim):
    """Kernel layout: gate blocks reordered to [i | f | o | g], each zero-padded to a
    lane-aligned H_PAD = round_up(H, 128) block; matmul weights cast to bf16, biases f32.
    Zero padding is exact: padded hidden columns stay 0 through the recurrence."""
    H = hidden_dim
    H_PAD = _round_up(H, LANE)

    def pack_cols(m):  # (4H, K) raw -> (K, 4*H_PAD) with column blocks [i|f|o|g], f32
        i, f, g, o = m[0:H], m[H:2 * H], m[2 * H:3 * H], m[3 * H:4 * H]
        blocks = [jnp.pad(blk.T, ((0, 0), (0, H_PAD - H))) for blk in (i, f, o, g)]
        return jnp.concatenate(blocks, axis=1)

    packed = {"lstm": []}
    for li, (w_ih, w_hh, b_ih, b_hh) in enumerate(raw["lstm"]):
        wih_t = pack_cols(w_ih)                                   # (d_in, 4*H_PAD)
        if li > 0:  # layer>0 input is the H_PAD-wide hidden sequence
            wih_t = jnp.pad(wih_t, ((0, H_PAD - H), (0, 0)))
        whh_t = jnp.pad(pack_cols(w_hh), ((0, H_PAD - H), (0, 0)))  # (H_PAD, 4*H_PAD)
        bias = pack_cols((b_ih + b_hh)[:, None])                    # (1, 4*H_PAD) f32
        packed["lstm"].append(
            (wih_t.astype(jnp.bfloat16), whh_t.astype(jnp.bfloat16), bias))
    fc_w_t = jnp.pad(raw["fc_w"].T, ((0, H_PAD - H), (0, 0)))       # (H_PAD, O)
    packed["fc_w_t"] = fc_w_t.astype(jnp.bfloat16)
    packed["fc_b"] = raw["fc_b"][None, :].astype(jnp.float32)
    return packed


# ----------------------------------------------------------------------------
# Pure-JAX references (correctness checks)
# ----------------------------------------------------------------------------
def reference_forward(x_btd, raw, matmul_dtype=jnp.float32):
    """Emulates PyTorch DiscriminativeLSTM.forward. With matmul_dtype=bfloat16 it mirrors
    the kernel's precision policy (bf16 MXU operands, f32 accumulation, f32 gate math)."""
    B = x_btd.shape[0]
    H = raw["lstm"][0][1].shape[1]

    def mm(a, w):
        return jnp.dot(a.astype(matmul_dtype), w.T.astype(matmul_dtype),
                       preferred_element_type=jnp.float32)

    x = x_btd
    for (w_ih, w_hh, b_ih, b_hh) in raw["lstm"]:
        bias = (b_ih + b_hh)[None, :]

        def step(carry, x_t, w_ih=w_ih, w_hh=w_hh, bias=bias):
            h, c = carry
            g = mm(x_t, w_ih) + mm(h, w_hh) + bias
            i = jax.nn.sigmoid(g[:, 0 * H:1 * H])
            f = jax.nn.sigmoid(g[:, 1 * H:2 * H])
            gg = jnp.tanh(g[:, 2 * H:3 * H])
            o = jax.nn.sigmoid(g[:, 3 * H:4 * H])
            c = f * c + i * gg
            h = o * jnp.tanh(c)
            return (h, c), h

        init = (jnp.zeros((B, H), jnp.float32), jnp.zeros((B, H), jnp.float32))
        (_, _), hs = jax.lax.scan(step, init, jnp.transpose(x, (1, 0, 2)))
        x = jnp.transpose(hs, (1, 0, 2))
    h_last = x[:, -1, :]
    logits = mm(h_last, raw["fc_w"]) + raw["fc_b"][None, :]
    return jax.nn.sigmoid(logits).reshape(-1)


if __name__ == "__main__":
    B, T = 16, 8
    input_dim, hidden_dim, layer_dim, output_dim = 16, 32, 2, 1

    key = jax.random.PRNGKey(0)
    kx, kp = jax.random.split(key)
    x = jax.random.normal(kx, (B, T, input_dim), jnp.float32)
    raw = init_raw_params(kp, input_dim, hidden_dim, layer_dim, output_dim)
    packed = pack_params(raw, hidden_dim)

    out = discriminative_lstm_forward(x, packed)
    out = jax.block_until_ready(out)
    assert out.shape == (B * output_dim,)

    # Tight check against a reference with the kernel's precision policy (bf16 matmul
    # operands, f32 accumulation / gate math) ...
    ref_bf16 = reference_forward(x, raw, matmul_dtype=jnp.bfloat16)
    np.testing.assert_allclose(np.asarray(out), np.asarray(ref_bf16), rtol=2e-3, atol=2e-3)
    # ... and a looser check against the full-f32 PyTorch-equivalent reference.
    ref_f32 = reference_forward(x, raw, matmul_dtype=jnp.float32)
    np.testing.assert_allclose(np.asarray(out), np.asarray(ref_f32), rtol=5e-2, atol=2e-2)

    print("KERNEL_OK")
</pallas_src>

<mosaic_0001>
module attributes {stable_mosaic.version = 11 : i64} {
  func.func @kernel(%arg0: i32, %arg1: memref<8x8x16xf32, #tpu.memory_space<vmem>>, %arg2: memref<16x512xbf16, #tpu.memory_space<vmem>>, %arg3: memref<128x512xbf16, #tpu.memory_space<vmem>>, %arg4: memref<1x512xf32, #tpu.memory_space<vmem>>, %arg5: memref<128x512xbf16, #tpu.memory_space<vmem>>, %arg6: memref<128x512xbf16, #tpu.memory_space<vmem>>, %arg7: memref<1x512xf32, #tpu.memory_space<vmem>>, %arg8: memref<128x1xbf16, #tpu.memory_space<vmem>>, %arg9: memref<1x1xf32, #tpu.memory_space<vmem>>, %arg10: memref<8x1xf32, #tpu.memory_space<vmem>>, %arg11: memref<64x128xf32, #tpu.memory_space<vmem>>, %arg12: memref<64x512xf32, #tpu.memory_space<vmem>>) attributes {dimension_semantics = [#tpu.dimension_semantics<parallel>], iteration_bounds = array<i64: 2>, scalar_prefetch = 0 : i64, scratch_operands = 2 : i64, tpu.core_type = #tpu.core_type<tc>, window_params = [{transform_indices = @transform_0, window_bounds = array<i64: 8, 8, 16>}, {pipeline_mode = #tpu.pipeline_mode<synchronous>, transform_indices = @transform_1, window_bounds = array<i64: 16, 512>}, {pipeline_mode = #tpu.pipeline_mode<synchronous>, transform_indices = @transform_2, window_bounds = array<i64: 128, 512>}, {pipeline_mode = #tpu.pipeline_mode<synchronous>, transform_indices = @transform_3, window_bounds = array<i64: 1, 512>}, {pipeline_mode = #tpu.pipeline_mode<synchronous>, transform_indices = @transform_4, window_bounds = array<i64: 128, 512>}, {pipeline_mode = #tpu.pipeline_mode<synchronous>, transform_indices = @transform_5, window_bounds = array<i64: 128, 512>}, {pipeline_mode = #tpu.pipeline_mode<synchronous>, transform_indices = @transform_6, window_bounds = array<i64: 1, 512>}, {pipeline_mode = #tpu.pipeline_mode<synchronous>, transform_indices = @transform_7, window_bounds = array<i64: 128, 1>}, {pipeline_mode = #tpu.pipeline_mode<synchronous>, transform_indices = @transform_8, window_bounds = array<i64: 1, 1>}, {transform_indices = @transform_9, window_bounds = array<i64: 8, 1>}]} {
    %c0 = arith.constant 0 : index
    %c0_0 = arith.constant 0 : index
    %0 = vector.load %arg2[%c0, %c0_0] : memref<16x512xbf16, #tpu.memory_space<vmem>>, vector<16x512xbf16>
    %c0_1 = arith.constant 0 : index
    %c0_2 = arith.constant 0 : index
    %1 = vector.load %arg3[%c0_1, %c0_2] : memref<128x512xbf16, #tpu.memory_space<vmem>>, vector<128x512xbf16>
    %c0_3 = arith.constant 0 : index
    %c0_4 = arith.constant 0 : index
    %2 = vector.load %arg4[%c0_3, %c0_4] : memref<1x512xf32, #tpu.memory_space<vmem>>, vector<1x512xf32>
    %cst = arith.constant 0.000000e+00 : bf16
    %3 = vector.broadcast %cst : bf16 to vector<8x128xbf16>
    %cst_5 = arith.constant 0.000000e+00 : f32
    %4 = vector.broadcast %cst_5 : f32 to vector<8x128xf32>
    %c0_6 = arith.constant 0 : index
    %c0_7 = arith.constant 0 : index
    %c0_8 = arith.constant 0 : index
    %5 = vector.load %arg1[%c0_6, %c0_7, %c0_8] : memref<8x8x16xf32, #tpu.memory_space<vmem>>, vector<8x8x16xf32>
    %6 = vector.shape_cast %5 : vector<8x8x16xf32> to vector<64x16xf32>
    %7 = arith.truncf %6 : vector<64x16xf32> to vector<64x16xbf16>
    %cst_9 = arith.constant dense<0.000000e+00> : vector<64x512xf32>
    %8 = tpu.matmul %7, %0, %cst_9 {dimension_numbers = #tpu.dot_dimension_numbers<[1], [0], [0], [1], [0, 0, 1, 1], [], []>} : vector<64x16xbf16>, vector<16x512xbf16>, vector<64x512xf32> -> vector<64x512xf32>
    %9 = vector.broadcast %2 : vector<1x512xf32> to vector<64x512xf32>
    %10 = arith.addf %8, %9 : vector<64x512xf32>
    %c0_10 = arith.constant 0 : index
    %c0_11 = arith.constant 0 : index
    %11 = vector.load %arg12[%c0_10, %c0_11] : memref<64x512xf32, #tpu.memory_space<vmem>>, vector<64x512xf32>
    tpu.vector_store %arg12[%c0_10, %c0_11], %10 {strides = array<i32>} : memref<64x512xf32, #tpu.memory_space<vmem>>, vector<64x512xf32>,
    %c0_i32 = arith.constant 0 : i32
    %c8_i32 = arith.constant 8 : i32
    %12 = arith.muli %c0_i32, %c8_i32 : i32
    %13 = tpu.assume_multiple %12, 8 : i32
    %14 = arith.index_cast %13 : i32 to index
    %c0_12 = arith.constant 0 : index
    %15 = vector.load %arg12[%14, %c0_12] : memref<64x512xf32, #tpu.memory_space<vmem>>, vector<8x512xf32>
    %cst_13 = arith.constant dense<0.000000e+00> : vector<8x512xf32>
    %16 = tpu.matmul %3, %1, %cst_13 {dimension_numbers = #tpu.dot_dimension_numbers<[1], [0], [0], [1], [0, 0, 1, 1], [], []>} : vector<8x128xbf16>, vector<128x512xbf16>, vector<8x512xf32> -> vector<8x512xf32>
    %17 = arith.addf %15, %16 : vector<8x512xf32>
    %18 = vector.extract_strided_slice %17 {offsets = [0, 0], sizes = [8, 384], strides = [1, 1]} : vector<8x512xf32> to vector<8x384xf32>
    %19 = arith.negf %18 : vector<8x384xf32>
    %20 = math.exp %19 : vector<8x384xf32>
    %cst_14 = arith.constant 1.000000e+00 : f32
    %21 = vector.broadcast %cst_14 : f32 to vector<8x384xf32>
    %22 = arith.addf %21, %20 : vector<8x384xf32>
    %23 = arith.divf %21, %22 : vector<8x384xf32>
    %24 = vector.extract_strided_slice %23 {offsets = [0, 0], sizes = [8, 128], strides = [1, 1]} : vector<8x384xf32> to vector<8x128xf32>
    %25 = vector.extract_strided_slice %23 {offsets = [0, 128], sizes = [8, 128], strides = [1, 1]} : vector<8x384xf32> to vector<8x128xf32>
    %26 = vector.extract_strided_slice %23 {offsets = [0, 256], sizes = [8, 128], strides = [1, 1]} : vector<8x384xf32> to vector<8x128xf32>
    %27 = vector.extract_strided_slice %17 {offsets = [0, 384], sizes = [8, 128], strides = [1, 1]} : vector<8x512xf32> to vector<8x128xf32>
    %28 = math.tanh %27 : vector<8x128xf32>
    %29 = arith.mulf %25, %4 : vector<8x128xf32>
    %30 = arith.mulf %24, %28 : vector<8x128xf32>
    %31 = arith.addf %29, %30 : vector<8x128xf32>
    %32 = math.tanh %31 : vector<8x128xf32>
    %33 = arith.mulf %26, %32 : vector<8x128xf32>
    %c0_i32_15 = arith.constant 0 : i32
    %34 = arith.addi %c0_i32_15, %c0_i32 : i32
    %c8_i32_16 = arith.constant 8 : i32
    %35 = arith.muli %34, %c8_i32_16 : i32
    %36 = tpu.assume_multiple %35, 8 : i32
    %37 = arith.index_cast %36 : i32 to index
    %c0_17 = arith.constant 0 : index
    %38 = vector.load %arg11[%37, %c0_17] : memref<64x128xf32, #tpu.memory_space<vmem>>, vector<8x128xf32>
    tpu.vector_store %arg11[%37, %c0_17], %33 {strides = array<i32>} : memref<64x128xf32, #tpu.memory_space<vmem>>, vector<8x128xf32>,
    %39 = arith.truncf %33 : vector<8x128xf32> to vector<8x128xbf16>
    %c1_i32 = arith.constant 1 : i32
    %c8_i32_18 = arith.constant 8 : i32
    %40 = arith.muli %c1_i32, %c8_i32_18 : i32
    %41 = tpu.assume_multiple %40, 8 : i32
    %42 = arith.index_cast %41 : i32 to index
    %c0_19 = arith.constant 0 : index
    %43 = vector.load %arg12[%42, %c0_19] : memref<64x512xf32, #tpu.memory_space<vmem>>, vector<8x512xf32>
    %cst_20 = arith.constant dense<0.000000e+00> : vector<8x512xf32>
    %44 = tpu.matmul %39, %1, %cst_20 {dimension_numbers = #tpu.dot_dimension_numbers<[1], [0], [0], [1], [0, 0, 1, 1], [], []>} : vector<8x128xbf16>, vector<128x512xbf16>, vector<8x512xf32> -> vector<8x512xf32>
    %45 = arith.addf %43, %44 : vector<8x512xf32>
    %46 = vector.extract_strided_slice %45 {offsets = [0, 0], sizes = [8, 384], strides = [1, 1]} : vector<8x512xf32> to vector<8x384xf32>
    %47 = arith.negf %46 : vector<8x384xf32>
    %48 = math.exp %47 : vector<8x384xf32>
    %cst_21 = arith.constant 1.000000e+00 : f32
    %49 = vector.broadcast %cst_21 : f32 to vector<8x384xf32>
    %50 = arith.addf %49, %48 : vector<8x384xf32>
    %51 = arith.divf %49, %50 : vector<8x384xf32>
    %52 = vector.extract_strided_slice %51 {offsets = [0, 0], sizes = [8, 128], strides = [1, 1]} : vector<8x384xf32> to vector<8x128xf32>
    %53 = vector.extract_strided_slice %51 {offsets = [0, 128], sizes = [8, 128], strides = [1, 1]} : vector<8x384xf32> to vector<8x128xf32>
    %54 = vector.extract_strided_slice %51 {offsets = [0, 256], sizes = [8, 128], strides = [1, 1]} : vector<8x384xf32> to vector<8x128xf32>
    %55 = vector.extract_strided_slice %45 {offsets = [0, 384], sizes = [8, 128], strides = [1, 1]} : vector<8x512xf32> to vector<8x128xf32>
    %56 = math.tanh %55 : vector<8x128xf32>
    %57 = arith.mulf %53, %31 : vector<8x128xf32>
    %58 = arith.mulf %52, %56 : vector<8x128xf32>
    %59 = arith.addf %57, %58 : vector<8x128xf32>
    %60 = math.tanh %59 : vector<8x128xf32>
    %61 = arith.mulf %54, %60 : vector<8x128xf32>
    %c0_i32_22 = arith.constant 0 : i32
    %62 = arith.addi %c0_i32_22, %c1_i32 : i32
    %c8_i32_23 = arith.constant 8 : i32
    %63 = arith.muli %62, %c8_i32_23 : i32
    %64 = tpu.assume_multiple %63, 8 : i32
    %65 = arith.index_cast %64 : i32 to index
    %c0_24 = arith.constant 0 : index
    %66 = vector.load %arg11[%65, %c0_24] : memref<64x128xf32, #tpu.memory_space<vmem>>, vector<8x128xf32>
    tpu.vector_store %arg11[%65, %c0_24], %61 {strides = array<i32>} : memref<64x128xf32, #tpu.memory_space<vmem>>, vector<8x128xf32>,
    %67 = arith.truncf %61 : vector<8x128xf32> to vector<8x128xbf16>
    %c2_i32 = arith.constant 2 : i32
    %c8_i32_25 = arith.constant 8 : i32
    %68 = arith.muli %c2_i32, %c8_i32_25 : i32
    %69 = tpu.assume_multiple %68, 8 : i32
    %70 = arith.index_cast %69 : i32 to index
    %c0_26 = arith.constant 0 : index
    %71 = vector.load %arg12[%70, %c0_26] : memref<64x512xf32, #tpu.memory_space<vmem>>, vector<8x512xf32>
    %cst_27 = arith.constant dense<0.000000e+00> : vector<8x512xf32>
    %72 = tpu.matmul %67, %1, %cst_27 {dimension_numbers = #tpu.dot_dimension_numbers<[1], [0], [0], [1], [0, 0, 1, 1], [], []>} : vector<8x128xbf16>, vector<128x512xbf16>, vector<8x512xf32> -> vector<8x512xf32>
    %73 = arith.addf %71, %72 : vector<8x512xf32>
    %74 = vector.extract_strided_slice %73 {offsets = [0, 0], sizes = [8, 384], strides = [1, 1]} : vector<8x512xf32> to vector<8x384xf32>
    %75 = arith.negf %74 : vector<8x384xf32>
    %76 = math.exp %75 : vector<8x384xf32>
    %cst_28 = arith.constant 1.000000e+00 : f32
    %77 = vector.broadcast %cst_28 : f32 to vector<8x384xf32>
    %78 = arith.addf %77, %76 : vector<8x384xf32>
    %79 = arith.divf %77, %78 : vector<8x384xf32>
    %80 = vector.extract_strided_slice %79 {offsets = [0, 0], sizes = [8, 128], strides = [1, 1]} : vector<8x384xf32> to vector<8x128xf32>
    %81 = vector.extract_strided_slice %79 {offsets = [0, 128], sizes = [8, 128], strides = [1, 1]} : vector<8x384xf32> to vector<8x128xf32>
    %82 = vector.extract_strided_slice %79 {offsets = [0, 256], sizes = [8, 128], strides = [1, 1]} : vector<8x384xf32> to vector<8x128xf32>
    %83 = vector.extract_strided_slice %73 {offsets = [0, 384], sizes = [8, 128], strides = [1, 1]} : vector<8x512xf32> to vector<8x128xf32>
    %84 = math.tanh %83 : vector<8x128xf32>
    %85 = arith.mulf %81, %59 : vector<8x128xf32>
    %86 = arith.mulf %80, %84 : vector<8x128xf32>
    %87 = arith.addf %85, %86 : vector<8x128xf32>
    %88 = math.tanh %87 : vector<8x128xf32>
    %89 = arith.mulf %82, %88 : vector<8x128xf32>
    %c0_i32_29 = arith.constant 0 : i32
    %90 = arith.addi %c0_i32_29, %c2_i32 : i32
    %c8_i32_30 = arith.constant 8 : i32
    %91 = arith.muli %90, %c8_i32_30 : i32
    %92 = tpu.assume_multiple %91, 8 : i32
    %93 = arith.index_cast %92 : i32 to index
    %c0_31 = arith.constant 0 : index
    %94 = vector.load %arg11[%93, %c0_31] : memref<64x128xf32, #tpu.memory_space<vmem>>, vector<8x128xf32>
    tpu.vector_store %arg11[%93, %c0_31], %89 {strides = array<i32>} : memref<64x128xf32, #tpu.memory_space<vmem>>, vector<8x128xf32>,
    %95 = arith.truncf %89 : vector<8x128xf32> to vector<8x128xbf16>
    %c3_i32 = arith.constant 3 : i32
    %c8_i32_32 = arith.constant 8 : i32
    %96 = arith.muli %c3_i32, %c8_i32_32 : i32
    %97 = tpu.assume_multiple %96, 8 : i32
    %98 = arith.index_cast %97 : i32 to index
    %c0_33 = arith.constant 0 : index
    %99 = vector.load %arg12[%98, %c0_33] : memref<64x512xf32, #tpu.memory_space<vmem>>, vector<8x512xf32>
    %cst_34 = arith.constant dense<0.000000e+00> : vector<8x512xf32>
    %100 = tpu.matmul %95, %1, %cst_34 {dimension_numbers = #tpu.dot_dimension_numbers<[1], [0], [0], [1], [0, 0, 1, 1], [], []>} : vector<8x128xbf16>, vector<128x512xbf16>, vector<8x512xf32> -> vector<8x512xf32>
    %101 = arith.addf %99, %100 : vector<8x512xf32>
    %102 = vector.extract_strided_slice %101 {offsets = [0, 0], sizes = [8, 384], strides = [1, 1]} : vector<8x512xf32> to vector<8x384xf32>
    %103 = arith.negf %102 : vector<8x384xf32>
    %104 = math.exp %103 : vector<8x384xf32>
    %cst_35 = arith.constant 1.000000e+00 : f32
    %105 = vector.broadcast %cst_35 : f32 to vector<8x384xf32>
    %106 = arith.addf %105, %104 : vector<8x384xf32>
    %107 = arith.divf %105, %106 : vector<8x384xf32>
    %108 = vector.extract_strided_slice %107 {offsets = [0, 0], sizes = [8, 128], strides = [1, 1]} : vector<8x384xf32> to vector<8x128xf32>
    %109 = vector.extract_strided_slice %107 {offsets = [0, 128], sizes = [8, 128], strides = [1, 1]} : vector<8x384xf32> to vector<8x128xf32>
    %110 = vector.extract_strided_slice %107 {offsets = [0, 256], sizes = [8, 128], strides = [1, 1]} : vector<8x384xf32> to vector<8x128xf32>
    %111 = vector.extract_strided_slice %101 {offsets = [0, 384], sizes = [8, 128], strides = [1, 1]} : vector<8x512xf32> to vector<8x128xf32>
    %112 = math.tanh %111 : vector<8x128xf32>
    %113 = arith.mulf %109, %87 : vector<8x128xf32>
    %114 = arith.mulf %108, %112 : vector<8x128xf32>
    %115 = arith.addf %113, %114 : vector<8x128xf32>
    %116 = math.tanh %115 : vector<8x128xf32>
    %117 = arith.mulf %110, %116 : vector<8x128xf32>
    %c0_i32_36 = arith.constant 0 : i32
    %118 = arith.addi %c0_i32_36, %c3_i32 : i32
    %c8_i32_37 = arith.constant 8 : i32
    %119 = arith.muli %118, %c8_i32_37 : i32
    %120 = tpu.assume_multiple %119, 8 : i32
    %121 = arith.index_cast %120 : i32 to index
    %c0_38 = arith.constant 0 : index
    %122 = vector.load %arg11[%121, %c0_38] : memref<64x128xf32, #tpu.memory_space<vmem>>, vector<8x128xf32>
    tpu.vector_store %arg11[%121, %c0_38], %117 {strides = array<i32>} : memref<64x128xf32, #tpu.memory_space<vmem>>, vector<8x128xf32>,
    %123 = arith.truncf %117 : vector<8x128xf32> to vector<8x128xbf16>
    %c4_i32 = arith.constant 4 : i32
    %c8_i32_39 = arith.constant 8 : i32
    %124 = arith.muli %c4_i32, %c8_i32_39 : i32
    %125 = tpu.assume_multiple %124, 8 : i32
    %126 = arith.index_cast %125 : i32 to index
    %c0_40 = arith.constant 0 : index
    %127 = vector.load %arg12[%126, %c0_40] : memref<64x512xf32, #tpu.memory_space<vmem>>, vector<8x512xf32>
    %cst_41 = arith.constant dense<0.000000e+00> : vector<8x512xf32>
    %128 = tpu.matmul %123, %1, %cst_41 {dimension_numbers = #tpu.dot_dimension_numbers<[1], [0], [0], [1], [0, 0, 1, 1], [], []>} : vector<8x128xbf16>, vector<128x512xbf16>, vector<8x512xf32> -> vector<8x512xf32>
    %129 = arith.addf %127, %128 : vector<8x512xf32>
    %130 = vector.extract_strided_slice %129 {offsets = [0, 0], sizes = [8, 384], strides = [1, 1]} : vector<8x512xf32> to vector<8x384xf32>
    %131 = arith.negf %130 : vector<8x384xf32>
    %132 = math.exp %131 : vector<8x384xf32>
    %cst_42 = arith.constant 1.000000e+00 : f32
    %133 = vector.broadcast %cst_42 : f32 to vector<8x384xf32>
    %134 = arith.addf %133, %132 : vector<8x384xf32>
    %135 = arith.divf %133, %134 : vector<8x384xf32>
    %136 = vector.extract_strided_slice %135 {offsets = [0, 0], sizes = [8, 128], strides = [1, 1]} : vector<8x384xf32> to vector<8x128xf32>
    %137 = vector.extract_strided_slice %135 {offsets = [0, 128], sizes = [8, 128], strides = [1, 1]} : vector<8x384xf32> to vector<8x128xf32>
    %138 = vector.extract_strided_slice %135 {offsets = [0, 256], sizes = [8, 128], strides = [1, 1]} : vector<8x384xf32> to vector<8x128xf32>
    %139 = vector.extract_strided_slice %129 {offsets = [0, 384], sizes = [8, 128], strides = [1, 1]} : vector<8x512xf32> to vector<8x128xf32>
    %140 = math.tanh %139 : vector<8x128xf32>
    %141 = arith.mulf %137, %115 : vector<8x128xf32>
    %142 = arith.mulf %136, %140 : vector<8x128xf32>
    %143 = arith.addf %141, %142 : vector<8x128xf32>
    %144 = math.tanh %143 : vector<8x128xf32>
    %145 = arith.mulf %138, %144 : vector<8x128xf32>
    %c0_i32_43 = arith.constant 0 : i32
    %146 = arith.addi %c0_i32_43, %c4_i32 : i32
    %c8_i32_44 = arith.constant 8 : i32
    %147 = arith.muli %146, %c8_i32_44 : i32
    %148 = tpu.assume_multiple %147, 8 : i32
    %149 = arith.index_cast %148 : i32 to index
    %c0_45 = arith.constant 0 : index
    %150 = vector.load %arg11[%149, %c0_45] : memref<64x128xf32, #tpu.memory_space<vmem>>, vector<8x128xf32>
    tpu.vector_store %arg11[%149, %c0_45], %145 {strides = array<i32>} : memref<64x128xf32, #tpu.memory_space<vmem>>, vector<8x128xf32>,
    %151 = arith.truncf %145 : vector<8x128xf32> to vector<8x128xbf16>
    %c5_i32 = arith.constant 5 : i32
    %c8_i32_46 = arith.constant 8 : i32
    %152 = arith.muli %c5_i32, %c8_i32_46 : i32
    %153 = tpu.assume_multiple %152, 8 : i32
    %154 = arith.index_cast %153 : i32 to index
    %c0_47 = arith.constant 0 : index
    %155 = vector.load %arg12[%154, %c0_47] : memref<64x512xf32, #tpu.memory_space<vmem>>, vector<8x512xf32>
    %cst_48 = arith.constant dense<0.000000e+00> : vector<8x512xf32>
    %156 = tpu.matmul %151, %1, %cst_48 {dimension_numbers = #tpu.dot_dimension_numbers<[1], [0], [0], [1], [0, 0, 1, 1], [], []>} : vector<8x128xbf16>, vector<128x512xbf16>, vector<8x512xf32> -> vector<8x512xf32>
    %157 = arith.addf %155, %156 : vector<8x512xf32>
    %158 = vector.extract_strided_slice %157 {offsets = [0, 0], sizes = [8, 384], strides = [1, 1]} : vector<8x512xf32> to vector<8x384xf32>
    %159 = arith.negf %158 : vector<8x384xf32>
    %160 = math.exp %159 : vector<8x384xf32>
    %cst_49 = arith.constant 1.000000e+00 : f32
    %161 = vector.broadcast %cst_49 : f32 to vector<8x384xf32>
    %162 = arith.addf %161, %160 : vector<8x384xf32>
    %163 = arith.divf %161, %162 : vector<8x384xf32>
    %164 = vector.extract_strided_slice %163 {offsets = [0, 0], sizes = [8, 128], strides = [1, 1]} : vector<8x384xf32> to vector<8x128xf32>
    %165 = vector.extract_strided_slice %163 {offsets = [0, 128], sizes = [8, 128], strides = [1, 1]} : vector<8x384xf32> to vector<8x128xf32>
    %166 = vector.extract_strided_slice %163 {offsets = [0, 256], sizes = [8, 128], strides = [1, 1]} : vector<8x384xf32> to vector<8x128xf32>
    %167 = vector.extract_strided_slice %157 {offsets = [0, 384], sizes = [8, 128], strides = [1, 1]} : vector<8x512xf32> to vector<8x128xf32>
    %168 = math.tanh %167 : vector<8x128xf32>
    %169 = arith.mulf %165, %143 : vector<8x128xf32>
    %170 = arith.mulf %164, %168 : vector<8x128xf32>
    %171 = arith.addf %169, %170 : vector<8x128xf32>
    %172 = math.tanh %171 : vector<8x128xf32>
    %173 = arith.mulf %166, %172 : vector<8x128xf32>
    %c0_i32_50 = arith.constant 0 : i32
    %174 = arith.addi %c0_i32_50, %c5_i32 : i32
    %c8_i32_51 = arith.constant 8 : i32
    %175 = arith.muli %174, %c8_i32_51 : i32
    %176 = tpu.assume_multiple %175, 8 : i32
    %177 = arith.index_cast %176 : i32 to index
    %c0_52 = arith.constant 0 : index
    %178 = vector.load %arg11[%177, %c0_52] : memref<64x128xf32, #tpu.memory_space<vmem>>, vector<8x128xf32>
    tpu.vector_store %arg11[%177, %c0_52], %173 {strides = array<i32>} : memref<64x128xf32, #tpu.memory_space<vmem>>, vector<8x128xf32>,
    %179 = arith.truncf %173 : vector<8x128xf32> to vector<8x128xbf16>
    %c6_i32 = arith.constant 6 : i32
    %c8_i32_53 = arith.constant 8 : i32
    %180 = arith.muli %c6_i32, %c8_i32_53 : i32
    %181 = tpu.assume_multiple %180, 8 : i32
    %182 = arith.index_cast %181 : i32 to index
    %c0_54 = arith.constant 0 : index
    %183 = vector.load %arg12[%182, %c0_54] : memref<64x512xf32, #tpu.memory_space<vmem>>, vector<8x512xf32>
    %cst_55 = arith.constant dense<0.000000e+00> : vector<8x512xf32>
    %184 = tpu.matmul %179, %1, %cst_55 {dimension_numbers = #tpu.dot_dimension_numbers<[1], [0], [0], [1], [0, 0, 1, 1], [], []>} : vector<8x128xbf16>, vector<128x512xbf16>, vector<8x512xf32> -> vector<8x512xf32>
    %185 = arith.addf %183, %184 : vector<8x512xf32>
    %186 = vector.extract_strided_slice %185 {offsets = [0, 0], sizes = [8, 384], strides = [1, 1]} : vector<8x512xf32> to vector<8x384xf32>
    %187 = arith.negf %186 : vector<8x384xf32>
    %188 = math.exp %187 : vector<8x384xf32>
    %cst_56 = arith.constant 1.000000e+00 : f32
    %189 = vector.broadcast %cst_56 : f32 to vector<8x384xf32>
    %190 = arith.addf %189, %188 : vector<8x384xf32>
    %191 = arith.divf %189, %190 : vector<8x384xf32>
    %192 = vector.extract_strided_slice %191 {offsets = [0, 0], sizes = [8, 128], strides = [1, 1]} : vector<8x384xf32> to vector<8x128xf32>
    %193 = vector.extract_strided_slice %191 {offsets = [0, 128], sizes = [8, 128], strides = [1, 1]} : vector<8x384xf32> to vector<8x128xf32>
    %194 = vector.extract_strided_slice %191 {offsets = [0, 256], sizes = [8, 128], strides = [1, 1]} : vector<8x384xf32> to vector<8x128xf32>
    %195 = vector.extract_strided_slice %185 {offsets = [0, 384], sizes = [8, 128], strides = [1, 1]} : vector<8x512xf32> to vector<8x128xf32>
    %196 = math.tanh %195 : vector<8x128xf32>
    %197 = arith.mulf %193, %171 : vector<8x128xf32>
    %198 = arith.mulf %192, %196 : vector<8x128xf32>
    %199 = arith.addf %197, %198 : vector<8x128xf32>
    %200 = math.tanh %199 : vector<8x128xf32>
    %201 = arith.mulf %194, %200 : vector<8x128xf32>
    %c0_i32_57 = arith.constant 0 : i32
    %202 = arith.addi %c0_i32_57, %c6_i32 : i32
    %c8_i32_58 = arith.constant 8 : i32
    %203 = arith.muli %202, %c8_i32_58 : i32
    %204 = tpu.assume_multiple %203, 8 : i32
    %205 = arith.index_cast %204 : i32 to index
    %c0_59 = arith.constant 0 : index
    %206 = vector.load %arg11[%205, %c0_59] : memref<64x128xf32, #tpu.memory_space<vmem>>, vector<8x128xf32>
    tpu.vector_store %arg11[%205, %c0_59], %201 {strides = array<i32>} : memref<64x128xf32, #tpu.memory_space<vmem>>, vector<8x128xf32>,
    %207 = arith.truncf %201 : vector<8x128xf32> to vector<8x128xbf16>
    %c7_i32 = arith.constant 7 : i32
    %c8_i32_60 = arith.constant 8 : i32
    %208 = arith.muli %c7_i32, %c8_i32_60 : i32
    %209 = tpu.assume_multiple %208, 8 : i32
    %210 = arith.index_cast %209 : i32 to index
    %c0_61 = arith.constant 0 : index
    %211 = vector.load %arg12[%210, %c0_61] : memref<64x512xf32, #tpu.memory_space<vmem>>, vector<8x512xf32>
    %cst_62 = arith.constant dense<0.000000e+00> : vector<8x512xf32>
    %212 = tpu.matmul %207, %1, %cst_62 {dimension_numbers = #tpu.dot_dimension_numbers<[1], [0], [0], [1], [0, 0, 1, 1], [], []>} : vector<8x128xbf16>, vector<128x512xbf16>, vector<8x512xf32> -> vector<8x512xf32>
    %213 = arith.addf %211, %212 : vector<8x512xf32>
    %214 = vector.extract_strided_slice %213 {offsets = [0, 0], sizes = [8, 384], strides = [1, 1]} : vector<8x512xf32> to vector<8x384xf32>
    %215 = arith.negf %214 : vector<8x384xf32>
    %216 = math.exp %215 : vector<8x384xf32>
    %cst_63 = arith.constant 1.000000e+00 : f32
    %217 = vector.broadcast %cst_63 : f32 to vector<8x384xf32>
    %218 = arith.addf %217, %216 : vector<8x384xf32>
    %219 = arith.divf %217, %218 : vector<8x384xf32>
    %220 = vector.extract_strided_slice %219 {offsets = [0, 0], sizes = [8, 128], strides = [1, 1]} : vector<8x384xf32> to vector<8x128xf32>
    %221 = vector.extract_strided_slice %219 {offsets = [0, 128], sizes = [8, 128], strides = [1, 1]} : vector<8x384xf32> to vector<8x128xf32>
    %222 = vector.extract_strided_slice %219 {offsets = [0, 256], sizes = [8, 128], strides = [1, 1]} : vector<8x384xf32> to vector<8x128xf32>
    %223 = vector.extract_strided_slice %213 {offsets = [0, 384], sizes = [8, 128], strides = [1, 1]} : vector<8x512xf32> to vector<8x128xf32>
    %224 = math.tanh %223 : vector<8x128xf32>
    %225 = arith.mulf %221, %199 : vector<8x128xf32>
    %226 = arith.mulf %220, %224 : vector<8x128xf32>
    %227 = arith.addf %225, %226 : vector<8x128xf32>
    %228 = math.tanh %227 : vector<8x128xf32>
    %229 = arith.mulf %222, %228 : vector<8x128xf32>
    %c0_i32_64 = arith.constant 0 : i32
    %230 = arith.addi %c0_i32_64, %c7_i32 : i32
    %c8_i32_65 = arith.constant 8 : i32
    %231 = arith.muli %230, %c8_i32_65 : i32
    %232 = tpu.assume_multiple %231, 8 : i32
    %233 = arith.index_cast %232 : i32 to index
    %c0_66 = arith.constant 0 : index
    %234 = vector.load %arg11[%233, %c0_66] : memref<64x128xf32, #tpu.memory_space<vmem>>, vector<8x128xf32>
    tpu.vector_store %arg11[%233, %c0_66], %229 {strides = array<i32>} : memref<64x128xf32, #tpu.memory_space<vmem>>, vector<8x128xf32>,
    %235 = arith.truncf %229 : vector<8x128xf32> to vector<8x128xbf16>
    %c8_i32_67 = arith.constant 8 : i32
    %c0_68 = arith.constant 0 : index
    %c0_69 = arith.constant 0 : index
    %236 = vector.load %arg5[%c0_68, %c0_69] : memref<128x512xbf16, #tpu.memory_space<vmem>>, vector<128x512xbf16>
    %c0_70 = arith.constant 0 : index
    %c0_71 = arith.constant 0 : index
    %237 = vector.load %arg6[%c0_70, %c0_71] : memref<128x512xbf16, #tpu.memory_space<vmem>>, vector<128x512xbf16>
    %c0_72 = arith.constant 0 : index
    %c0_73 = arith.constant 0 : index
    %238 = vector.load %arg7[%c0_72, %c0_73] : memref<1x512xf32, #tpu.memory_space<vmem>>, vector<1x512xf32>
    %cst_74 = arith.constant 0.000000e+00 : bf16
    %239 = vector.broadcast %cst_74 : bf16 to vector<8x128xbf16>
    %cst_75 = arith.constant 0.000000e+00 : f32
    %240 = vector.broadcast %cst_75 : f32 to vector<8x128xf32>
    %c0_76 = arith.constant 0 : index
    %c0_77 = arith.constant 0 : index
    %241 = vector.load %arg11[%c0_76, %c0_77] : memref<64x128xf32, #tpu.memory_space<vmem>>, vector<64x128xf32>
    %242 = arith.truncf %241 : vector<64x128xf32> to vector<64x128xbf16>
    %cst_78 = arith.constant dense<0.000000e+00> : vector<64x512xf32>
    %243 = tpu.matmul %242, %236, %cst_78 {dimension_numbers = #tpu.dot_dimension_numbers<[1], [0], [0], [1], [0, 0, 1, 1], [], []>} : vector<64x128xbf16>, vector<128x512xbf16>, vector<64x512xf32> -> vector<64x512xf32>
    %244 = vector.broadcast %238 : vector<1x512xf32> to vector<64x512xf32>
    %245 = arith.addf %243, %244 : vector<64x512xf32>
    %c0_79 = arith.constant 0 : index
    %c0_80 = arith.constant 0 : index
    %246 = vector.load %arg12[%c0_79, %c0_80] : memref<64x512xf32, #tpu.memory_space<vmem>>, vector<64x512xf32>
    tpu.vector_store %arg12[%c0_79, %c0_80], %245 {strides = array<i32>} : memref<64x512xf32, #tpu.memory_space<vmem>>, vector<64x512xf32>,
    %c0_i32_81 = arith.constant 0 : i32
    %c8_i32_82 = arith.constant 8 : i32
    %247 = arith.muli %c0_i32_81, %c8_i32_82 : i32
    %248 = tpu.assume_multiple %247, 8 : i32
    %249 = arith.index_cast %248 : i32 to index
    %c0_83 = arith.constant 0 : index
    %250 = vector.load %arg12[%249, %c0_83] : memref<64x512xf32, #tpu.memory_space<vmem>>, vector<8x512xf32>
    %cst_84 = arith.constant dense<0.000000e+00> : vector<8x512xf32>
    %251 = tpu.matmul %239, %237, %cst_84 {dimension_numbers = #tpu.dot_dimension_numbers<[1], [0], [0], [1], [0, 0, 1, 1], [], []>} : vector<8x128xbf16>, vector<128x512xbf16>, vector<8x512xf32> -> vector<8x512xf32>
    %252 = arith.addf %250, %251 : vector<8x512xf32>
    %253 = vector.extract_strided_slice %252 {offsets = [0, 0], sizes = [8, 384], strides = [1, 1]} : vector<8x512xf32> to vector<8x384xf32>
    %254 = arith.negf %253 : vector<8x384xf32>
    %255 = math.exp %254 : vector<8x384xf32>
    %cst_85 = arith.constant 1.000000e+00 : f32
    %256 = vector.broadcast %cst_85 : f32 to vector<8x384xf32>
    %257 = arith.addf %256, %255 : vector<8x384xf32>
    %258 = arith.divf %256, %257 : vector<8x384xf32>
    %259 = vector.extract_strided_slice %258 {offsets = [0, 0], sizes = [8, 128], strides = [1, 1]} : vector<8x384xf32> to vector<8x128xf32>
    %260 = vector.extract_strided_slice %258 {offsets = [0, 128], sizes = [8, 128], strides = [1, 1]} : vector<8x384xf32> to vector<8x128xf32>
    %261 = vector.extract_strided_slice %258 {offsets = [0, 256], sizes = [8, 128], strides = [1, 1]} : vector<8x384xf32> to vector<8x128xf32>
    %262 = vector.extract_strided_slice %252 {offsets = [0, 384], sizes = [8, 128], strides = [1, 1]} : vector<8x512xf32> to vector<8x128xf32>
    %263 = math.tanh %262 : vector<8x128xf32>
    %264 = arith.mulf %260, %240 : vector<8x128xf32>
    %265 = arith.mulf %259, %263 : vector<8x128xf32>
    %266 = arith.addf %264, %265 : vector<8x128xf32>
    %267 = math.tanh %266 : vector<8x128xf32>
    %268 = arith.mulf %261, %267 : vector<8x128xf32>
    %269 = arith.truncf %268 : vector<8x128xf32> to vector<8x128xbf16>
    %c1_i32_86 = arith.constant 1 : i32
    %c8_i32_87 = arith.constant 8 : i32
    %270 = arith.muli %c1_i32_86, %c8_i32_87 : i32
    %271 = tpu.assume_multiple %270, 8 : i32
    %272 = arith.index_cast %271 : i32 to index
    %c0_88 = arith.constant 0 : index
    %273 = vector.load %arg12[%272, %c0_88] : memref<64x512xf32, #tpu.memory_space<vmem>>, vector<8x512xf32>
    %cst_89 = arith.constant dense<0.000000e+00> : vector<8x512xf32>
    %274 = tpu.matmul %269, %237, %cst_89 {dimension_numbers = #tpu.dot_dimension_numbers<[1], [0], [0], [1], [0, 0, 1, 1], [], []>} : vector<8x128xbf16>, vector<128x512xbf16>, vector<8x512xf32> -> vector<8x512xf32>
    %275 = arith.addf %273, %274 : vector<8x512xf32>
    %276 = vector.extract_strided_slice %275 {offsets = [0, 0], sizes = [8, 384], strides = [1, 1]} : vector<8x512xf32> to vector<8x384xf32>
    %277 = arith.negf %276 : vector<8x384xf32>
    %278 = math.exp %277 : vector<8x384xf32>
    %cst_90 = arith.constant 1.000000e+00 : f32
    %279 = vector.broadcast %cst_90 : f32 to vector<8x384xf32>
    %280 = arith.addf %279, %278 : vector<8x384xf32>
    %281 = arith.divf %279, %280 : vector<8x384xf32>
    %282 = vector.extract_strided_slice %281 {offsets = [0, 0], sizes = [8, 128], strides = [1, 1]} : vector<8x384xf32> to vector<8x128xf32>
    %283 = vector.extract_strided_slice %281 {offsets = [0, 128], sizes = [8, 128], strides = [1, 1]} : vector<8x384xf32> to vector<8x128xf32>
    %284 = vector.extract_strided_slice %281 {offsets = [0, 256], sizes = [8, 128], strides = [1, 1]} : vector<8x384xf32> to vector<8x128xf32>
    %285 = vector.extract_strided_slice %275 {offsets = [0, 384], sizes = [8, 128], strides = [1, 1]} : vector<8x512xf32> to vector<8x128xf32>
    %286 = math.tanh %285 : vector<8x128xf32>
    %287 = arith.mulf %283, %266 : vector<8x128xf32>
    %288 = arith.mulf %282, %286 : vector<8x128xf32>
    %289 = arith.addf %287, %288 : vector<8x128xf32>
    %290 = math.tanh %289 : vector<8x128xf32>
    %291 = arith.mulf %284, %290 : vector<8x128xf32>
    %292 = arith.truncf %291 : vector<8x128xf32> to vector<8x128xbf16>
    %c2_i32_91 = arith.constant 2 : i32
    %c8_i32_92 = arith.constant 8 : i32
    %293 = arith.muli %c2_i32_91, %c8_i32_92 : i32
    %294 = tpu.assume_multiple %293, 8 : i32
    %295 = arith.index_cast %294 : i32 to index
    %c0_93 = arith.constant 0 : index
    %296 = vector.load %arg12[%295, %c0_93] : memref<64x512xf32, #tpu.memory_space<vmem>>, vector<8x512xf32>
    %cst_94 = arith.constant dense<0.000000e+00> : vector<8x512xf32>
    %297 = tpu.matmul %292, %237, %cst_94 {dimension_numbers = #tpu.dot_dimension_numbers<[1], [0], [0], [1], [0, 0, 1, 1], [], []>} : vector<8x128xbf16>, vector<128x512xbf16>, vector<8x512xf32> -> vector<8x512xf32>
    %298 = arith.addf %296, %297 : vector<8x512xf32>
    %299 = vector.extract_strided_slice %298 {offsets = [0, 0], sizes = [8, 384], strides = [1, 1]} : vector<8x512xf32> to vector<8x384xf32>
    %300 = arith.negf %299 : vector<8x384xf32>
    %301 = math.exp %300 : vector<8x384xf32>
    %cst_95 = arith.constant 1.000000e+00 : f32
    %302 = vector.broadcast %cst_95 : f32 to vector<8x384xf32>
    %303 = arith.addf %302, %301 : vector<8x384xf32>
    %304 = arith.divf %302, %303 : vector<8x384xf32>
    %305 = vector.extract_strided_slice %304 {offsets = [0, 0], sizes = [8, 128], strides = [1, 1]} : vector<8x384xf32> to vector<8x128xf32>
    %306 = vector.extract_strided_slice %304 {offsets = [0, 128], sizes = [8, 128], strides = [1, 1]} : vector<8x384xf32> to vector<8x128xf32>
    %307 = vector.extract_strided_slice %304 {offsets = [0, 256], sizes = [8, 128], strides = [1, 1]} : vector<8x384xf32> to vector<8x128xf32>
    %308 = vector.extract_strided_slice %298 {offsets = [0, 384], sizes = [8, 128], strides = [1, 1]} : vector<8x512xf32> to vector<8x128xf32>
    %309 = math.tanh %308 : vector<8x128xf32>
    %310 = arith.mulf %306, %289 : vector<8x128xf32>
    %311 = arith.mulf %305, %309 : vector<8x128xf32>
    %312 = arith.addf %310, %311 : vector<8x128xf32>
    %313 = math.tanh %312 : vector<8x128xf32>
    %314 = arith.mulf %307, %313 : vector<8x128xf32>
    %315 = arith.truncf %314 : vector<8x128xf32> to vector<8x128xbf16>
    %c3_i32_96 = arith.constant 3 : i32
    %c8_i32_97 = arith.constant 8 : i32
    %316 = arith.muli %c3_i32_96, %c8_i32_97 : i32
    %317 = tpu.assume_multiple %316, 8 : i32
    %318 = arith.index_cast %317 : i32 to index
    %c0_98 = arith.constant 0 : index
    %319 = vector.load %arg12[%318, %c0_98] : memref<64x512xf32, #tpu.memory_space<vmem>>, vector<8x512xf32>
    %cst_99 = arith.constant dense<0.000000e+00> : vector<8x512xf32>
    %320 = tpu.matmul %315, %237, %cst_99 {dimension_numbers = #tpu.dot_dimension_numbers<[1], [0], [0], [1], [0, 0, 1, 1], [], []>} : vector<8x128xbf16>, vector<128x512xbf16>, vector<8x512xf32> -> vector<8x512xf32>
    %321 = arith.addf %319, %320 : vector<8x512xf32>
    %322 = vector.extract_strided_slice %321 {offsets = [0, 0], sizes = [8, 384], strides = [1, 1]} : vector<8x512xf32> to vector<8x384xf32>
    %323 = arith.negf %322 : vector<8x384xf32>
    %324 = math.exp %323 : vector<8x384xf32>
    %cst_100 = arith.constant 1.000000e+00 : f32
    %325 = vector.broadcast %cst_100 : f32 to vector<8x384xf32>
    %326 = arith.addf %325, %324 : vector<8x384xf32>
    %327 = arith.divf %325, %326 : vector<8x384xf32>
    %328 = vector.extract_strided_slice %327 {offsets = [0, 0], sizes = [8, 128], strides = [1, 1]} : vector<8x384xf32> to vector<8x128xf32>
    %329 = vector.extract_strided_slice %327 {offsets = [0, 128], sizes = [8, 128], strides = [1, 1]} : vector<8x384xf32> to vector<8x128xf32>
    %330 = vector.extract_strided_slice %327 {offsets = [0, 256], sizes = [8, 128], strides = [1, 1]} : vector<8x384xf32> to vector<8x128xf32>
    %331 = vector.extract_strided_slice %321 {offsets = [0, 384], sizes = [8, 128], strides = [1, 1]} : vector<8x512xf32> to vector<8x128xf32>
    %332 = math.tanh %331 : vector<8x128xf32>
    %333 = arith.mulf %329, %312 : vector<8x128xf32>
    %334 = arith.mulf %328, %332 : vector<8x128xf32>
    %335 = arith.addf %333, %334 : vector<8x128xf32>
    %336 = math.tanh %335 : vector<8x128xf32>
    %337 = arith.mulf %330, %336 : vector<8x128xf32>
    %338 = arith.truncf %337 : vector<8x128xf32> to vector<8x128xbf16>
    %c4_i32_101 = arith.constant 4 : i32
    %c8_i32_102 = arith.constant 8 : i32
    %339 = arith.muli %c4_i32_101, %c8_i32_102 : i32
    %340 = tpu.assume_multiple %339, 8 : i32
    %341 = arith.index_cast %340 : i32 to index
    %c0_103 = arith.constant 0 : index
    %342 = vector.load %arg12[%341, %c0_103] : memref<64x512xf32, #tpu.memory_space<vmem>>, vector<8x512xf32>
    %cst_104 = arith.constant dense<0.000000e+00> : vector<8x512xf32>
    %343 = tpu.matmul %338, %237, %cst_104 {dimension_numbers = #tpu.dot_dimension_numbers<[1], [0], [0], [1], [0, 0, 1, 1], [], []>} : vector<8x128xbf16>, vector<128x512xbf16>, vector<8x512xf32> -> vector<8x512xf32>
    %344 = arith.addf %342, %343 : vector<8x512xf32>
    %345 = vector.extract_strided_slice %344 {offsets = [0, 0], sizes = [8, 384], strides = [1, 1]} : vector<8x512xf32> to vector<8x384xf32>
    %346 = arith.negf %345 : vector<8x384xf32>
    %347 = math.exp %346 : vector<8x384xf32>
    %cst_105 = arith.constant 1.000000e+00 : f32
    %348 = vector.broadcast %cst_105 : f32 to vector<8x384xf32>
    %349 = arith.addf %348, %347 : vector<8x384xf32>
    %350 = arith.divf %348, %349 : vector<8x384xf32>
    %351 = vector.extract_strided_slice %350 {offsets = [0, 0], sizes = [8, 128], strides = [1, 1]} : vector<8x384xf32> to vector<8x128xf32>
    %352 = vector.extract_strided_slice %350 {offsets = [0, 128], sizes = [8, 128], strides = [1, 1]} : vector<8x384xf32> to vector<8x128xf32>
    %353 = vector.extract_strided_slice %350 {offsets = [0, 256], sizes = [8, 128], strides = [1, 1]} : vector<8x384xf32> to vector<8x128xf32>
    %354 = vector.extract_strided_slice %344 {offsets = [0, 384], sizes = [8, 128], strides = [1, 1]} : vector<8x512xf32> to vector<8x128xf32>
    %355 = math.tanh %354 : vector<8x128xf32>
    %356 = arith.mulf %352, %335 : vector<8x128xf32>
    %357 = arith.mulf %351, %355 : vector<8x128xf32>
    %358 = arith.addf %356, %357 : vector<8x128xf32>
    %359 = math.tanh %358 : vector<8x128xf32>
    %360 = arith.mulf %353, %359 : vector<8x128xf32>
    %361 = arith.truncf %360 : vector<8x128xf32> to vector<8x128xbf16>
    %c5_i32_106 = arith.constant 5 : i32
    %c8_i32_107 = arith.constant 8 : i32
    %362 = arith.muli %c5_i32_106, %c8_i32_107 : i32
    %363 = tpu.assume_multiple %362, 8 : i32
    %364 = arith.index_cast %363 : i32 to index
    %c0_108 = arith.constant 0 : index
    %365 = vector.load %arg12[%364, %c0_108] : memref<64x512xf32, #tpu.memory_space<vmem>>, vector<8x512xf32>
    %cst_109 = arith.constant dense<0.000000e+00> : vector<8x512xf32>
    %366 = tpu.matmul %361, %237, %cst_109 {dimension_numbers = #tpu.dot_dimension_numbers<[1], [0], [0], [1], [0, 0, 1, 1], [], []>} : vector<8x128xbf16>, vector<128x512xbf16>, vector<8x512xf32> -> vector<8x512xf32>
    %367 = arith.addf %365, %366 : vector<8x512xf32>
    %368 = vector.extract_strided_slice %367 {offsets = [0, 0], sizes = [8, 384], strides = [1, 1]} : vector<8x512xf32> to vector<8x384xf32>
    %369 = arith.negf %368 : vector<8x384xf32>
    %370 = math.exp %369 : vector<8x384xf32>
    %cst_110 = arith.constant 1.000000e+00 : f32
    %371 = vector.broadcast %cst_110 : f32 to vector<8x384xf32>
    %372 = arith.addf %371, %370 : vector<8x384xf32>
    %373 = arith.divf %371, %372 : vector<8x384xf32>
    %374 = vector.extract_strided_slice %373 {offsets = [0, 0], sizes = [8, 128], strides = [1, 1]} : vector<8x384xf32> to vector<8x128xf32>
    %375 = vector.extract_strided_slice %373 {offsets = [0, 128], sizes = [8, 128], strides = [1, 1]} : vector<8x384xf32> to vector<8x128xf32>
    %376 = vector.extract_strided_slice %373 {offsets = [0, 256], sizes = [8, 128], strides = [1, 1]} : vector<8x384xf32> to vector<8x128xf32>
    %377 = vector.extract_strided_slice %367 {offsets = [0, 384], sizes = [8, 128], strides = [1, 1]} : vector<8x512xf32> to vector<8x128xf32>
    %378 = math.tanh %377 : vector<8x128xf32>
    %379 = arith.mulf %375, %358 : vector<8x128xf32>
    %380 = arith.mulf %374, %378 : vector<8x128xf32>
    %381 = arith.addf %379, %380 : vector<8x128xf32>
    %382 = math.tanh %381 : vector<8x128xf32>
    %383 = arith.mulf %376, %382 : vector<8x128xf32>
    %384 = arith.truncf %383 : vector<8x128xf32> to vector<8x128xbf16>
    %c6_i32_111 = arith.constant 6 : i32
    %c8_i32_112 = arith.constant 8 : i32
    %385 = arith.muli %c6_i32_111, %c8_i32_112 : i32
    %386 = tpu.assume_multiple %385, 8 : i32
    %387 = arith.index_cast %386 : i32 to index
    %c0_113 = arith.constant 0 : index
    %388 = vector.load %arg12[%387, %c0_113] : memref<64x512xf32, #tpu.memory_space<vmem>>, vector<8x512xf32>
    %cst_114 = arith.constant dense<0.000000e+00> : vector<8x512xf32>
    %389 = tpu.matmul %384, %237, %cst_114 {dimension_numbers = #tpu.dot_dimension_numbers<[1], [0], [0], [1], [0, 0, 1, 1], [], []>} : vector<8x128xbf16>, vector<128x512xbf16>, vector<8x512xf32> -> vector<8x512xf32>
    %390 = arith.addf %388, %389 : vector<8x512xf32>
    %391 = vector.extract_strided_slice %390 {offsets = [0, 0], sizes = [8, 384], strides = [1, 1]} : vector<8x512xf32> to vector<8x384xf32>
    %392 = arith.negf %391 : vector<8x384xf32>
    %393 = math.exp %392 : vector<8x384xf32>
    %cst_115 = arith.constant 1.000000e+00 : f32
    %394 = vector.broadcast %cst_115 : f32 to vector<8x384xf32>
    %395 = arith.addf %394, %393 : vector<8x384xf32>
    %396 = arith.divf %394, %395 : vector<8x384xf32>
    %397 = vector.extract_strided_slice %396 {offsets = [0, 0], sizes = [8, 128], strides = [1, 1]} : vector<8x384xf32> to vector<8x128xf32>
    %398 = vector.extract_strided_slice %396 {offsets = [0, 128], sizes = [8, 128], strides = [1, 1]} : vector<8x384xf32> to vector<8x128xf32>
    %399 = vector.extract_strided_slice %396 {offsets = [0, 256], sizes = [8, 128], strides = [1, 1]} : vector<8x384xf32> to vector<8x128xf32>
    %400 = vector.extract_strided_slice %390 {offsets = [0, 384], sizes = [8, 128], strides = [1, 1]} : vector<8x512xf32> to vector<8x128xf32>
    %401 = math.tanh %400 : vector<8x128xf32>
    %402 = arith.mulf %398, %381 : vector<8x128xf32>
    %403 = arith.mulf %397, %401 : vector<8x128xf32>
    %404 = arith.addf %402, %403 : vector<8x128xf32>
    %405 = math.tanh %404 : vector<8x128xf32>
    %406 = arith.mulf %399, %405 : vector<8x128xf32>
    %407 = arith.truncf %406 : vector<8x128xf32> to vector<8x128xbf16>
    %c7_i32_116 = arith.constant 7 : i32
    %c8_i32_117 = arith.constant 8 : i32
    %408 = arith.muli %c7_i32_116, %c8_i32_117 : i32
    %409 = tpu.assume_multiple %408, 8 : i32
    %410 = arith.index_cast %409 : i32 to index
    %c0_118 = arith.constant 0 : index
    %411 = vector.load %arg12[%410, %c0_118] : memref<64x512xf32, #tpu.memory_space<vmem>>, vector<8x512xf32>
    %cst_119 = arith.constant dense<0.000000e+00> : vector<8x512xf32>
    %412 = tpu.matmul %407, %237, %cst_119 {dimension_numbers = #tpu.dot_dimension_numbers<[1], [0], [0], [1], [0, 0, 1, 1], [], []>} : vector<8x128xbf16>, vector<128x512xbf16>, vector<8x512xf32> -> vector<8x512xf32>
    %413 = arith.addf %411, %412 : vector<8x512xf32>
    %414 = vector.extract_strided_slice %413 {offsets = [0, 0], sizes = [8, 384], strides = [1, 1]} : vector<8x512xf32> to vector<8x384xf32>
    %415 = arith.negf %414 : vector<8x384xf32>
    %416 = math.exp %415 : vector<8x384xf32>
    %cst_120 = arith.constant 1.000000e+00 : f32
    %417 = vector.broadcast %cst_120 : f32 to vector<8x384xf32>
    %418 = arith.addf %417, %416 : vector<8x384xf32>
    %419 = arith.divf %417, %418 : vector<8x384xf32>
    %420 = vector.extract_strided_slice %419 {offsets = [0, 0], sizes = [8, 128], strides = [1, 1]} : vector<8x384xf32> to vector<8x128xf32>
    %421 = vector.extract_strided_slice %419 {offsets = [0, 128], sizes = [8, 128], strides = [1, 1]} : vector<8x384xf32> to vector<8x128xf32>
    %422 = vector.extract_strided_slice %419 {offsets = [0, 256], sizes = [8, 128], strides = [1, 1]} : vector<8x384xf32> to vector<8x128xf32>
    %423 = vector.extract_strided_slice %413 {offsets = [0, 384], sizes = [8, 128], strides = [1, 1]} : vector<8x512xf32> to vector<8x128xf32>
    %424 = math.tanh %423 : vector<8x128xf32>
    %425 = arith.mulf %421, %404 : vector<8x128xf32>
    %426 = arith.mulf %420, %424 : vector<8x128xf32>
    %427 = arith.addf %425, %426 : vector<8x128xf32>
    %428 = math.tanh %427 : vector<8x128xf32>
    %429 = arith.mulf %422, %428 : vector<8x128xf32>
    %430 = arith.truncf %429 : vector<8x128xf32> to vector<8x128xbf16>
    %c8_i32_121 = arith.constant 8 : i32
    %c0_122 = arith.constant 0 : index
    %c0_123 = arith.constant 0 : index
    %431 = vector.load %arg8[%c0_122, %c0_123] : memref<128x1xbf16, #tpu.memory_space<vmem>>, vector<128x1xbf16>
    %cst_124 = arith.constant dense<0.000000e+00> : vector<8x1xf32>
    %432 = tpu.matmul %430, %431, %cst_124 {dimension_numbers = #tpu.dot_dimension_numbers<[1], [0], [0], [1], [0, 0, 1, 1], [], []>} : vector<8x128xbf16>, vector<128x1xbf16>, vector<8x1xf32> -> vector<8x1xf32>
    %c0_125 = arith.constant 0 : index
    %c0_126 = arith.constant 0 : index
    %433 = vector.load %arg9[%c0_125, %c0_126] : memref<1x1xf32, #tpu.memory_space<vmem>>, vector<1x1xf32>
    %434 = vector.broadcast %433 : vector<1x1xf32> to vector<8x1xf32>
    %435 = arith.addf %432, %434 : vector<8x1xf32>
    %436 = arith.negf %435 : vector<8x1xf32>
    %437 = math.exp %436 : vector<8x1xf32>
    %cst_127 = arith.constant 1.000000e+00 : f32
    %438 = vector.broadcast %cst_127 : f32 to vector<8x1xf32>
    %439 = arith.addf %438, %437 : vector<8x1xf32>
    %440 = arith.divf %438, %439 : vector<8x1xf32>
    %c0_128 = arith.constant 0 : index
    %c0_129 = arith.constant 0 : index
    %441 = vector.load %arg10[%c0_128, %c0_129] : memref<8x1xf32, #tpu.memory_space<vmem>>, vector<8x1xf32>
    tpu.vector_store %arg10[%c0_128, %c0_129], %440 {strides = array<i32>} : memref<8x1xf32, #tpu.memory_space<vmem>>, vector<8x1xf32>,
    return
  }
  func.func @transform_0(%arg0: i32) -> (i32, i32, i32) {
    %c0_i32 = arith.constant 0 : i32
    %c0_i32_0 = arith.constant 0 : i32
    %c0_i32_1 = arith.constant 0 : i32
    return %c0_i32, %arg0, %c0_i32_0 : i32, i32, i32
  }
  func.func @transform_1(%arg0: i32) -> (i32, i32) {
    %c0_i32 = arith.constant 0 : i32
    %c0_i32_0 = arith.constant 0 : i32
    %c0_i32_1 = arith.constant 0 : i32
    return %c0_i32, %c0_i32_0 : i32, i32
  }
  func.func @transform_2(%arg0: i32) -> (i32, i32) {
    %c0_i32 = arith.constant 0 : i32
    %c0_i32_0 = arith.constant 0 : i32
    %c0_i32_1 = arith.constant 0 : i32
    return %c0_i32, %c0_i32_0 : i32, i32
  }
  func.func @transform_3(%arg0: i32) -> (i32, i32) {
    %c0_i32 = arith.constant 0 : i32
    %c0_i32_0 = arith.constant 0 : i32
    %c0_i32_1 = arith.constant 0 : i32
    return %c0_i32, %c0_i32_0 : i32, i32
  }
  func.func @transform_4(%arg0: i32) -> (i32, i32) {
    %c0_i32 = arith.constant 0 : i32
    %c0_i32_0 = arith.constant 0 : i32
    %c0_i32_1 = arith.constant 0 : i32
    return %c0_i32, %c0_i32_0 : i32, i32
  }
  func.func @transform_5(%arg0: i32) -> (i32, i32) {
    %c0_i32 = arith.constant 0 : i32
    %c0_i32_0 = arith.constant 0 : i32
    %c0_i32_1 = arith.constant 0 : i32
    return %c0_i32, %c0_i32_0 : i32, i32
  }
  func.func @transform_6(%arg0: i32) -> (i32, i32) {
    %c0_i32 = arith.constant 0 : i32
    %c0_i32_0 = arith.constant 0 : i32
    %c0_i32_1 = arith.constant 0 : i32
    return %c0_i32, %c0_i32_0 : i32, i32
  }
  func.func @transform_7(%arg0: i32) -> (i32, i32) {
    %c0_i32 = arith.constant 0 : i32
    %c0_i32_0 = arith.constant 0 : i32
    %c0_i32_1 = arith.constant 0 : i32
    return %c0_i32, %c0_i32_0 : i32, i32
  }
  func.func @transform_8(%arg0: i32) -> (i32, i32) {
    %c0_i32 = arith.constant 0 : i32
    %c0_i32_0 = arith.constant 0 : i32
    %c0_i32_1 = arith.constant 0 : i32
    return %c0_i32, %c0_i32_0 : i32, i32
  }
  func.func @transform_9(%arg0: i32) -> (i32, i32) {
    %c0_i32 = arith.constant 0 : i32
    %c0_i32_0 = arith.constant 0 : i32
    return %arg0, %c0_i32 : i32, i32
  }
}

</mosaic_0001>

<bundles_post_ra>
// kernel: discriminative_lstm_forward.1
= control target key start
LH: loop header
LB: loop body
LE: loop exit
PB: predicated region body
PF: predicated region fallthrough
CT: control target
= control target key end

     0   :  { %s5995_s0 = inlined_call_operand.vmem [shape: f32[8,16,16], index: 0, kind: input, shape index: {}]   ;;  %s5996_s1 = inlined_call_operand.vmem [shape: bf16[16,512], index: 1, kind: input, shape index: {}]   ;;  %s5997_s2 = inlined_call_operand.vmem [shape: bf16[128,512], index: 2, kind: input, shape index: {}]   ;;  %s5998_s3 = inlined_call_operand.vmem [shape: f32[1,512], index: 3, kind: input, shape index: {}]   ;;  %s5999_s4 = inlined_call_operand.hbm [shape: bf16[128,512], index: 4, kind: input, shape index: {}]   ;;  %s6000_s5 = inlined_call_operand.hbm [shape: bf16[128,512], index: 5, kind: input, shape index: {}]   ;;  %s6001_s6 = inlined_call_operand.vmem [shape: f32[1,512], index: 6, kind: input, shape index: {}]   ;;  %s6002_s7 = inlined_call_operand.vmem [shape: bf16[128,1], index: 7, kind: input, shape index: {}]   ;;  %s6003_s8 = inlined_call_operand.<no memory space> [shape: f32[1,1], index: 8, kind: input, shape index: {}]   ;;  %s6004_s9 = inlined_call_operand.vmem [shape: f32[16,1], index: 9, kind: output, shape index: {}]  }
   0x1   :  { %v14_v0 = vstv %s6003_s8 }
   0x2   :  { %15 = vst [vmem:[#allocation4] sm:$0x1] %v14_v0 }
   0x3   :  { %16 = vsyncpa [#allocation7], 0 }
   0x4   :  { %17 = vsyncpa [#allocation9], 0  ;;  %s4438_s11 = smov 0   ;;  %s4440_s12 = smov 0  }
   0x5   :  { %s4442_s13 = smov 0  }
   0x6 LB: > { %s4454_s8 = sadd.s32 4294967295, %s4376_s13   ;;  %s4457_s14 = sadd.s32 1, %s4376_s13   ;;  %s4376_s13 = sphi %s4442_s13, %s6121_s13   ;;  %s4372_s12 = sphi %s4440_s12, %s6120_s12   ;;  %s4368_s11 = sphi %s4438_s11, %s6119_s11  }
   0x7   : > { %s27_s15 = ssub.s32 %s4376_s13, %s4457_s14  ;;  %s30_s16 = sadd.s32 1, %s4372_s12 }
   0x8   : > { %p28_p0 = scmp.eq.s32.totalorder %s27_s15, 0  ;;  %p37_p1 = scmp.ne.s32.totalorder %s4372_s12, %s4368_s11 }
   0x9   : > { %p38_p2 = scmp.eq.s32.totalorder %s4376_s13, 0  ;;  %p3550_p3 = scmp.ge.s32.totalorder %s4376_s13, 1 }
   0xa   : > { %s4467_s17 = scalar_select %p28_p0, %s4372_s12, %s30_s16  }
   0xb   : > { %p4469_p4 = por %p38_p2, %p37_p1  ;;  %p248_p5 = scmp.lt.s32.totalorder %s4376_s13, 3 }
   0xc   : > { %p6005_p6 = scmp.eq.s32.totalorder %s4454_s8, 0  ;;  %s4378_s20 = smov [#allocation6]  }
   0xd   : > { %s6015_s18 = scalar_select %p4469_p4, 1, 0 }
   0xe   : > { %p4475_p7 = pnand %p3550_p3, %p248_p5  ;;  %s269_s21 = sshll.u32 %s4378_s20, 4  ;;  %s270_s21 = int_to_ptr.vmem [resolvable:$true] %s269_s21 }
   0xf   : > { %s4379_s23 = smov [#allocation8]   ;;  %s4290_s27 = scalar_lea.hbm %s5999_s4, 4096 }
  0x10   : > { %s6016_s19 = scalar_select %p4475_p7, 1, 0 }
  0x11   : > { %p3766_p8 = pneg %p4475_p7  ;;  %s282_s24 = sshll.u32 %s4379_s23, 4  ;;  %s4487_s24 = int_to_ptr.vmem [resolvable:$true] %s282_s24 }
  0x12   : > { %p4291_p10 = scmp.ne.s32.totalorder %s5999_s4, %s4290_s27  ;;  %p4297_p0 = scmp.lt.u32.totalorder %s4290_s27, %s5999_s4 }
  0x13   : > { %p4483_p9 = pnand %p6005_p6, %p3766_p8 }
  0x15   : > { %p4292_p11 = pneg %p4483_p9 }
  0x17   : > { %p4293_p12 = pnand %p4292_p11, %p4291_p10 }
  0x19   : > { %p4294_p13 = pneg %p4293_p12 }
  0x1b   : > { %p4299_p1 = pnand %p4297_p0, %p4294_p13 }
  0x1d   : > { %4302 = shalt.err (!%p4299_p1)
}
  0x1e   : > { %s4303_s15 = scalar_lea.vmem %s270_s21, 4096  ;;  %p4311_p8 = scmp.lt.s32.totalorder %s270_s21, %s270_s21 }
  0x1f   : > { %p4304_p2 = scmp.ne.s32.totalorder %s270_s21, %s4303_s15  ;;  %p4312_p6 = scmp.lt.s32.totalorder %s4303_s15, %s4303_s15 }
  0x21   : > { %p4306_p3 = pnand %p4304_p2, %p4292_p11  ;;  %p4313_p7 = por %p4312_p6, %p4311_p8 }
  0x23   : > { %p4307_p5 = pneg %p4306_p3 }
  0x25   : > { %p4314_p4 = pnand %p4313_p7, %p4307_p5 }
  0x27   : > { %4317 = shalt.err (!%p4314_p4)
}
  0x28   : > { %s4380_s16 = smov 256   ;;  %s4381_s20 = smov 16  }
  0x29   : > { %3769 = dma.hbm_to_vmem [thread:$0]  (!%p4483_p9), %s5999_s4, 4096, %s270_s21, [#allocation7], %s4380_s16, %s4380_s16, %s4381_s20  }
  0x2a   : > { %s4318_s28 = scalar_lea.hbm %s6000_s5, 4096 }
  0x2b   : > { %p4319_p10 = scmp.ne.s32.totalorder %s6000_s5, %s4318_s28  ;;  %p4325_p7 = scmp.lt.u32.totalorder %s4318_s28, %s6000_s5 }
  0x2d   : > { %p4321_p4 = pnand %p4319_p10, %p4292_p11 }
  0x2f   : > { %p4322_p6 = pneg %p4321_p4 }
  0x31   : > { %p4327_p12 = pnand %p4325_p7, %p4322_p6 }
  0x33   : > { %4330 = shalt.err (!%p4327_p12)
}
  0x34   : > { %s4331_s21 = scalar_lea.vmem %s4487_s24, 4096  ;;  %p4339_p2 = scmp.lt.s32.totalorder %s4487_s24, %s4487_s24 }
  0x35   : > { %p4332_p13 = scmp.ne.s32.totalorder %s4487_s24, %s4331_s21  ;;  %p4340_p3 = scmp.lt.s32.totalorder %s4331_s21, %s4331_s21 }
  0x37   : > { %p4334_p0 = pnand %p4332_p13, %p4292_p11  ;;  %p4341_p5 = por %p4340_p3, %p4339_p2 }
  0x39   : > { %p4335_p1 = pneg %p4334_p0 }
  0x3b   : > { %p4342_p8 = pnand %p4341_p5, %p4335_p1 }
  0x3d   : > { %4345 = shalt.err (!%p4342_p8)
}
  0x3e   : > { %3772 = dma.hbm_to_vmem [thread:$0]  (!%p4483_p9), %s6000_s5, 4096, %s4487_s24, [#allocation9], %s4380_s16, %s4380_s16, %s4381_s20  }
  0x3f   : > { %p3553_p10 = scmp.ge.s32.totalorder %s4376_s13, 2 }
  0x40   : > { %p6018_p4 = scmp.ne.s32.totalorder (!%p3553_p10), %s6015_s18, 0 }
  0x41   : > { %301 = sbr.rel (%p3553_p10) target bundleno = 80 (0x50), region = 48 }
  0x48   : > { %304 = sbr.rel (!%p6018_p4) target bundleno = 80 (0x50), region = 52  ;;  %s306_s26 = sand.u32 (%p6018_p4), 1, %s4372_s12  }
  0x49   : > { %s3555_s27 = sshll.u32 (%p6018_p4), %s4376_s13, 3  ;;  %s3554_s28 = sshll.u32 (%p6018_p4), %s306_s26, 6 }
  0x4a   : > { %s310_s22 = scalar_lea.vmem (%p6018_p4), %s5995_s0, %s3555_s27  ;;  %s308_s10 = scalar_lea.vmem (%p6018_p4), [#allocation5], %s3554_s28 }
  0x4b   : > { %v352_v1 = vld [vmem:[%s310_s22] sm:$0xff] (%p6018_p4)  ;;  %v354_v2 = vld [vmem:[%s310_s22 + $0x10] sm:$0xff] (%p6018_p4) }
  0x4c   : > { %v356_v3 = vld [vmem:[%s310_s22 + $0x20] sm:$0xff] (%p6018_p4)  ;;  %353 = vst [vmem:[%s308_s10] sm:$0xff] (%p6018_p4), %v352_v1  ;;  %355 = vst [vmem:[%s308_s10 + $0x8] sm:$0xff] (%p6018_p4), %v354_v2  ;;  %v358_v4 = vld [vmem:[%s310_s22 + $0x30] sm:$0xff] (%p6018_p4) }
  0x4d   : > { %357 = vst [vmem:[%s308_s10 + $0x10] sm:$0xff] (%p6018_p4), %v356_v3  ;;  %v360_v5 = vld [vmem:[%s310_s22 + $0x40] sm:$0xff] (%p6018_p4)  ;;  %v362_v6 = vld [vmem:[%s310_s22 + $0x50] sm:$0xff] (%p6018_p4)  ;;  %359 = vst [vmem:[%s308_s10 + $0x18] sm:$0xff] (%p6018_p4), %v358_v4 }
  0x4e   : > { %361 = vst [vmem:[%s308_s10 + $0x20] sm:$0xff] (%p6018_p4), %v360_v5  ;;  %363 = vst [vmem:[%s308_s10 + $0x28] sm:$0xff] (%p6018_p4), %v362_v6  ;;  %v364_v7 = vld [vmem:[%s310_s22 + $0x60] sm:$0xff] (%p6018_p4)  ;;  %v366_v8 = vld [vmem:[%s310_s22 + $0x70] sm:$0xff] (%p6018_p4) }
  0x4f   : > { %365 = vst [vmem:[%s308_s10 + $0x30] sm:$0xff] %v364_v7  ;;  %367 = vst [vmem:[%s308_s10 + $0x38] sm:$0xff] %v366_v8 }
  0x50 PF: > { %p6019_p9 = scmp.ne.s32.totalorder %s6016_s19, 0 }
  0x52   : > { %376 = sbr.rel (%p6019_p9) target bundleno = 4544 (0x11c0), region = 90 }
  0x59   : > { %s379_s13 = sand.u32 1, %s4368_s11   ;;  %p6020_p11 = scmp.eq.s32.totalorder %s4454_s8, 0 }
  0x5a   : > { %s3557_s18 = sshll.u32 %s379_s13, 6 }
  0x5b   : > { %s4547_s24 = scalar_lea.vmem [#allocation5], %s3557_s18 }
  0x5c   : > { %4359 = dma.done.wait (%p6020_p11), [#allocation7], 4096   ;;  %p6021_p6 = pmov %p6020_p11 }
  0x5e   : > { %4361 = vsyncadd (%p6021_p6), [#allocation7], 4294963200  ;;  %p6022_p7 = pmov %p6021_p6 }
  0x5f   : > { %p6023_p12 = pmov %p6021_p6 }
  0x60   : > { %4363 = dma.done.wait (%p6022_p7), [#allocation9], 4096  }
  0x61   : > { %4365 = vsyncadd (%p6023_p12), [#allocation9], 4294963200  ;;  %v6011_v9 = vmov 0   ;;  %v3808_v10 = vld [vmem:[%s5996_s1 + $0x4] ss:$16 sps:$4 sm:$0xff]   ;;  %v464_v15 = vld [vmem:[%s4547_s24 + $0x8] sm:$0xff]  ;;  %v476_v58 = vlaneseq }
  0x62   : > { %561 = vmatprep.mubr.bf16.mxu0 %v6011_v9  ;;  %634 = vmatprep.mubr.bf16.mxu1 %v6011_v9  ;;  %v3810_v11 = vld [vmem:[%s5996_s1 + $0xc] ss:$16 sps:$4 sm:$0xff]   ;;  %v3812_v12 = vld [vmem:[%s5996_s1] ss:$16 sps:$4 sm:$0xff]   ;;  %v3813_v13 = vld [vmem:[%s5996_s1 + $0x8] ss:$16 sps:$4 sm:$0xff]  }
  0x63   : > { %529 = vmatprep.subr.bf16.mxu0 %v3808_v10  ;;  %v463_v14 = vld [vmem:[%s4547_s24] sm:$0xff]  ;;  %602 = vmatprep.subr.bf16.mxu1 %v3810_v11  ;;  %vm516_vm0 = vcmask 130048   ;;  %v4581_v18 = vld [vmem:[%s5997_s2 + $0xc] ss:$16 sps:$4 sm:$0xff]   ;;  %v465_v25 = vld [vmem:[%s4547_s24 + $0x10] sm:$0xff]  ;;  %v4825_v59 = vshrl.u32 %v476_v58, 7 }
  0x64   : > { %530 = vmatpush1.bf16.msra.mxu0 %v3812_v12  ;;  %603 = vmatpush1.bf16.msra.mxu1 %v3813_v13  ;;  %v471_v16 = vpack.c.bf16 %v464_v15, %v463_v14  ;;  %v4576_v17 = vld [vmem:[%s5997_s2 + $0x4] ss:$16 sps:$4 sm:$0xff]   ;;  %v4586_v19 = vld [vmem:[%s5997_s2] ss:$16 sps:$4 sm:$0xff]   ;;  %v4591_v20 = vld [vmem:[%s5997_s2 + $0x8] ss:$16 sps:$4 sm:$0xff]  }
  0x65   : > { %874 = vmatprep.subr.bf16.mxu0 %v4576_v17  ;;  %v4597_v21 = vld [vmem:[%s5997_s2 + $0x24] ss:$16 sps:$4 sm:$0xff]   ;;  %v4604_v22 = vld [vmem:[%s5997_s2 + $0x2c] ss:$16 sps:$4 sm:$0xff]   ;;  %915 = vmatprep.subr.bf16.mxu1 %v4581_v18  ;;  %v4611_v23 = vld [vmem:[%s5997_s2 + $0x20] ss:$16 sps:$4 sm:$0xff]  }
  0x66   : > { %v4616_v24 = vld [vmem:[%s5997_s2 + $0x28] ss:$16 sps:$4 sm:$0xff]   ;;  %v4627_v27 = vld [vmem:[%s5997_s2 + $0x44] ss:$16 sps:$4 sm:$0xff]   ;;  %v4633_v29 = vld [vmem:[%s5997_s2 + $0x4c] ss:$16 sps:$4 sm:$0xff]  }
  0x67   : > { %3565 = vmatmul.mubr.msk.bf16.vlgmr.msra.gmra.mrb[0].mxu0 %vm516_vm0, %v471_v16  ;;  %3569 = vmatmul.mubr.msk.bf16.vlgmr.msra.gmra.mrb[0].mxu1 %vm516_vm0, %v471_v16  ;;  %v466_v26 = vld [vmem:[%s4547_s24 + $0x18] sm:$0xff]  ;;  %v4651_v32 = vld [vmem:[%s5997_s2 + $0x64] ss:$16 sps:$4 sm:$0xff]   ;;  %v468_v36 = vld [vmem:[%s4547_s24 + $0x28] sm:$0xff]  ;;  %6024 = vst [vmem:[#allocation12_spill] sm:$0xff] %v4825_v59  ;;  %v6009_v60 = vsub.s32 2, %v4825_v59 }
  0x68   : > { %875 = vmatpush1.bf16.msra.mxu0 %v4586_v19  ;;  %916 = vmatpush1.bf16.msra.mxu1 %v4591_v20  ;;  %v472_v28 = vpack.c.bf16 %v466_v26, %v465_v25  ;;  %v4638_v30 = vld [vmem:[%s5997_s2 + $0x40] ss:$16 sps:$4 sm:$0xff]   ;;  %v4644_v31 = vld [vmem:[%s5997_s2 + $0x48] ss:$16 sps:$4 sm:$0xff]   ;;  %v4657_v33 = vld [vmem:[%s5997_s2 + $0x6c] ss:$16 sps:$4 sm:$0xff]  }
  0x69   : > { %876 = vmatprep.subr.bf16.mxu0 %v4597_v21  ;;  %917 = vmatprep.subr.bf16.mxu1 %v4604_v22  ;;  %v4662_v34 = vld [vmem:[%s5997_s2 + $0x60] ss:$16 sps:$4 sm:$0xff]   ;;  %v4675_v37 = vld [vmem:[%s5997_s2 + $0x68] ss:$16 sps:$4 sm:$0xff]   ;;  %v4680_v38 = vld [vmem:[%s5997_s2 + $0x84] ss:$16 sps:$4 sm:$0xff]  }
  0x6a   : > { %571 = vmatprep.mubr.bf16.mxu0 %v6011_v9  ;;  %644 = vmatprep.mubr.bf16.mxu1 %v6011_v9  ;;  %v467_v35 = vld [vmem:[%s4547_s24 + $0x20] sm:$0xff]  ;;  %v4687_v39 = vld [vmem:[%s5997_s2 + $0x8c] ss:$16 sps:$4 sm:$0xff]   ;;  %v469_v47 = vld [vmem:[%s4547_s24 + $0x30] sm:$0xff]  ;;  %v6007_v61 = vsub.s32 3, %v4825_v59  ;;  %v6010_v62 = vsub.s32 0, %v4825_v59 }
  0x6b   : > { %v473_v40 = vpack.c.bf16 %v468_v36, %v467_v35  ;;  %v4693_v41 = vld [vmem:[%s5997_s2 + $0x80] ss:$16 sps:$4 sm:$0xff]   ;;  %v4698_v42 = vld [vmem:[%s5997_s2 + $0x88] ss:$16 sps:$4 sm:$0xff]   ;;  %v4705_v43 = vld [vmem:[%s5997_s2 + $0xa4] ss:$16 sps:$4 sm:$0xff]  }
  0x6c   : > { %877 = vmatpush1.bf16.msra.mxu0 %v4611_v23  ;;  %918 = vmatpush1.bf16.msra.mxu1 %v4616_v24  ;;  %v4711_v44 = vld [vmem:[%s5997_s2 + $0xac] ss:$16 sps:$4 sm:$0xff]   ;;  %v4718_v45 = vld [vmem:[%s5997_s2 + $0xa0] ss:$16 sps:$4 sm:$0xff]   ;;  %v4723_v46 = vld [vmem:[%s5997_s2 + $0xa8] ss:$16 sps:$4 sm:$0xff]  }
  0x6d   : > { %878 = vmatprep.subr.bf16.mxu0 %v4627_v27  ;;  %919 = vmatprep.subr.bf16.mxu1 %v4633_v29  ;;  %v470_v48 = vld [vmem:[%s4547_s24 + $0x38] sm:$0xff]  ;;  %v4734_v49 = vld [vmem:[%s5997_s2 + $0xc4] ss:$16 sps:$4 sm:$0xff]   ;;  %v6008_v0 = vsub.s32 1, %v4825_v59  ;;  %vm4384_vm1 = vmmov 0   ;;  %p421_p13 = scmp.lt.s32.totalorder %s4454_s8, 1 }
  0x6e   : > { %v4741_v50 = vld [vmem:[%s5997_s2 + $0xcc] ss:$16 sps:$4 sm:$0xff]   ;;  %v4746_v51 = vld [vmem:[%s5997_s2 + $0xc0] ss:$16 sps:$4 sm:$0xff]   ;;  %v474_v52 = vpack.c.bf16 %v470_v48, %v469_v47  ;;  %v4751_v53 = vld [vmem:[%s5997_s2 + $0xc8] ss:$16 sps:$4 sm:$0xff]  }
  0x6f   : > { %3566 = vmatmul.mubr.msk.bf16.gmra.mrb[4].mxu0 %vm516_vm0, %v472_v28  ;;  %3570 = vmatmul.mubr.msk.bf16.gmra.mrb[4].mxu1 %vm516_vm0, %v472_v28  ;;  %v4756_v54 = vld [vmem:[%s5997_s2 + $0xe4] ss:$16 sps:$4 sm:$0xff]   ;;  %v4762_v55 = vld [vmem:[%s5997_s2 + $0xec] ss:$16 sps:$4 sm:$0xff]   ;;  %v4770_v56 = vld [vmem:[%s5997_s2 + $0xe0] ss:$16 sps:$4 sm:$0xff]  }
  0x70   : > { %879 = vmatpush1.bf16.msra.mxu0 %v4638_v30  ;;  %581 = vmatprep.mubr.bf16.mxu0 %v6011_v9  ;;  %v4777_v57 = vld [vmem:[%s5997_s2 + $0xe8] ss:$16 sps:$4 sm:$0xff]   ;;  %v462_v63 = vld [vmem:[%s5998_s3] sm:$0xf]  ;;  %s6123_s8 = smov (!%p421_p13, %s4454_s8), 1  ;;  %vm3458_vm2 = vcmask 7168  }
  0x71   : > { %920 = vmatpush1.bf16.msra.mxu1 %v4644_v31  ;;  %880 = vmatprep.subr.bf16.mxu0 %v4651_v32  ;;  %v4836_v1 = vrot.slane %v462_v63, %v6009_v60  ;;  %v4844_v4 = vrot.slane %v462_v63, %v6007_v61  ;;  %v479_v5 = vrot.slane %v462_v63, %v6010_v62  ;;  %s3560_s10 = sshll.u32 %s6123_s8, 3 }
  0x72   : > { %921 = vmatprep.subr.bf16.mxu1 %v4657_v33  ;;  %654 = vmatprep.mubr.bf16.mxu1 %v6011_v9  ;;  %v483_v8 = vrot.slane %v462_v63, %v6008_v0  ;;  %s424_s11 = scalar_lea.vmem %s6004_s9, %s3560_s10 }
  0x74   : > { %881 = vmatpush1.bf16.msra.mxu0 %v4662_v34 }
  0x75   : > { %922 = vmatpush1.bf16.msra.mxu1 %v4675_v37  ;;  %882 = vmatprep.subr.bf16.mxu0 %v4680_v38 }
  0x76   : > { %923 = vmatprep.subr.bf16.mxu1 %v4687_v39 }
  0x77   : > { %3567 = vmatmul.mubr.msk.bf16.gmra.mrb[8].mxu0 %vm516_vm0, %v473_v40  ;;  %3571 = vmatmul.mubr.msk.bf16.gmra.mrb[8].mxu1 %vm516_vm0, %v473_v40 }
  0x78   : > { %883 = vmatpush1.bf16.msra.mxu0 %v4693_v41  ;;  %591 = vmatprep.mubr.bf16.mxu0 %v6011_v9 }
  0x79   : > { %924 = vmatpush1.bf16.msra.mxu1 %v4698_v42  ;;  %884 = vmatprep.subr.bf16.mxu0 %v4705_v43 }
  0x7a   : > { %925 = vmatprep.subr.bf16.mxu1 %v4711_v44  ;;  %664 = vmatprep.mubr.bf16.mxu1 %v6011_v9 }
  0x7c   : > { %885 = vmatpush1.bf16.msra.mxu0 %v4718_v45 }
  0x7d   : > { %926 = vmatpush1.bf16.msra.mxu1 %v4723_v46  ;;  %886 = vmatprep.subr.bf16.mxu0 %v4734_v49 }
  0x7e   : > { %927 = vmatprep.subr.bf16.mxu1 %v4741_v50 }
  0x7f   : > { %3568 = vmatmul.mubr.msk.bf16.gmra.mrb[12].mxu0 %vm516_vm0, %v474_v52  ;;  %3572 = vmatmul.mubr.msk.bf16.gmra.mrb[12].mxu1 %vm516_vm0, %v474_v52 }
  0x80   : > { %887 = vmatpush1.bf16.msra.mxu0 %v4746_v51  ;;  %906 = vmatprep.mubr.bf16.mxu0 %v6011_v9 }
  0x81   : > { %928 = vmatpush1.bf16.msra.mxu1 %v4751_v53  ;;  %888 = vmatprep.subr.bf16.mxu0 %v4756_v54 }
  0x82   : > { %929 = vmatprep.subr.bf16.mxu1 %v4762_v55  ;;  %947 = vmatprep.mubr.bf16.mxu1 %v6011_v9 }
  0x84   : > { %889 = vmatpush1.bf16.msra.mxu0 %v4770_v56 }
  0x85   : > { %930 = vmatpush1.bf16.msra.mxu1 %v4777_v57  ;;  %993 = vmatprep.subr.bf16.mxu0 %v4576_v17 }
  0x86   : > { %1034 = vmatprep.subr.bf16.mxu1 %v4581_v18 }
  0x87   : > { %907 = vmatmul.mubr.bf16.vlgmr.msra.gmra.mrb[16].mxu0 %v6011_v9 }
  0x88   : > { %948 = vmatmul.mubr.bf16.vlgmr.msra.gmra.mrb[16].mxu1 %v6011_v9  ;;  %994 = vmatpush1.bf16.msra.mxu0 %v4586_v19 }
  0x89   : > { %1035 = vmatpush1.bf16.msra.mxu1 %v4591_v20  ;;  %995 = vmatprep.subr.bf16.mxu0 %v4597_v21 }
  0x8a   : > { %1036 = vmatprep.subr.bf16.mxu1 %v4604_v22  ;;  %1025 = vmatprep.mubr.bf16.mxu0 %v6011_v9 }
  0x8b   : > { %1066 = vmatprep.mubr.bf16.mxu1 %v6011_v9 }
  0x8c   : > { %996 = vmatpush1.bf16.msra.mxu0 %v4611_v23 }
  0x8d   : > { %1037 = vmatpush1.bf16.msra.mxu1 %v4616_v24  ;;  %997 = vmatprep.subr.bf16.mxu0 %v4627_v27 }
  0x8e   : > { %1038 = vmatprep.subr.bf16.mxu1 %v4633_v29 }
  0x90   : > { %998 = vmatpush1.bf16.msra.mxu0 %v4638_v30 }
  0x91   : > { %1039 = vmatpush1.bf16.msra.mxu1 %v4644_v31  ;;  %999 = vmatprep.subr.bf16.mxu0 %v4651_v32 }
  0x92   : > { %1040 = vmatprep.subr.bf16.mxu1 %v4657_v33 }
  0x94   : > { %1000 = vmatpush1.bf16.msra.mxu0 %v4662_v34 }
  0x95   : > { %1041 = vmatpush1.bf16.msra.mxu1 %v4675_v37  ;;  %1001 = vmatprep.subr.bf16.mxu0 %v4680_v38 }
  0x96   : > { %1042 = vmatprep.subr.bf16.mxu1 %v4687_v39 }
  0x98   : > { %1002 = vmatpush1.bf16.msra.mxu0 %v4693_v41 }
  0x99   : > { %1043 = vmatpush1.bf16.msra.mxu1 %v4698_v42  ;;  %1003 = vmatprep.subr.bf16.mxu0 %v4705_v43 }
  0x9a   : > { %1044 = vmatprep.subr.bf16.mxu1 %v4711_v44 }
  0x9c   : > { %1004 = vmatpush1.bf16.msra.mxu0 %v4718_v45 }
  0x9d   : > { %1045 = vmatpush1.bf16.msra.mxu1 %v4723_v46  ;;  %1005 = vmatprep.subr.bf16.mxu0 %v4734_v49 }
  0x9e   : > { %1046 = vmatprep.subr.bf16.mxu1 %v4741_v50 }
  0xa0   : > { %1006 = vmatpush1.bf16.msra.mxu0 %v4746_v51 }
  0xa1   : > { %1047 = vmatpush1.bf16.msra.mxu1 %v4751_v53  ;;  %1007 = vmatprep.subr.bf16.mxu0 %v4756_v54 }
  0xa2   : > { %1048 = vmatprep.subr.bf16.mxu1 %v4762_v55 }
  0xa4   : > { %1008 = vmatpush1.bf16.msra.mxu0 %v4770_v56 }
  0xa5   : > { %1049 = vmatpush1.bf16.msra.mxu1 %v4777_v57  ;;  %1113 = vmatprep.subr.bf16.mxu0 %v4576_v17 }
  0xa6   : > { %1154 = vmatprep.subr.bf16.mxu1 %v4581_v18 }
 0x13a   : > { %v4838_v2 = vpop.f32.mrb[0].mxu0  ;;  %v4840_v3 = vpop.f32.mrb[0].mxu1 }
 0x13b   : > { %v565_v6 = vpop.f32.mrb[1].mxu0  ;;  %v638_v7 = vpop.f32.mrb[1].mxu1 }
 0x13c   : > { %v567_v10 = vpop.f32.mrb[2].mxu0  ;;  %v640_v11 = vpop.f32.mrb[2].mxu1 }
 0x13d   : > { %v4850_v12 = vadd.f32 %v567_v10, %v479_v5  ;;  %v569_v13 = vpop.f32.mrb[3].mxu0  ;;  %v4853_v14 = vadd.f32 %v640_v11, %v4836_v1  ;;  %v642_v15 = vpop.f32.mrb[3].mxu1 }
 0x13e   : > { %v4855_v16 = vadd.f32 %v569_v13, %v483_v8  ;;  %v4858_v25 = vadd.f32 %v642_v15, %v4844_v4 }
 0x142   : > { %v573_v26 = vpop.f32.mrb[4].mxu0  ;;  %v646_v28 = vpop.f32.mrb[4].mxu1 }
 0x143   : > { %v4860_v35 = vadd.f32 %v573_v26, %v479_v5  ;;  %v575_v36 = vpop.f32.mrb[5].mxu0  ;;  %v4863_v40 = vadd.f32 %v646_v28, %v4836_v1  ;;  %v648_v47 = vpop.f32.mrb[5].mxu1 }
 0x144   : > { %v4865_v48 = vadd.f32 %v575_v36, %v483_v8  ;;  %v577_v52 = vpop.f32.mrb[6].mxu0  ;;  %v4868_v58 = vadd.f32 %v648_v47, %v4844_v4  ;;  %v650_v63 = vpop.f32.mrb[6].mxu1 }
 0x145   : > { %v4870_v10 = vadd.f32 %v577_v52, %v479_v5  ;;  %v579_v11 = vpop.f32.mrb[7].mxu0  ;;  %v4873_v13 = vadd.f32 %v650_v63, %v4836_v1  ;;  %v652_v15 = vpop.f32.mrb[7].mxu1 }
 0x146   : > { %6025 = vst [vmem:[#allocation13_spill] sm:$0xff] %v4868_v58  ;;  %v4875_v26 = vadd.f32 %v579_v11, %v483_v8  ;;  %v4878_v28 = vadd.f32 %v652_v15, %v4844_v4 }
 0x147   : > { %6026 = vst [vmem:[#allocation14_spill] sm:$0xff] %v4870_v10  ;;  %6027 = vst [vmem:[#allocation15_spill] sm:$0xff] %v4873_v13 }
 0x148   : > { %6028 = vst [vmem:[#allocation16_spill] sm:$0xff] %v4875_v26  ;;  %6029 = vst [vmem:[#allocation17_spill] sm:$0xff] %v4878_v28 }
 0x14a   : > { %v583_v61 = vpop.f32.mrb[8].mxu0  ;;  %v656_v36 = vpop.f32.mrb[8].mxu1 }
 0x14b   : > { %v4880_v0 = vadd.f32 %v583_v61, %v479_v5  ;;  %v585_v60 = vpop.f32.mrb[9].mxu0  ;;  %v4883_v47 = vadd.f32 %v656_v36, %v4836_v1  ;;  %v658_v52 = vpop.f32.mrb[9].mxu1 }
 0x14c   : > { %v4885_v62 = vadd.f32 %v585_v60, %v483_v8  ;;  %v587_v9 = vpop.f32.mrb[10].mxu0  ;;  %v4888_v63 = vadd.f32 %v658_v52, %v4844_v4  ;;  %v660_v11 = vpop.f32.mrb[10].mxu1 }
 0x14d   : > { %6030 = vst [vmem:[#allocation18_spill] sm:$0xff] %v4880_v0  ;;  %6031 = vst [vmem:[#allocation19_spill] sm:$0xff] %v4883_v47  ;;  %v4890_v59 = vadd.f32 %v587_v9, %v479_v5  ;;  %v589_v15 = vpop.f32.mrb[11].mxu0  ;;  %v4893_v28 = vadd.f32 %v660_v11, %v4836_v1  ;;  %v662_v61 = vpop.f32.mrb[11].mxu1 }
 0x14e   : > { %6032 = vst [vmem:[#allocation20_spill] sm:$0xff] %v4885_v62  ;;  %6033 = vst [vmem:[#allocation21_spill] sm:$0xff] %v4888_v63  ;;  %v4895_v0 = vadd.f32 %v589_v15, %v483_v8  ;;  %v4898_v36 = vadd.f32 %v662_v61, %v4844_v4 }
 0x14f   : > { %6034 = vst [vmem:[#allocation22_spill] sm:$0xff] %v4890_v59  ;;  %6035 = vst [vmem:[#allocation23_spill] sm:$0xff] %v4893_v28 }
 0x150   : > { %6036 = vst [vmem:[#allocation24_spill] sm:$0xff] %v4895_v0  ;;  %6037 = vst [vmem:[#allocation25_spill] sm:$0xff] %v4898_v36 }
 0x152   : > { %v593_v47 = vpop.f32.mrb[12].mxu0  ;;  %v666_v60 = vpop.f32.mrb[12].mxu1 }
 0x153   : > { %v4900_v62 = vadd.f32 %v593_v47, %v479_v5  ;;  %v595_v26 = vpop.f32.mrb[13].mxu0  ;;  %v4903_v52 = vadd.f32 %v666_v60, %v4836_v1  ;;  %v668_v9 = vpop.f32.mrb[13].mxu1 }
 0x154   : > { %v4905_v59 = vadd.f32 %v595_v26, %v483_v8  ;;  %v597_v63 = vpop.f32.mrb[14].mxu0  ;;  %v4908_v11 = vadd.f32 %v668_v9, %v4844_v4  ;;  %v670_v15 = vpop.f32.mrb[14].mxu1  ;;  %v564_v26 = vadd.f32 %v4838_v2, %v479_v5  ;;  %v637_v9 = vadd.f32 %v4840_v3, %v4836_v1 }
 0x155   : > { %6038 = vst [vmem:[#allocation26_spill] sm:$0xff] %v4900_v62  ;;  %6039 = vst [vmem:[#allocation27_spill] sm:$0xff] %v4903_v52  ;;  %v4910_v0 = vadd.f32 %v597_v63, %v479_v5  ;;  %v599_v61 = vpop.f32.mrb[15].mxu0  ;;  %v4913_v36 = vadd.f32 %v670_v15, %v4836_v1  ;;  %v672_v47 = vpop.f32.mrb[15].mxu1  ;;  %v639_v63 = vadd.f32 %v638_v7, %v4844_v4 }
 0x156   : > { %6040 = vst [vmem:[#allocation28_spill] sm:$0xff] %v4905_v59  ;;  %6041 = vst [vmem:[#allocation29_spill] sm:$0xff] %v4908_v11  ;;  %v4915_v62 = vadd.f32 %v599_v61, %v483_v8  ;;  %v4918_v60 = vadd.f32 %v672_v47, %v4844_v4  ;;  %v566_v59 = vadd.f32 %v565_v6, %v483_v8 }
 0x157   : > { %6042 = vst [vmem:[#allocation30_spill] sm:$0xff] %v4910_v0  ;;  %6043 = vst [vmem:[#allocation31_spill] sm:$0xff] %v4913_v36 }
 0x158   : > { %6044 = vst [vmem:[#allocation32_spill] sm:$0xff] %v4915_v62  ;;  %6045 = vst [vmem:[#allocation33_spill] sm:$0xff] %v4918_v60 }
 0x15a   : > { %v908_v11 = vpop.f32.mrb[16].mxu0 }
 0x15b   : > { %v956_v0 = vadd.f32 %v908_v11, %v564_v26  ;;  %v949_v52 = vpop.f32.mrb[16].mxu1  ;;  %v910_v28 = vpop.f32.mrb[17].mxu0 }
 0x15c   : > { %v958_v15 = vadd.f32 %v949_v52, %v637_v9  ;;  %v957_v36 = vadd.f32 %v910_v28, %v566_v59  ;;  %v951_v13 = vpop.f32.mrb[17].mxu1  ;;  %v912_v61 = vpop.f32.mrb[18].mxu0 }
 0x15d   : > { %v3605_v62 = vmul.f32 -1.442695, %v956_v0  ;;  %v959_v10 = vadd.f32 %v951_v13, %v639_v63  ;;  %v913_v47 = vpop.f32.mrb[19].mxu0  ;;  %v953_v60 = vpop.f32.mrb[18].mxu1 }
 0x15e   : > { %v3606_v58 = vmul.f32 -1.442695, %v957_v36  ;;  %v954_v2 = vpop.f32.mrb[19].mxu1  ;;  %v3607_v5 = vmul.f32 -1.442695, %v958_v15  ;;  %v6046_v60 = vmov 0  }
 0x15f   : > { %3966 = vpow2.f32 %v3605_v62 }
 0x160   : > { %3968 = vpow2.f32 %v3606_v58 }
 0x161   : > { %3970 = vpow2.f32 %v3607_v5 }
 0x162   : > { %3972 = vtanh.f32 %v959_v10 }
 0x169   : > { %v3967_v1 = vpop.eup %3966 }
 0x16a   : > { %v969_v3 = vadd.f32 1.0, %v3967_v1  ;;  %v3969_v4 = vpop.eup %3968 }
 0x16b   : > { %v970_v6 = vadd.f32 1.0, %v3969_v4  ;;  %v3971_v59 = vpop.eup %3970 }
 0x16c   : > { %3974 = vrcp.f32 %v969_v3  ;;  %v3973_v7 = vpop.eup %3972  ;;  %v971_v28 = vadd.f32 1.0, %v3971_v59 }
 0x16d   : > { %3976 = vrcp.f32 %v970_v6 }
 0x16e   : > { %3978 = vrcp.f32 %v971_v28 }
 0x176   : > { %v3975_v8 = vpop.eup %3974 }
 0x177   : > { %v980_v0 = vmul.f32 %v3975_v8, %v3973_v7  ;;  %v3977_v13 = vpop.eup %3976 }
 0x178   : > { %v979_v52 = vmul.f32 0.0, %v3977_v13  ;;  %v3979_v62 = vpop.eup %3978 }
 0x17a   : > { %v4924_v36 = vadd.f32 %v980_v0, %v979_v52 }
 0x17c   : > { %3980 = vtanh.f32 %v4924_v36 }
 0x186   : > { %v3981_v58 = vpop.eup %3980 }
 0x187   : > { %v4927_v11 = vmul.f32 %v3981_v58, %v3979_v62 }
 0x189   : > { %v985_v10 = vpack.c.bf16 %v4927_v11, %v4927_v11 }
 0x18b   : > { %1026 = vmatmul.mubr.bf16.vlgmr.msra.gmra.mrb[20].mxu0 %v985_v10  ;;  %1067 = vmatmul.mubr.bf16.vlgmr.msra.gmra.mrb[20].mxu1 %v985_v10 }
 0x18c   : > { %1114 = vmatpush1.bf16.msra.mxu0 %v4586_v19  ;;  %1155 = vmatpush1.bf16.msra.mxu1 %v4591_v20 }
 0x18d   : > { %1115 = vmatprep.subr.bf16.mxu0 %v4597_v21  ;;  %1156 = vmatprep.subr.bf16.mxu1 %v4604_v22 }
 0x18e   : > { %1145 = vmatprep.mubr.bf16.mxu0 %v6046_v60  ;;  %1186 = vmatprep.mubr.bf16.mxu1 %v6046_v60 }
 0x190   : > { %1116 = vmatpush1.bf16.msra.mxu0 %v4611_v23  ;;  %1157 = vmatpush1.bf16.msra.mxu1 %v4616_v24 }
 0x191   : > { %1117 = vmatprep.subr.bf16.mxu0 %v4627_v27  ;;  %1158 = vmatprep.subr.bf16.mxu1 %v4633_v29 }
 0x194   : > { %1118 = vmatpush1.bf16.msra.mxu0 %v4638_v30  ;;  %1159 = vmatpush1.bf16.msra.mxu1 %v4644_v31 }
 0x195   : > { %1119 = vmatprep.subr.bf16.mxu0 %v4651_v32  ;;  %1160 = vmatprep.subr.bf16.mxu1 %v4657_v33 }
 0x198   : > { %1120 = vmatpush1.bf16.msra.mxu0 %v4662_v34  ;;  %1161 = vmatpush1.bf16.msra.mxu1 %v4675_v37 }
 0x199   : > { %1121 = vmatprep.subr.bf16.mxu0 %v4680_v38  ;;  %1162 = vmatprep.subr.bf16.mxu1 %v4687_v39 }
 0x19c   : > { %1122 = vmatpush1.bf16.msra.mxu0 %v4693_v41  ;;  %1163 = vmatpush1.bf16.msra.mxu1 %v4698_v42 }
 0x19d   : > { %1123 = vmatprep.subr.bf16.mxu0 %v4705_v43  ;;  %1164 = vmatprep.subr.bf16.mxu1 %v4711_v44 }
 0x1a0   : > { %1124 = vmatpush1.bf16.msra.mxu0 %v4718_v45  ;;  %1165 = vmatpush1.bf16.msra.mxu1 %v4723_v46 }
 0x1a1   : > { %1125 = vmatprep.subr.bf16.mxu0 %v4734_v49  ;;  %1166 = vmatprep.subr.bf16.mxu1 %v4741_v50 }
 0x1a4   : > { %1126 = vmatpush1.bf16.msra.mxu0 %v4746_v51  ;;  %1167 = vmatpush1.bf16.msra.mxu1 %v4751_v53 }
 0x1a5   : > { %1127 = vmatprep.subr.bf16.mxu0 %v4756_v54  ;;  %1168 = vmatprep.subr.bf16.mxu1 %v4762_v55 }
 0x1a8   : > { %1128 = vmatpush1.bf16.msra.mxu0 %v4770_v56  ;;  %1169 = vmatpush1.bf16.msra.mxu1 %v4777_v57 }
 0x1a9   : > { %1233 = vmatprep.subr.bf16.mxu0 %v4576_v17  ;;  %1274 = vmatprep.subr.bf16.mxu1 %v4581_v18 }
 0x25e   : > { %v1027_v26 = vpop.f32.mrb[20].mxu0  ;;  %v1068_v9 = vpop.f32.mrb[20].mxu1 }
 0x25f   : > { %v1075_v63 = vadd.f32 %v1027_v26, %v4850_v12  ;;  %v1077_v15 = vadd.f32 %v1068_v9, %v4853_v14  ;;  %v1029_v61 = vpop.f32.mrb[21].mxu0  ;;  %v1070_v47 = vpop.f32.mrb[21].mxu1 }
 0x260   : > { %v1076_v2 = vadd.f32 %v1029_v61, %v4855_v16  ;;  %v1078_v5 = vadd.f32 %v1070_v47, %v4858_v25  ;;  %v1031_v1 = vpop.f32.mrb[22].mxu0  ;;  %v1072_v3 = vpop.f32.mrb[22].mxu1 }
 0x261   : > { %v3608_v4 = vmul.f32 -1.442695, %v1075_v63  ;;  %v1032_v6 = vpop.f32.mrb[23].mxu0  ;;  %v1073_v59 = vpop.f32.mrb[23].mxu1  ;;  %v3610_v8 = vmul.f32 -1.442695, %v1077_v15 }
 0x262   : > { %v3609_v7 = vmul.f32 -1.442695, %v1076_v2  ;;  %v6047_v6 = vld [vmem:[#allocation13_spill] sm:$0xff] }
 0x263   : > { %3982 = vpow2.f32 %v3608_v4 }
 0x264   : > { %3984 = vpow2.f32 %v3609_v7 }
 0x265   : > { %3986 = vtanh.f32 %v1078_v5 }
 0x266   : > { %3988 = vpow2.f32 %v3610_v8 }
 0x26d   : > { %v3983_v0 = vpop.eup %3982 }
 0x26e   : > { %v1088_v13 = vadd.f32 1.0, %v3983_v0  ;;  %v3985_v12 = vpop.eup %3984 }
 0x26f   : > { %v1089_v14 = vadd.f32 1.0, %v3985_v12  ;;  %v3987_v16 = vpop.eup %3986 }
 0x270   : > { %3990 = vrcp.f32 %v1088_v13  ;;  %v3989_v28 = vpop.eup %3988 }
 0x271   : > { %3992 = vrcp.f32 %v1089_v14  ;;  %v1090_v58 = vadd.f32 1.0, %v3989_v28 }
 0x273   : > { %3994 = vrcp.f32 %v1090_v58 }
 0x27a   : > { %v3991_v25 = vpop.eup %3990 }
 0x27b   : > { %v1099_v52 = vmul.f32 %v3991_v25, %v3987_v16  ;;  %v3993_v62 = vpop.eup %3992 }
 0x27c   : > { %v1098_v10 = vmul.f32 %v3993_v62, %v4924_v36 }
 0x27d   : > { %v3995_v9 = vpop.eup %3994 }
 0x27e   : > { %v4970_v26 = vadd.f32 %v1099_v52, %v1098_v10 }
 0x280   : > { %3996 = vtanh.f32 %v4970_v26 }
 0x28a   : > { %v3997_v63 = vpop.eup %3996 }
 0x28b   : > { %v4973_v15 = vmul.f32 %v3997_v63, %v3995_v9 }
 0x28d   : > { %v1105_v61 = vpack.c.bf16 %v4973_v15, %v4973_v15 }
 0x28f   : > { %1146 = vmatmul.mubr.bf16.vlgmr.msra.gmra.mrb[24].mxu0 %v1105_v61  ;;  %1187 = vmatmul.mubr.bf16.vlgmr.msra.gmra.mrb[24].mxu1 %v1105_v61 }
 0x290   : > { %1234 = vmatpush1.bf16.msra.mxu0 %v4586_v19  ;;  %1275 = vmatpush1.bf16.msra.mxu1 %v4591_v20 }
 0x291   : > { %1235 = vmatprep.subr.bf16.mxu0 %v4597_v21  ;;  %1276 = vmatprep.subr.bf16.mxu1 %v4604_v22 }
 0x292   : > { %1265 = vmatprep.mubr.bf16.mxu0 %v6046_v60  ;;  %1306 = vmatprep.mubr.bf16.mxu1 %v6046_v60 }
 0x294   : > { %1236 = vmatpush1.bf16.msra.mxu0 %v4611_v23  ;;  %1277 = vmatpush1.bf16.msra.mxu1 %v4616_v24 }
 0x295   : > { %1237 = vmatprep.subr.bf16.mxu0 %v4627_v27  ;;  %1278 = vmatprep.subr.bf16.mxu1 %v4633_v29 }
 0x298   : > { %1238 = vmatpush1.bf16.msra.mxu0 %v4638_v30  ;;  %1279 = vmatpush1.bf16.msra.mxu1 %v4644_v31 }
 0x299   : > { %1239 = vmatprep.subr.bf16.mxu0 %v4651_v32  ;;  %1280 = vmatprep.subr.bf16.mxu1 %v4657_v33 }
 0x29c   : > { %1240 = vmatpush1.bf16.msra.mxu0 %v4662_v34  ;;  %1281 = vmatpush1.bf16.msra.mxu1 %v4675_v37 }
 0x29d   : > { %1241 = vmatprep.subr.bf16.mxu0 %v4680_v38  ;;  %1282 = vmatprep.subr.bf16.mxu1 %v4687_v39 }
 0x2a0   : > { %1242 = vmatpush1.bf16.msra.mxu0 %v4693_v41  ;;  %1283 = vmatpush1.bf16.msra.mxu1 %v4698_v42 }
 0x2a1   : > { %1243 = vmatprep.subr.bf16.mxu0 %v4705_v43  ;;  %1284 = vmatprep.subr.bf16.mxu1 %v4711_v44 }
 0x2a4   : > { %1244 = vmatpush1.bf16.msra.mxu0 %v4718_v45  ;;  %1285 = vmatpush1.bf16.msra.mxu1 %v4723_v46 }
 0x2a5   : > { %1245 = vmatprep.subr.bf16.mxu0 %v4734_v49  ;;  %1286 = vmatprep.subr.bf16.mxu1 %v4741_v50 }
 0x2a8   : > { %1246 = vmatpush1.bf16.msra.mxu0 %v4746_v51  ;;  %1287 = vmatpush1.bf16.msra.mxu1 %v4751_v53 }
 0x2a9   : > { %1247 = vmatprep.subr.bf16.mxu0 %v4756_v54  ;;  %1288 = vmatprep.subr.bf16.mxu1 %v4762_v55 }
 0x2ac   : > { %1248 = vmatpush1.bf16.msra.mxu0 %v4770_v56  ;;  %1289 = vmatpush1.bf16.msra.mxu1 %v4777_v57 }
 0x2ad   : > { %1353 = vmatprep.subr.bf16.mxu0 %v4576_v17  ;;  %1394 = vmatprep.subr.bf16.mxu1 %v4581_v18 }
 0x362   : > { %v1147_v36 = vpop.f32.mrb[24].mxu0  ;;  %v1188_v47 = vpop.f32.mrb[24].mxu1 }
 0x363   : > { %v1195_v2 = vadd.f32 %v1147_v36, %v4860_v35  ;;  %v1197_v5 = vadd.f32 %v1188_v47, %v4863_v40  ;;  %v1149_v1 = vpop.f32.mrb[25].mxu0  ;;  %v1190_v3 = vpop.f32.mrb[25].mxu1 }
 0x364   : > { %v1196_v4 = vadd.f32 %v1149_v1, %v4865_v48  ;;  %v1198_v59 = vadd.f32 %v1190_v3, %v6047_v6  ;;  %v1151_v7 = vpop.f32.mrb[26].mxu0  ;;  %v1192_v8 = vpop.f32.mrb[26].mxu1 }
 0x365   : > { %v3611_v0 = vmul.f32 -1.442695, %v1195_v2  ;;  %v1152_v13 = vpop.f32.mrb[27].mxu0  ;;  %v1193_v12 = vpop.f32.mrb[27].mxu1  ;;  %v3613_v18 = vmul.f32 -1.442695, %v1197_v5 }
 0x366   : > { %v3612_v17 = vmul.f32 -1.442695, %v1196_v4 }
 0x367   : > { %3998 = vpow2.f32 %v3611_v0 }
 0x368   : > { %4000 = vpow2.f32 %v3612_v17 }
 0x369   : > { %4002 = vtanh.f32 %v1198_v59 }
 0x36a   : > { %4004 = vpow2.f32 %v3613_v18 }
 0x371   : > { %v3999_v14 = vpop.eup %3998 }
 0x372   : > { %v1208_v16 = vadd.f32 1.0, %v3999_v14  ;;  %v4001_v35 = vpop.eup %4000  ;;  %v5082_v14 = vld [vmem:[%s5997_s2] ss:$16 sps:$4 sm:$0xff]  }
 0x373   : > { %v1209_v40 = vadd.f32 1.0, %v4001_v35  ;;  %v4003_v48 = vpop.eup %4002  ;;  %v5094_v35 = vld [vmem:[%s5997_s2 + $0x24] ss:$16 sps:$4 sm:$0xff]  }
 0x374   : > { %4006 = vrcp.f32 %v1208_v16  ;;  %v4005_v28 = vpop.eup %4004  ;;  %v5088_v16 = vld [vmem:[%s5997_s2 + $0x8] ss:$16 sps:$4 sm:$0xff]  }
 0x375   : > { %4008 = vrcp.f32 %v1209_v40  ;;  %v1210_v58 = vadd.f32 1.0, %v4005_v28  ;;  %v5100_v40 = vld [vmem:[%s5997_s2 + $0x2c] ss:$16 sps:$4 sm:$0xff]   ;;  %v5114_v28 = vld [vmem:[%s5997_s2 + $0x28] ss:$16 sps:$4 sm:$0xff]  }
 0x377   : > { %4010 = vrcp.f32 %v1210_v58  ;;  %v5138_v58 = vld [vmem:[%s5997_s2 + $0x48] ss:$16 sps:$4 sm:$0xff]  }
 0x37e   : > { %v4007_v25 = vpop.eup %4006 }
 0x37f   : > { %v1219_v52 = vmul.f32 %v4007_v25, %v4003_v48  ;;  %v4009_v62 = vpop.eup %4008  ;;  %v5108_v48 = vld [vmem:[%s5997_s2 + $0x20] ss:$16 sps:$4 sm:$0xff]   ;;  %v5120_v25 = vld [vmem:[%s5997_s2 + $0x44] ss:$16 sps:$4 sm:$0xff]  }
 0x380   : > { %v1218_v10 = vmul.f32 %v4009_v62, %v4970_v26  ;;  %v5132_v62 = vld [vmem:[%s5997_s2 + $0x40] ss:$16 sps:$4 sm:$0xff]  }
 0x381   : > { %v4011_v63 = vpop.eup %4010 }
 0x382   : > { %v5016_v9 = vadd.f32 %v1219_v52, %v1218_v10  ;;  %v5126_v52 = vld [vmem:[%s5997_s2 + $0x4c] ss:$16 sps:$4 sm:$0xff]   ;;  %v5144_v10 = vld [vmem:[%s5997_s2 + $0x64] ss:$16 sps:$4 sm:$0xff]  }
 0x384   : > { %4012 = vtanh.f32 %v5016_v9 }
 0x38e   : > { %v4013_v61 = vpop.eup %4012 }
 0x38f   : > { %v5019_v36 = vmul.f32 %v4013_v61, %v4011_v63  ;;  %v5156_v63 = vld [vmem:[%s5997_s2 + $0x60] ss:$16 sps:$4 sm:$0xff]   ;;  %v5162_v61 = vld [vmem:[%s5997_s2 + $0x68] ss:$16 sps:$4 sm:$0xff]  }
 0x391   : > { %v1225_v47 = vpack.c.bf16 %v5019_v36, %v5019_v36 }
 0x393   : > { %1266 = vmatmul.mubr.bf16.vlgmr.msra.gmra.mrb[28].mxu0 %v1225_v47  ;;  %1307 = vmatmul.mubr.bf16.vlgmr.msra.gmra.mrb[28].mxu1 %v1225_v47  ;;  %v5168_v47 = vld [vmem:[%s5997_s2 + $0x84] ss:$16 sps:$4 sm:$0xff]  }
 0x394   : > { %1354 = vmatpush1.bf16.msra.mxu0 %v4586_v19  ;;  %1395 = vmatpush1.bf16.msra.mxu1 %v4591_v20  ;;  %v5058_v19 = vld [vmem:[%s5997_s2 + $0x4] ss:$16 sps:$4 sm:$0xff]   ;;  %v5064_v20 = vld [vmem:[%s5997_s2 + $0xc] ss:$16 sps:$4 sm:$0xff]  }
 0x395   : > { %1355 = vmatprep.subr.bf16.mxu0 %v4597_v21  ;;  %1396 = vmatprep.subr.bf16.mxu1 %v4604_v22 }
 0x396   : > { %1385 = vmatprep.mubr.bf16.mxu0 %v6046_v60  ;;  %1426 = vmatprep.mubr.bf16.mxu1 %v6046_v60 }
 0x398   : > { %1356 = vmatpush1.bf16.msra.mxu0 %v4611_v23  ;;  %1397 = vmatpush1.bf16.msra.mxu1 %v4616_v24  ;;  %v6048_v23 = vld [vmem:[#allocation14_spill] sm:$0xff] }
 0x399   : > { %1357 = vmatprep.subr.bf16.mxu0 %v4627_v27  ;;  %1398 = vmatprep.subr.bf16.mxu1 %v4633_v29  ;;  %v6049_v27 = vld [vmem:[#allocation15_spill] sm:$0xff] }
 0x39c   : > { %1358 = vmatpush1.bf16.msra.mxu0 %v4638_v30  ;;  %1399 = vmatpush1.bf16.msra.mxu1 %v4644_v31 }
 0x39d   : > { %1359 = vmatprep.subr.bf16.mxu0 %v4651_v32  ;;  %1400 = vmatprep.subr.bf16.mxu1 %v4657_v33  ;;  %v6050_v32 = vld [vmem:[#allocation16_spill] sm:$0xff] }
 0x3a0   : > { %1360 = vmatpush1.bf16.msra.mxu0 %v4662_v34  ;;  %1401 = vmatpush1.bf16.msra.mxu1 %v4675_v37  ;;  %v6051_v34 = vld [vmem:[#allocation17_spill] sm:$0xff] }
 0x3a1   : > { %1361 = vmatprep.subr.bf16.mxu0 %v4680_v38  ;;  %1402 = vmatprep.subr.bf16.mxu1 %v4687_v39 }
 0x3a4   : > { %1362 = vmatpush1.bf16.msra.mxu0 %v4693_v41  ;;  %1403 = vmatpush1.bf16.msra.mxu1 %v4698_v42 }
 0x3a5   : > { %1363 = vmatprep.subr.bf16.mxu0 %v4705_v43  ;;  %1404 = vmatprep.subr.bf16.mxu1 %v4711_v44 }
 0x3a8   : > { %1364 = vmatpush1.bf16.msra.mxu0 %v4718_v45  ;;  %1405 = vmatpush1.bf16.msra.mxu1 %v4723_v46 }
 0x3a9   : > { %1365 = vmatprep.subr.bf16.mxu0 %v4734_v49  ;;  %1406 = vmatprep.subr.bf16.mxu1 %v4741_v50 }
 0x3ac   : > { %1366 = vmatpush1.bf16.msra.mxu0 %v4746_v51  ;;  %1407 = vmatpush1.bf16.msra.mxu1 %v4751_v53 }
 0x3ad   : > { %1367 = vmatprep.subr.bf16.mxu0 %v4756_v54  ;;  %1408 = vmatprep.subr.bf16.mxu1 %v4762_v55 }
 0x3b0   : > { %1368 = vmatpush1.bf16.msra.mxu0 %v4770_v56  ;;  %1409 = vmatpush1.bf16.msra.mxu1 %v4777_v57 }
 0x3b1   : > { %1473 = vmatprep.subr.bf16.mxu0 %v5058_v19  ;;  %1514 = vmatprep.subr.bf16.mxu1 %v5064_v20 }
 0x466   : > { %v1267_v21 = vpop.f32.mrb[28].mxu0  ;;  %v1308_v22 = vpop.f32.mrb[28].mxu1 }
 0x467   : > { %v1315_v24 = vadd.f32 %v1267_v21, %v6048_v23  ;;  %v1317_v29 = vadd.f32 %v1308_v22, %v6049_v27  ;;  %v1269_v30 = vpop.f32.mrb[29].mxu0  ;;  %v1310_v31 = vpop.f32.mrb[29].mxu1  ;;  %v5174_v21 = vld [vmem:[%s5997_s2 + $0x8c] ss:$16 sps:$4 sm:$0xff]   ;;  %v5180_v22 = vld [vmem:[%s5997_s2 + $0x80] ss:$16 sps:$4 sm:$0xff]  }
 0x468   : > { %v1316_v33 = vadd.f32 %v1269_v30, %v6050_v32  ;;  %v1318_v37 = vadd.f32 %v1310_v31, %v6051_v34  ;;  %v1271_v38 = vpop.f32.mrb[30].mxu0  ;;  %v1312_v39 = vpop.f32.mrb[30].mxu1  ;;  %v5186_v23 = vld [vmem:[%s5997_s2 + $0x88] ss:$16 sps:$4 sm:$0xff]   ;;  %v5198_v27 = vld [vmem:[%s5997_s2 + $0xac] ss:$16 sps:$4 sm:$0xff]  }
 0x469   : > { %v3614_v41 = vmul.f32 -1.442695, %v1315_v24  ;;  %v1272_v42 = vpop.f32.mrb[31].mxu0  ;;  %v1313_v43 = vpop.f32.mrb[31].mxu1  ;;  %v3616_v45 = vmul.f32 -1.442695, %v1317_v29 }
 0x46a   : > { %v3615_v44 = vmul.f32 -1.442695, %v1316_v33  ;;  %v5192_v24 = vld [vmem:[%s5997_s2 + $0xa4] ss:$16 sps:$4 sm:$0xff]   ;;  %v5204_v29 = vld [vmem:[%s5997_s2 + $0xa0] ss:$16 sps:$4 sm:$0xff]  }
 0x46b   : > { %4014 = vpow2.f32 %v3614_v41  ;;  %v5210_v30 = vld [vmem:[%s5997_s2 + $0xa8] ss:$16 sps:$4 sm:$0xff]  }
 0x46c   : > { %4016 = vpow2.f32 %v3615_v44  ;;  %v6052_v32 = vld [vmem:[#allocation18_spill] sm:$0xff]  ;;  %v6053_v33 = vld [vmem:[#allocation19_spill] sm:$0xff]  ;;  %v6055_v38 = vld [vmem:[#allocation21_spill] sm:$0xff] }
 0x46d   : > { %4018 = vtanh.f32 %v1318_v37  ;;  %v6054_v37 = vld [vmem:[#allocation20_spill] sm:$0xff] }
 0x46e   : > { %4020 = vpow2.f32 %v3616_v45 }
 0x475   : > { %v4015_v46 = vpop.eup %4014 }
 0x476   : > { %v1328_v26 = vadd.f32 1.0, %v4015_v46  ;;  %v4017_v2 = vpop.eup %4016 }
 0x477   : > { %v1329_v5 = vadd.f32 1.0, %v4017_v2  ;;  %v4019_v1 = vpop.eup %4018 }
 0x478   : > { %4022 = vrcp.f32 %v1328_v26  ;;  %v4021_v3 = vpop.eup %4020 }
 0x479   : > { %4024 = vrcp.f32 %v1329_v5  ;;  %v1330_v7 = vadd.f32 1.0, %v4021_v3 }
 0x47b   : > { %4026 = vrcp.f32 %v1330_v7 }
 0x482   : > { %v4023_v4 = vpop.eup %4022 }
 0x483   : > { %v1339_v6 = vmul.f32 %v4023_v4, %v4019_v1  ;;  %v4025_v59 = vpop.eup %4024 }
 0x484   : > { %v1338_v8 = vmul.f32 %v4025_v59, %v5016_v9  ;;  %v5150_v9 = vld [vmem:[%s5997_s2 + $0x6c] ss:$16 sps:$4 sm:$0xff]  }
 0x485   : > { %v4027_v13 = vpop.eup %4026 }
 0x486   : > { %v5072_v0 = vadd.f32 %v1339_v6, %v1338_v8 }
 0x488   : > { %4028 = vtanh.f32 %v5072_v0 }
 0x492   : > { %v4029_v12 = vpop.eup %4028 }
 0x493   : > { %v5075_v17 = vmul.f32 %v4029_v12, %v4027_v13 }
 0x495   : > { %v1345_v18 = vpack.c.bf16 %v5075_v17, %v5075_v17 }
 0x497   : > { %1386 = vmatmul.mubr.bf16.vlgmr.msra.gmra.mrb[32].mxu0 %v1345_v18  ;;  %1427 = vmatmul.mubr.bf16.vlgmr.msra.gmra.mrb[32].mxu1 %v1345_v18 }
 0x498   : > { %1474 = vmatpush1.bf16.msra.mxu0 %v5082_v14  ;;  %1515 = vmatpush1.bf16.msra.mxu1 %v5088_v16 }
 0x499   : > { %1475 = vmatprep.subr.bf16.mxu0 %v5094_v35  ;;  %1516 = vmatprep.subr.bf16.mxu1 %v5100_v40 }
 0x49a   : > { %1505 = vmatprep.mubr.bf16.mxu0 %v6046_v60  ;;  %1546 = vmatprep.mubr.bf16.mxu1 %v6046_v60 }
 0x49c   : > { %1476 = vmatpush1.bf16.msra.mxu0 %v5108_v48  ;;  %1517 = vmatpush1.bf16.msra.mxu1 %v5114_v28 }
 0x49d   : > { %1477 = vmatprep.subr.bf16.mxu0 %v5120_v25  ;;  %1518 = vmatprep.subr.bf16.mxu1 %v5126_v52 }
 0x4a0   : > { %1478 = vmatpush1.bf16.msra.mxu0 %v5132_v62  ;;  %1519 = vmatpush1.bf16.msra.mxu1 %v5138_v58 }
 0x4a1   : > { %1479 = vmatprep.subr.bf16.mxu0 %v5144_v10  ;;  %1520 = vmatprep.subr.bf16.mxu1 %v5150_v9 }
 0x4a4   : > { %1480 = vmatpush1.bf16.msra.mxu0 %v5156_v63  ;;  %1521 = vmatpush1.bf16.msra.mxu1 %v5162_v61 }
 0x4a5   : > { %1481 = vmatprep.subr.bf16.mxu0 %v5168_v47  ;;  %1522 = vmatprep.subr.bf16.mxu1 %v5174_v21 }
 0x4a8   : > { %1482 = vmatpush1.bf16.msra.mxu0 %v5180_v22  ;;  %1523 = vmatpush1.bf16.msra.mxu1 %v5186_v23 }
 0x4a9   : > { %1483 = vmatprep.subr.bf16.mxu0 %v5192_v24  ;;  %1524 = vmatprep.subr.bf16.mxu1 %v5198_v27 }
 0x4ac   : > { %1484 = vmatpush1.bf16.msra.mxu0 %v5204_v29  ;;  %1525 = vmatpush1.bf16.msra.mxu1 %v5210_v30 }
 0x4ad   : > { %1485 = vmatprep.subr.bf16.mxu0 %v4734_v49  ;;  %1526 = vmatprep.subr.bf16.mxu1 %v4741_v50 }
 0x4b0   : > { %1486 = vmatpush1.bf16.msra.mxu0 %v4746_v51  ;;  %1527 = vmatpush1.bf16.msra.mxu1 %v4751_v53 }
 0x4b1   : > { %1487 = vmatprep.subr.bf16.mxu0 %v4756_v54  ;;  %1528 = vmatprep.subr.bf16.mxu1 %v4762_v55 }
 0x4b4   : > { %1488 = vmatpush1.bf16.msra.mxu0 %v4770_v56  ;;  %1529 = vmatpush1.bf16.msra.mxu1 %v4777_v57 }
 0x4b5   : > { %1593 = vmatprep.subr.bf16.mxu0 %v5058_v19  ;;  %1634 = vmatprep.subr.bf16.mxu1 %v5064_v20 }
 0x56a   : > { %v1387_v31 = vpop.f32.mrb[32].mxu0  ;;  %v1428_v49 = vpop.f32.mrb[32].mxu1 }
 0x56b   : > { %v1435_v50 = vadd.f32 %v1387_v31, %v6052_v32  ;;  %v1437_v51 = vadd.f32 %v1428_v49, %v6053_v33  ;;  %v1389_v34 = vpop.f32.mrb[33].mxu0  ;;  %v1430_v53 = vpop.f32.mrb[33].mxu1  ;;  %v5268_v49 = vld [vmem:[%s5997_s2 + $0xcc] ss:$16 sps:$4 sm:$0xff]   ;;  %v5274_v32 = vld [vmem:[%s5997_s2 + $0xc0] ss:$16 sps:$4 sm:$0xff]  }
 0x56c   : > { %v1436_v54 = vadd.f32 %v1389_v34, %v6054_v37  ;;  %v1438_v55 = vadd.f32 %v1430_v53, %v6055_v38  ;;  %v1391_v39 = vpop.f32.mrb[34].mxu0  ;;  %v1432_v56 = vpop.f32.mrb[34].mxu1  ;;  %v5286_v33 = vld [vmem:[%s5997_s2 + $0xe4] ss:$16 sps:$4 sm:$0xff]   ;;  %v5298_v34 = vld [vmem:[%s5997_s2 + $0xe0] ss:$16 sps:$4 sm:$0xff]  }
 0x56d   : > { %v3617_v41 = vmul.f32 -1.442695, %v1435_v50  ;;  %v1392_v57 = vpop.f32.mrb[35].mxu0  ;;  %v1433_v42 = vpop.f32.mrb[35].mxu1  ;;  %v3619_v44 = vmul.f32 -1.442695, %v1437_v51 }
 0x56e   : > { %v3618_v43 = vmul.f32 -1.442695, %v1436_v54  ;;  %v5280_v50 = vld [vmem:[%s5997_s2 + $0xc8] ss:$16 sps:$4 sm:$0xff]   ;;  %v5292_v51 = vld [vmem:[%s5997_s2 + $0xec] ss:$16 sps:$4 sm:$0xff]  }
 0x56f   : > { %4030 = vpow2.f32 %v3617_v41  ;;  %v5304_v53 = vld [vmem:[%s5997_s2 + $0xe8] ss:$16 sps:$4 sm:$0xff]  }
 0x570   : > { %4032 = vpow2.f32 %v3618_v43  ;;  %v6056_v38 = vld [vmem:[#allocation22_spill] sm:$0xff]  ;;  %v6057_v39 = vld [vmem:[#allocation23_spill] sm:$0xff]  ;;  %v6058_v42 = vld [vmem:[#allocation24_spill] sm:$0xff] }
 0x571   : > { %4034 = vtanh.f32 %v1438_v55 }
 0x572   : > { %4036 = vpow2.f32 %v3619_v44  ;;  %v6059_v44 = vld [vmem:[#allocation25_spill] sm:$0xff] }
 0x579   : > { %v4031_v45 = vpop.eup %4030 }
 0x57a   : > { %v1448_v46 = vadd.f32 1.0, %v4031_v45  ;;  %v4033_v26 = vpop.eup %4032 }
 0x57b   : > { %v1449_v2 = vadd.f32 1.0, %v4033_v26  ;;  %v4035_v5 = vpop.eup %4034 }
 0x57c   : > { %4038 = vrcp.f32 %v1448_v46  ;;  %v4037_v1 = vpop.eup %4036 }
 0x57d   : > { %4040 = vrcp.f32 %v1449_v2  ;;  %v1450_v59 = vadd.f32 1.0, %v4037_v1 }
 0x57f   : > { %4042 = vrcp.f32 %v1450_v59 }
 0x586   : > { %v4039_v3 = vpop.eup %4038 }
 0x587   : > { %v1459_v4 = vmul.f32 %v4039_v3, %v4035_v5  ;;  %v4041_v6 = vpop.eup %4040 }
 0x588   : > { %v1458_v7 = vmul.f32 %v4041_v6, %v5072_v0  ;;  %v5262_v0 = vld [vmem:[%s5997_s2 + $0xc4] ss:$16 sps:$4 sm:$0xff]  }
 0x589   : > { %v4043_v13 = vpop.eup %4042 }
 0x58a   : > { %v5228_v8 = vadd.f32 %v1459_v4, %v1458_v7 }
 0x58c   : > { %4044 = vtanh.f32 %v5228_v8 }
 0x596   : > { %v4045_v12 = vpop.eup %4044 }
 0x597   : > { %v5231_v18 = vmul.f32 %v4045_v12, %v4043_v13 }
 0x599   : > { %v1465_v31 = vpack.c.bf16 %v5231_v18, %v5231_v18 }
 0x59b   : > { %1506 = vmatmul.mubr.bf16.vlgmr.msra.gmra.mrb[36].mxu0 %v1465_v31  ;;  %1547 = vmatmul.mubr.bf16.vlgmr.msra.gmra.mrb[36].mxu1 %v1465_v31 }
 0x59c   : > { %1594 = vmatpush1.bf16.msra.mxu0 %v5082_v14  ;;  %1635 = vmatpush1.bf16.msra.mxu1 %v5088_v16 }
 0x59d   : > { %1595 = vmatprep.subr.bf16.mxu0 %v5094_v35  ;;  %1636 = vmatprep.subr.bf16.mxu1 %v5100_v40 }
 0x59e   : > { %1625 = vmatprep.mubr.bf16.mxu0 %v6046_v60  ;;  %1666 = vmatprep.mubr.bf16.mxu1 %v6046_v60 }
 0x5a0   : > { %1596 = vmatpush1.bf16.msra.mxu0 %v5108_v48  ;;  %1637 = vmatpush1.bf16.msra.mxu1 %v5114_v28 }
 0x5a1   : > { %1597 = vmatprep.subr.bf16.mxu0 %v5120_v25  ;;  %1638 = vmatprep.subr.bf16.mxu1 %v5126_v52 }
 0x5a4   : > { %1598 = vmatpush1.bf16.msra.mxu0 %v5132_v62  ;;  %1639 = vmatpush1.bf16.msra.mxu1 %v5138_v58 }
 0x5a5   : > { %1599 = vmatprep.subr.bf16.mxu0 %v5144_v10  ;;  %1640 = vmatprep.subr.bf16.mxu1 %v5150_v9 }
 0x5a8   : > { %1600 = vmatpush1.bf16.msra.mxu0 %v5156_v63  ;;  %1641 = vmatpush1.bf16.msra.mxu1 %v5162_v61 }
 0x5a9   : > { %1601 = vmatprep.subr.bf16.mxu0 %v5168_v47  ;;  %1642 = vmatprep.subr.bf16.mxu1 %v5174_v21 }
 0x5ac   : > { %1602 = vmatpush1.bf16.msra.mxu0 %v5180_v22  ;;  %1643 = vmatpush1.bf16.msra.mxu1 %v5186_v23 }
 0x5ad   : > { %1603 = vmatprep.subr.bf16.mxu0 %v5192_v24  ;;  %1644 = vmatprep.subr.bf16.mxu1 %v5198_v27 }
 0x5b0   : > { %1604 = vmatpush1.bf16.msra.mxu0 %v5204_v29  ;;  %1645 = vmatpush1.bf16.msra.mxu1 %v5210_v30 }
 0x5b1   : > { %1605 = vmatprep.subr.bf16.mxu0 %v5262_v0  ;;  %1646 = vmatprep.subr.bf16.mxu1 %v5268_v49 }
 0x5b4   : > { %1606 = vmatpush1.bf16.msra.mxu0 %v5274_v32  ;;  %1647 = vmatpush1.bf16.msra.mxu1 %v5280_v50 }
 0x5b5   : > { %1607 = vmatprep.subr.bf16.mxu0 %v5286_v33  ;;  %1648 = vmatprep.subr.bf16.mxu1 %v5292_v51 }
 0x5b8   : > { %1608 = vmatpush1.bf16.msra.mxu0 %v5298_v34  ;;  %1649 = vmatpush1.bf16.msra.mxu1 %v5304_v53 }
 0x5b9   : > { %1713 = vmatprep.subr.bf16.mxu0 %v5058_v19  ;;  %1754 = vmatprep.subr.bf16.mxu1 %v5064_v20 }
 0x66e   : > { %v1507_v37 = vpop.f32.mrb[36].mxu0  ;;  %v1548_v54 = vpop.f32.mrb[36].mxu1 }
 0x66f   : > { %v1555_v55 = vadd.f32 %v1507_v37, %v6056_v38  ;;  %v1557_v56 = vadd.f32 %v1548_v54, %v6057_v39  ;;  %v1509_v41 = vpop.f32.mrb[37].mxu0  ;;  %v1550_v57 = vpop.f32.mrb[37].mxu1 }
 0x670   : > { %v1556_v43 = vadd.f32 %v1509_v41, %v6058_v42  ;;  %v1558_v45 = vadd.f32 %v1550_v57, %v6059_v44  ;;  %v1511_v46 = vpop.f32.mrb[38].mxu0  ;;  %v1552_v26 = vpop.f32.mrb[38].mxu1 }
 0x671   : > { %v3620_v2 = vmul.f32 -1.442695, %v1555_v55  ;;  %v1512_v5 = vpop.f32.mrb[39].mxu0  ;;  %v1553_v1 = vpop.f32.mrb[39].mxu1  ;;  %v3622_v20 = vmul.f32 -1.442695, %v1557_v56 }
 0x672   : > { %v3621_v19 = vmul.f32 -1.442695, %v1556_v43  ;;  %v3862_v26 = vld [vmem:[#allocation6] ss:$16 sps:$4 sm:$0xff]   ;;  %v3870_v1 = vld [vmem:[#allocation6 + $0x24] ss:$16 sps:$4 sm:$0xff]  }
 0x673   : > { %4046 = vpow2.f32 %v3620_v2  ;;  %v3865_v2 = vld [vmem:[#allocation6 + $0x8] ss:$16 sps:$4 sm:$0xff]  }
 0x674   : > { %4048 = vpow2.f32 %v3621_v19  ;;  %v3873_v19 = vld [vmem:[#allocation6 + $0x2c] ss:$16 sps:$4 sm:$0xff]  }
 0x675   : > { %4050 = vtanh.f32 %v1558_v45 }
 0x676   : > { %4052 = vpow2.f32 %v3622_v20  ;;  %v3868_v20 = vld [vmem:[#allocation6 + $0x20] ss:$16 sps:$4 sm:$0xff]  }
 0x67d   : > { %v4047_v3 = vpop.eup %4046 }
 0x67e   : > { %v1568_v4 = vadd.f32 1.0, %v4047_v3  ;;  %v4049_v6 = vpop.eup %4048  ;;  %v3871_v3 = vld [vmem:[#allocation6 + $0x28] ss:$16 sps:$4 sm:$0xff]  }
 0x67f   : > { %v1569_v59 = vadd.f32 1.0, %v4049_v6  ;;  %v4051_v7 = vpop.eup %4050  ;;  %v3879_v6 = vld [vmem:[#allocation6 + $0x4c] ss:$16 sps:$4 sm:$0xff]  }
 0x680   : > { %4054 = vrcp.f32 %v1568_v4  ;;  %v4053_v13 = vpop.eup %4052  ;;  %v3876_v4 = vld [vmem:[#allocation6 + $0x44] ss:$16 sps:$4 sm:$0xff]  }
 0x681   : > { %4056 = vrcp.f32 %v1569_v59  ;;  %v1570_v54 = vadd.f32 1.0, %v4053_v13  ;;  %v3874_v59 = vld [vmem:[#allocation6 + $0x40] ss:$16 sps:$4 sm:$0xff]   ;;  %v3882_v13 = vld [vmem:[#allocation6 + $0x64] ss:$16 sps:$4 sm:$0xff]  }
 0x683   : > { %4058 = vrcp.f32 %v1570_v54  ;;  %v3888_v54 = vld [vmem:[#allocation6 + $0x84] ss:$16 sps:$4 sm:$0xff]  }
 0x68a   : > { %v4055_v12 = vpop.eup %4054 }
 0x68b   : > { %v1579_v31 = vmul.f32 %v4055_v12, %v4051_v7  ;;  %v4057_v37 = vpop.eup %4056  ;;  %v3877_v7 = vld [vmem:[#allocation6 + $0x48] ss:$16 sps:$4 sm:$0xff]   ;;  %v3885_v12 = vld [vmem:[#allocation6 + $0x6c] ss:$16 sps:$4 sm:$0xff]  }
 0x68c   : > { %v1578_v38 = vmul.f32 %v4057_v37, %v5228_v8  ;;  %v3883_v37 = vld [vmem:[#allocation6 + $0x68] ss:$16 sps:$4 sm:$0xff]  }
 0x68d   : > { %v4059_v39 = vpop.eup %4058 }
 0x68e   : > { %v5314_v55 = vadd.f32 %v1579_v31, %v1578_v38  ;;  %v3880_v31 = vld [vmem:[#allocation6 + $0x60] ss:$16 sps:$4 sm:$0xff]   ;;  %v3891_v38 = vld [vmem:[#allocation6 + $0x8c] ss:$16 sps:$4 sm:$0xff]  }
 0x690   : > { %4060 = vtanh.f32 %v5314_v55 }
 0x69a   : > { %v4061_v56 = vpop.eup %4060 }
 0x69b   : > { %v5317_v41 = vmul.f32 %v4061_v56, %v4059_v39  ;;  %v3889_v39 = vld [vmem:[#allocation6 + $0x88] ss:$16 sps:$4 sm:$0xff]   ;;  %v3894_v56 = vld [vmem:[#allocation6 + $0xa4] ss:$16 sps:$4 sm:$0xff]  }
 0x69d   : > { %v1585_v57 = vpack.c.bf16 %v5317_v41, %v5317_v41 }
 0x69f   : > { %1626 = vmatmul.mubr.bf16.vlgmr.msra.gmra.mrb[40].mxu0 %v1585_v57  ;;  %1667 = vmatmul.mubr.bf16.vlgmr.msra.gmra.mrb[40].mxu1 %v1585_v57  ;;  %v3897_v57 = vld [vmem:[#allocation6 + $0xac] ss:$16 sps:$4 sm:$0xff]  }
 0x6a0   : > { %1714 = vmatpush1.bf16.msra.mxu0 %v5082_v14  ;;  %1755 = vmatpush1.bf16.msra.mxu1 %v5088_v16  ;;  %v3864_v14 = vld [vmem:[#allocation6 + $0x4] ss:$16 sps:$4 sm:$0xff]   ;;  %v3867_v16 = vld [vmem:[#allocation6 + $0xc] ss:$16 sps:$4 sm:$0xff]  }
 0x6a1   : > { %1715 = vmatprep.subr.bf16.mxu0 %v5094_v35  ;;  %1756 = vmatprep.subr.bf16.mxu1 %v5100_v40 }
 0x6a2   : > { %1745 = vmatprep.mubr.bf16.mxu0 %v6046_v60  ;;  %1786 = vmatprep.mubr.bf16.mxu1 %v6046_v60 }
 0x6a4   : > { %1716 = vmatpush1.bf16.msra.mxu0 %v5108_v48  ;;  %1757 = vmatpush1.bf16.msra.mxu1 %v5114_v28  ;;  %v6060_v48 = vld [vmem:[#allocation26_spill] sm:$0xff] }
 0x6a5   : > { %1717 = vmatprep.subr.bf16.mxu0 %v5120_v25  ;;  %1758 = vmatprep.subr.bf16.mxu1 %v5126_v52  ;;  %v6061_v25 = vld [vmem:[#allocation27_spill] sm:$0xff] }
 0x6a8   : > { %1718 = vmatpush1.bf16.msra.mxu0 %v5132_v62  ;;  %1759 = vmatpush1.bf16.msra.mxu1 %v5138_v58 }
 0x6a9   : > { %1719 = vmatprep.subr.bf16.mxu0 %v5144_v10  ;;  %1760 = vmatprep.subr.bf16.mxu1 %v5150_v9  ;;  %v6062_v10 = vld [vmem:[#allocation28_spill] sm:$0xff] }
 0x6ac   : > { %1720 = vmatpush1.bf16.msra.mxu0 %v5156_v63  ;;  %1761 = vmatpush1.bf16.msra.mxu1 %v5162_v61  ;;  %v6063_v63 = vld [vmem:[#allocation29_spill] sm:$0xff] }
 0x6ad   : > { %1721 = vmatprep.subr.bf16.mxu0 %v5168_v47  ;;  %1762 = vmatprep.subr.bf16.mxu1 %v5174_v21 }
 0x6b0   : > { %1722 = vmatpush1.bf16.msra.mxu0 %v5180_v22  ;;  %1763 = vmatpush1.bf16.msra.mxu1 %v5186_v23 }
 0x6b1   : > { %1723 = vmatprep.subr.bf16.mxu0 %v5192_v24  ;;  %1764 = vmatprep.subr.bf16.mxu1 %v5198_v27 }
 0x6b4   : > { %1724 = vmatpush1.bf16.msra.mxu0 %v5204_v29  ;;  %1765 = vmatpush1.bf16.msra.mxu1 %v5210_v30 }
 0x6b5   : > { %1725 = vmatprep.subr.bf16.mxu0 %v5262_v0  ;;  %1766 = vmatprep.subr.bf16.mxu1 %v5268_v49 }
 0x6b8   : > { %1726 = vmatpush1.bf16.msra.mxu0 %v5274_v32  ;;  %1767 = vmatpush1.bf16.msra.mxu1 %v5280_v50 }
 0x6b9   : > { %1727 = vmatprep.subr.bf16.mxu0 %v5286_v33  ;;  %1768 = vmatprep.subr.bf16.mxu1 %v5292_v51 }
 0x6bc   : > { %1728 = vmatpush1.bf16.msra.mxu0 %v5298_v34  ;;  %1769 = vmatpush1.bf16.msra.mxu1 %v5304_v53 }
 0x6bd   : > { %2083 = vmatprep.subr.bf16.mxu0 %v3864_v14  ;;  %2156 = vmatprep.subr.bf16.mxu1 %v3867_v16  ;;  %v3892_v14 = vld [vmem:[#allocation6 + $0xa0] ss:$16 sps:$4 sm:$0xff]   ;;  %v3895_v16 = vld [vmem:[#allocation6 + $0xa8] ss:$16 sps:$4 sm:$0xff]  }
 0x772   : > { %v1627_v35 = vpop.f32.mrb[40].mxu0  ;;  %v1668_v40 = vpop.f32.mrb[40].mxu1 }
 0x773   : > { %v1675_v28 = vadd.f32 %v1627_v35, %v6060_v48  ;;  %v1677_v52 = vadd.f32 %v1668_v40, %v6061_v25  ;;  %v1629_v62 = vpop.f32.mrb[41].mxu0  ;;  %v1670_v58 = vpop.f32.mrb[41].mxu1  ;;  %v3900_v35 = vld [vmem:[#allocation6 + $0xc4] ss:$16 sps:$4 sm:$0xff]   ;;  %v3903_v40 = vld [vmem:[#allocation6 + $0xcc] ss:$16 sps:$4 sm:$0xff]  }
 0x774   : > { %v1676_v9 = vadd.f32 %v1629_v62, %v6062_v10  ;;  %v1678_v61 = vadd.f32 %v1670_v58, %v6063_v63  ;;  %v1631_v47 = vpop.f32.mrb[42].mxu0  ;;  %v1672_v21 = vpop.f32.mrb[42].mxu1  ;;  %v3898_v48 = vld [vmem:[#allocation6 + $0xc0] ss:$16 sps:$4 sm:$0xff]   ;;  %v3906_v25 = vld [vmem:[#allocation6 + $0xe4] ss:$16 sps:$4 sm:$0xff]   ;;  %v1898_v10 = vpack.c.bf16 %v4973_v15, %v4927_v11  ;;  %v1900_v63 = vpack.c.bf16 %v5317_v41, %v5231_v18 }
 0x775   : > { %v3623_v22 = vmul.f32 -1.442695, %v1675_v28  ;;  %v1632_v23 = vpop.f32.mrb[43].mxu0  ;;  %v1673_v24 = vpop.f32.mrb[43].mxu1  ;;  %v3625_v29 = vmul.f32 -1.442695, %v1677_v52 }
 0x776   : > { %v3624_v27 = vmul.f32 -1.442695, %v1676_v9  ;;  %v3901_v28 = vld [vmem:[#allocation6 + $0xc8] ss:$16 sps:$4 sm:$0xff]   ;;  %v3909_v52 = vld [vmem:[#allocation6 + $0xec] ss:$16 sps:$4 sm:$0xff]   ;;  %v1899_v9 = vpack.c.bf16 %v5075_v17, %v5019_v36 }
 0x777   : > { %4062 = vpow2.f32 %v3623_v22  ;;  %v3904_v62 = vld [vmem:[#allocation6 + $0xe0] ss:$16 sps:$4 sm:$0xff]   ;;  %v3907_v58 = vld [vmem:[#allocation6 + $0xe8] ss:$16 sps:$4 sm:$0xff]   ;;  %v5379_v11 = vld [vmem:[#allocation8 + $0x4] ss:$16 sps:$4 sm:$0xff]  }
 0x778   : > { %4064 = vpow2.f32 %v3624_v27  ;;  %v5381_v15 = vld [vmem:[#allocation8 + $0xc] ss:$16 sps:$4 sm:$0xff]   ;;  %v5383_v36 = vld [vmem:[#allocation8] ss:$16 sps:$4 sm:$0xff]   ;;  %v5385_v17 = vld [vmem:[#allocation8 + $0x8] ss:$16 sps:$4 sm:$0xff]  }
 0x779   : > { %4066 = vtanh.f32 %v1678_v61  ;;  %v5391_v18 = vld [vmem:[#allocation8 + $0x24] ss:$16 sps:$4 sm:$0xff]   ;;  %v5393_v41 = vld [vmem:[#allocation8 + $0x2c] ss:$16 sps:$4 sm:$0xff]   ;;  %v5395_v61 = vld [vmem:[#allocation8 + $0x20] ss:$16 sps:$4 sm:$0xff]  }
 0x77a   : > { %4068 = vpow2.f32 %v3625_v29  ;;  %v5397_v47 = vld [vmem:[#allocation8 + $0x28] ss:$16 sps:$4 sm:$0xff]   ;;  %v5403_v21 = vld [vmem:[#allocation8 + $0x44] ss:$16 sps:$4 sm:$0xff]   ;;  %v5405_v22 = vld [vmem:[#allocation8 + $0x4c] ss:$16 sps:$4 sm:$0xff]  }
 0x77b   : > { %v5407_v23 = vld [vmem:[#allocation8 + $0x40] ss:$16 sps:$4 sm:$0xff]   ;;  %v5409_v24 = vld [vmem:[#allocation8 + $0x48] ss:$16 sps:$4 sm:$0xff]   ;;  %v5415_v27 = vld [vmem:[#allocation8 + $0x64] ss:$16 sps:$4 sm:$0xff]  }
 0x77c   : > { %v5417_v29 = vld [vmem:[#allocation8 + $0x6c] ss:$16 sps:$4 sm:$0xff]  }
 0x781   : > { %v4063_v30 = vpop.eup %4062 }
 0x782   : > { %v1688_v8 = vadd.f32 1.0, %v4063_v30  ;;  %v4065_v0 = vpop.eup %4064  ;;  %v5419_v30 = vld [vmem:[#allocation8 + $0x60] ss:$16 sps:$4 sm:$0xff]  }
 0x783   : > { %v1689_v49 = vadd.f32 1.0, %v4065_v0  ;;  %v4067_v32 = vpop.eup %4066  ;;  %v5427_v0 = vld [vmem:[#allocation8 + $0x84] ss:$16 sps:$4 sm:$0xff]  }
 0x784   : > { %4070 = vrcp.f32 %v1688_v8  ;;  %v4069_v50 = vpop.eup %4068  ;;  %v5421_v8 = vld [vmem:[#allocation8 + $0x68] ss:$16 sps:$4 sm:$0xff]  }
 0x785   : > { %4072 = vrcp.f32 %v1689_v49  ;;  %v1690_v53 = vadd.f32 1.0, %v4069_v50  ;;  %v5429_v49 = vld [vmem:[#allocation8 + $0x8c] ss:$16 sps:$4 sm:$0xff]   ;;  %v5433_v50 = vld [vmem:[#allocation8 + $0x88] ss:$16 sps:$4 sm:$0xff]  }
 0x787   : > { %4074 = vrcp.f32 %v1690_v53  ;;  %v5445_v53 = vld [vmem:[#allocation8 + $0xa8] ss:$16 sps:$4 sm:$0xff]  }
 0x78e   : > { %v4071_v33 = vpop.eup %4070 }
 0x78f   : > { %v1699_v51 = vmul.f32 %v4071_v33, %v4067_v32  ;;  %v4073_v34 = vpop.eup %4072  ;;  %v5431_v32 = vld [vmem:[#allocation8 + $0x80] ss:$16 sps:$4 sm:$0xff]   ;;  %v5439_v33 = vld [vmem:[#allocation8 + $0xa4] ss:$16 sps:$4 sm:$0xff]  }
 0x790   : > { %v1698_v42 = vmul.f32 %v4073_v34, %v5314_v55  ;;  %v3886_v55 = vld [vmem:[#allocation6 + $0x80] ss:$16 sps:$4 sm:$0xff]  }
 0x791   : > { %v4075_v44 = vpop.eup %4074  ;;  %v5443_v34 = vld [vmem:[#allocation8 + $0xa0] ss:$16 sps:$4 sm:$0xff]  }
 0x792   : > { %v5358_v43 = vadd.f32 %v1699_v51, %v1698_v42  ;;  %v5441_v51 = vld [vmem:[#allocation8 + $0xac] ss:$16 sps:$4 sm:$0xff]   ;;  %v5451_v42 = vld [vmem:[#allocation8 + $0xc4] ss:$16 sps:$4 sm:$0xff]  }
 0x794   : > { %4076 = vtanh.f32 %v5358_v43 }
 0x79e   : > { %v4077_v45 = vpop.eup %4076 }
 0x79f   : > { %v5361_v46 = vmul.f32 %v4077_v45, %v4075_v44  ;;  %v5453_v44 = vld [vmem:[#allocation8 + $0xcc] ss:$16 sps:$4 sm:$0xff]   ;;  %v5455_v45 = vld [vmem:[#allocation8 + $0xc0] ss:$16 sps:$4 sm:$0xff]  }
 0x7a1   : > { %v1705_v5 = vpack.c.bf16 %v5361_v46, %v5361_v46 }
 0x7a3   : > { %1746 = vmatmul.mubr.bf16.vlgmr.msra.gmra.mrb[44].mxu0 %v1705_v5  ;;  %1787 = vmatmul.mubr.bf16.vlgmr.msra.gmra.mrb[44].mxu1 %v1705_v5  ;;  %v5465_v5 = vld [vmem:[#allocation8 + $0xec] ss:$16 sps:$4 sm:$0xff]  }
 0x7a4   : > { %2084 = vmatpush1.bf16.msra.mxu0 %v3862_v26  ;;  %2157 = vmatpush1.bf16.msra.mxu1 %v3865_v2  ;;  %v5457_v26 = vld [vmem:[#allocation8 + $0xc8] ss:$16 sps:$4 sm:$0xff]   ;;  %v5463_v2 = vld [vmem:[#allocation8 + $0xe4] ss:$16 sps:$4 sm:$0xff]  }
 0x7a5   : > { %2085 = vmatprep.subr.bf16.mxu0 %v3870_v1  ;;  %2158 = vmatprep.subr.bf16.mxu1 %v3873_v19  ;;  %v5467_v1 = vld [vmem:[#allocation8 + $0xe0] ss:$16 sps:$4 sm:$0xff]   ;;  %v5469_v19 = vld [vmem:[#allocation8 + $0xe8] ss:$16 sps:$4 sm:$0xff]  }
 0x7a6   : > { %2115 = vmatprep.mubr.bf16.mxu0 %v6046_v60  ;;  %2188 = vmatprep.mubr.bf16.mxu1 %v6046_v60 }
 0x7a8   : > { %2086 = vmatpush1.bf16.msra.mxu0 %v3868_v20  ;;  %2159 = vmatpush1.bf16.msra.mxu1 %v3871_v3 }
 0x7a9   : > { %2087 = vmatprep.subr.bf16.mxu0 %v3876_v4  ;;  %2160 = vmatprep.subr.bf16.mxu1 %v3879_v6  ;;  %v6064_v4 = vld [vmem:[#allocation30_spill] sm:$0xff] }
 0x7ac   : > { %2088 = vmatpush1.bf16.msra.mxu0 %v3874_v59  ;;  %2161 = vmatpush1.bf16.msra.mxu1 %v3877_v7  ;;  %v6065_v59 = vld [vmem:[#allocation31_spill] sm:$0xff] }
 0x7ad   : > { %2089 = vmatprep.subr.bf16.mxu0 %v3882_v13  ;;  %2162 = vmatprep.subr.bf16.mxu1 %v3885_v12 }
 0x7b0   : > { %2090 = vmatpush1.bf16.msra.mxu0 %v3880_v31  ;;  %2163 = vmatpush1.bf16.msra.mxu1 %v3883_v37  ;;  %v6066_v31 = vld [vmem:[#allocation32_spill] sm:$0xff] }
 0x7b1   : > { %2091 = vmatprep.subr.bf16.mxu0 %v3888_v54  ;;  %2164 = vmatprep.subr.bf16.mxu1 %v3891_v38  ;;  %v6067_v54 = vld [vmem:[#allocation33_spill] sm:$0xff] }
 0x7b4   : > { %2092 = vmatpush1.bf16.msra.mxu0 %v3886_v55  ;;  %2165 = vmatpush1.bf16.msra.mxu1 %v3889_v39 }
 0x7b5   : > { %2093 = vmatprep.subr.bf16.mxu0 %v3894_v56  ;;  %2166 = vmatprep.subr.bf16.mxu1 %v3897_v57 }
 0x7b8   : > { %2094 = vmatpush1.bf16.msra.mxu0 %v3892_v14  ;;  %2167 = vmatpush1.bf16.msra.mxu1 %v3895_v16 }
 0x7b9   : > { %2095 = vmatprep.subr.bf16.mxu0 %v3900_v35  ;;  %2168 = vmatprep.subr.bf16.mxu1 %v3903_v40 }
 0x7bc   : > { %2096 = vmatpush1.bf16.msra.mxu0 %v3898_v48  ;;  %2169 = vmatpush1.bf16.msra.mxu1 %v3901_v28 }
 0x7bd   : > { %2097 = vmatprep.subr.bf16.mxu0 %v3906_v25  ;;  %2170 = vmatprep.subr.bf16.mxu1 %v3909_v52 }
 0x7c0   : > { %2098 = vmatpush1.bf16.msra.mxu0 %v3904_v62  ;;  %2171 = vmatpush1.bf16.msra.mxu1 %v3907_v58 }
 0x7c1   : > { %2425 = vmatprep.subr.bf16.mxu0 %v5379_v11  ;;  %2466 = vmatprep.subr.bf16.mxu1 %v5381_v15 }
 0x7c3   : > { %2116 = vmatmul.mubr.bf16.vlgmr.msra.gmra.mrb[48].mxu0 %v1898_v10  ;;  %2189 = vmatmul.mubr.bf16.vlgmr.msra.gmra.mrb[48].mxu1 %v1898_v10 }
 0x7c4   : > { %2125 = vmatprep.mubr.bf16.mxu0 %v6046_v60  ;;  %2198 = vmatprep.mubr.bf16.mxu1 %v6046_v60 }
 0x7c5   : > { %2426 = vmatpush1.bf16.msra.mxu0 %v5383_v36  ;;  %2467 = vmatpush1.bf16.msra.mxu1 %v5385_v17 }
 0x7c6   : > { %2427 = vmatprep.subr.bf16.mxu0 %v5391_v18  ;;  %2468 = vmatprep.subr.bf16.mxu1 %v5393_v41 }
 0x7c9   : > { %2428 = vmatpush1.bf16.msra.mxu0 %v5395_v61  ;;  %2469 = vmatpush1.bf16.msra.mxu1 %v5397_v47 }
 0x7ca   : > { %2429 = vmatprep.subr.bf16.mxu0 %v5403_v21  ;;  %2470 = vmatprep.subr.bf16.mxu1 %v5405_v22 }
 0x7cb   : > { %2126 = vmatmul.mubr.bf16.gmra.mrb[52].mxu0 %v1899_v9  ;;  %2199 = vmatmul.mubr.bf16.gmra.mrb[52].mxu1 %v1899_v9 }
 0x7cc   : > { %2135 = vmatprep.mubr.bf16.mxu0 %v6046_v60  ;;  %2208 = vmatprep.mubr.bf16.mxu1 %v6046_v60 }
 0x7cd   : > { %2430 = vmatpush1.bf16.msra.mxu0 %v5407_v23  ;;  %2471 = vmatpush1.bf16.msra.mxu1 %v5409_v24 }
 0x7ce   : > { %2431 = vmatprep.subr.bf16.mxu0 %v5415_v27  ;;  %2472 = vmatprep.subr.bf16.mxu1 %v5417_v29 }
 0x7d1   : > { %2432 = vmatpush1.bf16.msra.mxu0 %v5419_v30  ;;  %2473 = vmatpush1.bf16.msra.mxu1 %v5421_v8 }
 0x7d2   : > { %2433 = vmatprep.subr.bf16.mxu0 %v5427_v0  ;;  %2474 = vmatprep.subr.bf16.mxu1 %v5429_v49 }
 0x7d3   : > { %2136 = vmatmul.mubr.bf16.gmra.mrb[56].mxu0 %v1900_v63  ;;  %2209 = vmatmul.mubr.bf16.gmra.mrb[56].mxu1 %v1900_v63 }
 0x7d4   : > { %2145 = vmatprep.mubr.bf16.mxu0 %v6046_v60  ;;  %2218 = vmatprep.mubr.bf16.mxu1 %v6046_v60 }
 0x7d5   : > { %2434 = vmatpush1.bf16.msra.mxu0 %v5431_v32  ;;  %2475 = vmatpush1.bf16.msra.mxu1 %v5433_v50 }
 0x7d6   : > { %2435 = vmatprep.subr.bf16.mxu0 %v5439_v33  ;;  %2476 = vmatprep.subr.bf16.mxu1 %v5441_v51 }
 0x7d9   : > { %2436 = vmatpush1.bf16.msra.mxu0 %v5443_v34  ;;  %2477 = vmatpush1.bf16.msra.mxu1 %v5445_v53 }
 0x7da   : > { %2437 = vmatprep.subr.bf16.mxu0 %v5451_v42  ;;  %2478 = vmatprep.subr.bf16.mxu1 %v5453_v44 }
 0x7dd   : > { %2438 = vmatpush1.bf16.msra.mxu0 %v5455_v45  ;;  %2479 = vmatpush1.bf16.msra.mxu1 %v5457_v26 }
 0x7de   : > { %2439 = vmatprep.subr.bf16.mxu0 %v5463_v2  ;;  %2480 = vmatprep.subr.bf16.mxu1 %v5465_v5 }
 0x7e1   : > { %2440 = vmatpush1.bf16.msra.mxu0 %v5467_v1  ;;  %2481 = vmatpush1.bf16.msra.mxu1 %v5469_v19 }
 0x7e2   : > { %2540 = vmatprep.subr.bf16.mxu0 %v5379_v11  ;;  %2581 = vmatprep.subr.bf16.mxu1 %v5381_v15 }
 0x876   : > { %v1747_v20 = vpop.f32.mrb[44].mxu0  ;;  %v1788_v3 = vpop.f32.mrb[44].mxu1 }
 0x877   : > { %v1795_v6 = vadd.f32 %v1747_v20, %v6064_v4  ;;  %v1797_v7 = vadd.f32 %v1788_v3, %v6065_v59  ;;  %v1749_v13 = vpop.f32.mrb[45].mxu0  ;;  %v1790_v12 = vpop.f32.mrb[45].mxu1 }
 0x878   : > { %v1796_v37 = vadd.f32 %v1749_v13, %v6066_v31  ;;  %v1798_v38 = vadd.f32 %v1790_v12, %v6067_v54  ;;  %v1751_v55 = vpop.f32.mrb[46].mxu0  ;;  %v1792_v39 = vpop.f32.mrb[46].mxu1 }
 0x879   : > { %v3626_v56 = vmul.f32 -1.442695, %v1795_v6  ;;  %v1752_v57 = vpop.f32.mrb[47].mxu0  ;;  %v1793_v14 = vpop.f32.mrb[47].mxu1  ;;  %v3628_v35 = vmul.f32 -1.442695, %v1797_v7 }
 0x87a   : > { %v3627_v16 = vmul.f32 -1.442695, %v1796_v37 }
 0x87b   : > { %4078 = vpow2.f32 %v3626_v56 }
 0x87c   : > { %4080 = vpow2.f32 %v3627_v16 }
 0x87d   : > { %4082 = vtanh.f32 %v1798_v38 }
 0x87e   : > { %4084 = vpow2.f32 %v3628_v35 }
 0x885   : > { %v4079_v40 = vpop.eup %4078 }
 0x886   : > { %v1808_v48 = vadd.f32 1.0, %v4079_v40  ;;  %v4081_v28 = vpop.eup %4080 }
 0x887   : > { %v1809_v25 = vadd.f32 1.0, %v4081_v28  ;;  %v4083_v52 = vpop.eup %4082 }
 0x888   : > { %4086 = vrcp.f32 %v1808_v48  ;;  %v4085_v62 = vpop.eup %4084 }
 0x889   : > { %4088 = vrcp.f32 %v1809_v25  ;;  %v1810_v63 = vadd.f32 1.0, %v4085_v62 }
 0x88b   : > { %4090 = vrcp.f32 %v1810_v63 }
 0x892   : > { %v4087_v58 = vpop.eup %4086 }
 0x893   : > { %v1819_v10 = vmul.f32 %v4087_v58, %v4083_v52  ;;  %v4089_v9 = vpop.eup %4088 }
 0x894   : > { %v1818_v20 = vmul.f32 %v4089_v9, %v5358_v43 }
 0x895   : > { %v4091_v16 = vpop.eup %4090 }
 0x896   : > { %v5482_v3 = vpop.f32.mrb[48].mxu0  ;;  %v5484_v4 = vpop.f32.mrb[48].mxu1  ;;  %v1820_v6 = vadd.f32 %v1819_v10, %v1818_v20 }
 0x897   : > { %v5486_v59 = vpop.f32.mrb[49].mxu0  ;;  %v5488_v7 = vpop.f32.mrb[49].mxu1 }
 0x898   : > { %v5490_v13 = vpop.f32.mrb[50].mxu0  ;;  %v5492_v12 = vpop.f32.mrb[50].mxu1  ;;  %4092 = vtanh.f32 %v1820_v6 }
 0x899   : > { %v5494_v31 = vpop.f32.mrb[51].mxu0  ;;  %v5496_v37 = vpop.f32.mrb[51].mxu1 }
 0x89e   : > { %v5498_v43 = vpop.f32.mrb[52].mxu0  ;;  %v5500_v54 = vpop.f32.mrb[52].mxu1 }
 0x89f   : > { %6068 = vst [vmem:[#allocation13_spill] sm:$0xff] %v5500_v54  ;;  %v5502_v38 = vpop.f32.mrb[53].mxu0  ;;  %v5504_v55 = vpop.f32.mrb[53].mxu1 }
 0x8a0   : > { %6069 = vst [vmem:[#allocation14_spill] sm:$0xff] %v5502_v38  ;;  %6070 = vst [vmem:[#allocation15_spill] sm:$0xff] %v5504_v55  ;;  %v5506_v39 = vpop.f32.mrb[54].mxu0  ;;  %v5508_v56 = vpop.f32.mrb[54].mxu1 }
 0x8a1   : > { %6071 = vst [vmem:[#allocation16_spill] sm:$0xff] %v5506_v39  ;;  %6072 = vst [vmem:[#allocation17_spill] sm:$0xff] %v5508_v56  ;;  %v5510_v57 = vpop.f32.mrb[55].mxu0  ;;  %v5512_v14 = vpop.f32.mrb[55].mxu1 }
 0x8a2   : > { %6073 = vst [vmem:[#allocation18_spill] sm:$0xff] %v5510_v57  ;;  %6074 = vst [vmem:[#allocation19_spill] sm:$0xff] %v5512_v14  ;;  %v4093_v35 = vpop.eup %4092 }
 0x8a3   : > { %v1822_v40 = vmul.f32 %v4093_v35, %v4091_v16 }
 0x8a5   : > { %v1901_v25 = vpack.c.bf16 %v1822_v40, %v5361_v46  ;;  %v1889_v46 = vld [vmem:[%s6001_s6] sm:$0xf] }
 0x8a6   : > { %v5514_v48 = vpop.f32.mrb[56].mxu0  ;;  %v5516_v28 = vpop.f32.mrb[56].mxu1 }
 0x8a7   : > { %6075 = vst [vmem:[#allocation20_spill] sm:$0xff] %v5514_v48  ;;  %6076 = vst [vmem:[#allocation21_spill] sm:$0xff] %v5516_v28  ;;  %v5519_v52 = vpop.f32.mrb[57].mxu0  ;;  %v5521_v62 = vpop.f32.mrb[57].mxu1  ;;  %2146 = vmatmul.mubr.bf16.gmra.mrb[60].mxu0 %v1901_v25  ;;  %2219 = vmatmul.mubr.bf16.gmra.mrb[60].mxu1 %v1901_v25 }
 0x8a8   : > { %6077 = vst [vmem:[#allocation22_spill] sm:$0xff] %v5519_v52  ;;  %6078 = vst [vmem:[#allocation23_spill] sm:$0xff] %v5521_v62  ;;  %v5523_v58 = vpop.f32.mrb[58].mxu0  ;;  %v5525_v10 = vpop.f32.mrb[58].mxu1  ;;  %2457 = vmatprep.mubr.bf16.mxu0 %v6046_v60  ;;  %2498 = vmatprep.mubr.bf16.mxu1 %v6046_v60 }
 0x8a9   : > { %6079 = vst [vmem:[#allocation24_spill] sm:$0xff] %v5523_v58  ;;  %6080 = vst [vmem:[#allocation25_spill] sm:$0xff] %v5525_v10  ;;  %v5527_v9 = vpop.f32.mrb[59].mxu0  ;;  %v5529_v63 = vpop.f32.mrb[59].mxu1 }
 0x8aa   : > { %6081 = vst [vmem:[#allocation26_spill] sm:$0xff] %v5527_v9  ;;  %6082 = vst [vmem:[#allocation27_spill] sm:$0xff] %v5529_v63  ;;  %v6089_v63 = vld [vmem:[#allocation12_spill] sm:$0xff] }
 0x8ab   : > { %v6090_v9 = vsub.s32 0, %v6089_v63  ;;  %v6091_v58 = vsub.s32 2, %v6089_v63 }
 0x8ad   : > { %v5586_v10 = vrot.slane %v1889_v46, %v6090_v9  ;;  %v5590_v62 = vrot.slane %v1889_v46, %v6091_v58 }
 0x8af   : > { %2458 = vmatmul.mubr.bf16.vlgmr.msra.gmra.mrb[64].mxu0 %v6046_v60  ;;  %2499 = vmatmul.mubr.bf16.vlgmr.msra.gmra.mrb[64].mxu1 %v6046_v60  ;;  %v2118_v9 = vadd.f32 %v5482_v3, %v5586_v10 }
 0x8b0   : > { %2541 = vmatpush1.bf16.msra.mxu0 %v5383_v36  ;;  %2582 = vmatpush1.bf16.msra.mxu1 %v5385_v17 }
 0x8b1   : > { %2542 = vmatprep.subr.bf16.mxu0 %v5391_v18  ;;  %2583 = vmatprep.subr.bf16.mxu1 %v5393_v41 }
 0x8b2   : > { %2572 = vmatprep.mubr.bf16.mxu0 %v6046_v60  ;;  %2613 = vmatprep.mubr.bf16.mxu1 %v6046_v60 }
 0x8b4   : > { %2543 = vmatpush1.bf16.msra.mxu0 %v5395_v61  ;;  %2584 = vmatpush1.bf16.msra.mxu1 %v5397_v47 }
 0x8b5   : > { %2544 = vmatprep.subr.bf16.mxu0 %v5403_v21  ;;  %2585 = vmatprep.subr.bf16.mxu1 %v5405_v22 }
 0x8b8   : > { %2545 = vmatpush1.bf16.msra.mxu0 %v5407_v23  ;;  %2586 = vmatpush1.bf16.msra.mxu1 %v5409_v24 }
 0x8b9   : > { %2546 = vmatprep.subr.bf16.mxu0 %v5415_v27  ;;  %2587 = vmatprep.subr.bf16.mxu1 %v5417_v29 }
 0x8bc   : > { %2547 = vmatpush1.bf16.msra.mxu0 %v5419_v30  ;;  %2588 = vmatpush1.bf16.msra.mxu1 %v5421_v8 }
 0x8bd   : > { %2548 = vmatprep.subr.bf16.mxu0 %v5427_v0  ;;  %2589 = vmatprep.subr.bf16.mxu1 %v5429_v49 }
 0x8c0   : > { %2549 = vmatpush1.bf16.msra.mxu0 %v5431_v32  ;;  %2590 = vmatpush1.bf16.msra.mxu1 %v5433_v50 }
 0x8c1   : > { %2550 = vmatprep.subr.bf16.mxu0 %v5439_v33  ;;  %2591 = vmatprep.subr.bf16.mxu1 %v5441_v51 }
 0x8c4   : > { %2551 = vmatpush1.bf16.msra.mxu0 %v5443_v34  ;;  %2592 = vmatpush1.bf16.msra.mxu1 %v5445_v53 }
 0x8c5   : > { %2552 = vmatprep.subr.bf16.mxu0 %v5451_v42  ;;  %2593 = vmatprep.subr.bf16.mxu1 %v5453_v44 }
 0x8c8   : > { %2553 = vmatpush1.bf16.msra.mxu0 %v5455_v45  ;;  %2594 = vmatpush1.bf16.msra.mxu1 %v5457_v26 }
 0x8c9   : > { %2554 = vmatprep.subr.bf16.mxu0 %v5463_v2  ;;  %2595 = vmatprep.subr.bf16.mxu1 %v5465_v5 }
 0x8cc   : > { %2555 = vmatpush1.bf16.msra.mxu0 %v5467_v1  ;;  %2596 = vmatpush1.bf16.msra.mxu1 %v5469_v19 }
 0x8cd   : > { %2655 = vmatprep.subr.bf16.mxu0 %v5379_v11  ;;  %2696 = vmatprep.subr.bf16.mxu1 %v5381_v15 }
 0x97a   : > { %v5572_v20 = vpop.f32.mrb[60].mxu0  ;;  %v5574_v6 = vpop.f32.mrb[60].mxu1 }
 0x97b   : > { %6083 = vst [vmem:[#allocation28_spill] sm:$0xff] %v5572_v20  ;;  %6084 = vst [vmem:[#allocation29_spill] sm:$0xff] %v5574_v6  ;;  %v5576_v16 = vpop.f32.mrb[61].mxu0  ;;  %v5578_v35 = vpop.f32.mrb[61].mxu1 }
 0x97c   : > { %6085 = vst [vmem:[#allocation30_spill] sm:$0xff] %v5576_v16  ;;  %6086 = vst [vmem:[#allocation31_spill] sm:$0xff] %v5578_v35  ;;  %v5580_v40 = vpop.f32.mrb[62].mxu0  ;;  %v5582_v25 = vpop.f32.mrb[62].mxu1  ;;  %v6094_v16 = vsub.s32 1, %v6089_v63 }
 0x97d   : > { %6087 = vst [vmem:[#allocation32_spill] sm:$0xff] %v5580_v40  ;;  %6088 = vst [vmem:[#allocation33_spill] sm:$0xff] %v5582_v25  ;;  %v5592_v52 = vpop.f32.mrb[63].mxu0  ;;  %v5594_v20 = vpop.f32.mrb[63].mxu1  ;;  %v6095_v40 = vsub.s32 3, %v6089_v63  ;;  %v2191_v25 = vadd.f32 %v5484_v4, %v5590_v62 }
 0x97e   : > { %6092 = vst [vmem:[#allocation12_spill] sm:$0xff] %v5592_v52  ;;  %6093 = vst [vmem:[#allocation34_spill] sm:$0xff] %v5594_v20  ;;  %v5598_v6 = vrot.slane %v1889_v46, %v6094_v16 }
 0x97f   : > { %v5602_v35 = vrot.slane %v1889_v46, %v6095_v40 }
 0x980   : > { %v2120_v58 = vadd.f32 %v5486_v59, %v5598_v6 }
 0x981   : > { %v2193_v20 = vadd.f32 %v5488_v7, %v5602_v35 }
 0x982   : > { %v2459_v52 = vpop.f32.mrb[64].mxu0  ;;  %v2500_v28 = vpop.f32.mrb[64].mxu1 }
 0x983   : > { %v2507_v16 = vadd.f32 %v2459_v52, %v2118_v9  ;;  %v2509_v48 = vadd.f32 %v2500_v28, %v2191_v25  ;;  %v2461_v14 = vpop.f32.mrb[65].mxu0  ;;  %v2502_v63 = vpop.f32.mrb[65].mxu1 }
 0x984   : > { %v2508_v46 = vadd.f32 %v2461_v14, %v2120_v58  ;;  %v2510_v40 = vadd.f32 %v2502_v63, %v2193_v20  ;;  %v2463_v57 = vpop.f32.mrb[66].mxu0  ;;  %v2504_v56 = vpop.f32.mrb[66].mxu1  ;;  %v2124_v63 = vadd.f32 %v5494_v31, %v5598_v6 }
 0x985   : > { %v3693_v3 = vmul.f32 -1.442695, %v2507_v16  ;;  %v2464_v39 = vpop.f32.mrb[67].mxu0  ;;  %v2505_v55 = vpop.f32.mrb[67].mxu1  ;;  %v3695_v59 = vmul.f32 -1.442695, %v2509_v48  ;;  %v2195_v16 = vadd.f32 %v5492_v12, %v5590_v62 }
 0x986   : > { %v3694_v4 = vmul.f32 -1.442695, %v2508_v46  ;;  %v2197_v46 = vadd.f32 %v5496_v37, %v5602_v35 }
 0x987   : > { %4094 = vpow2.f32 %v3693_v3 }
 0x988   : > { %4096 = vpow2.f32 %v3694_v4 }
 0x989   : > { %4098 = vtanh.f32 %v2510_v40 }
 0x98a   : > { %4100 = vpow2.f32 %v3695_v59 }
 0x991   : > { %v4095_v38 = vpop.eup %4094 }
 0x992   : > { %v2520_v54 = vadd.f32 1.0, %v4095_v38  ;;  %v4097_v7 = vpop.eup %4096 }
 0x993   : > { %v2521_v28 = vadd.f32 1.0, %v4097_v7  ;;  %v4099_v52 = vpop.eup %4098 }
 0x994   : > { %4102 = vrcp.f32 %v2520_v54  ;;  %v4101_v14 = vpop.eup %4100  ;;  %v2122_v54 = vadd.f32 %v5490_v13, %v5586_v10 }
 0x995   : > { %4104 = vrcp.f32 %v2521_v28  ;;  %v2522_v25 = vadd.f32 1.0, %v4101_v14 }
 0x997   : > { %4106 = vrcp.f32 %v2522_v25 }
 0x99e   : > { %v4103_v20 = vpop.eup %4102 }
 0x99f   : > { %v2531_v57 = vmul.f32 %v4103_v20, %v4099_v52  ;;  %v4105_v56 = vpop.eup %4104 }
 0x9a0   : > { %v2530_v39 = vmul.f32 0.0, %v4105_v56 }
 0x9a1   : > { %v4107_v48 = vpop.eup %4106 }
 0x9a2   : > { %v5612_v55 = vadd.f32 %v2531_v57, %v2530_v39 }
 0x9a4   : > { %4108 = vtanh.f32 %v5612_v55 }
 0x9ae   : > { %v4109_v38 = vpop.eup %4108 }
 0x9af   : > { %v2534_v9 = vmul.f32 %v4109_v38, %v4107_v48 }
 0x9b1   : > { %v2535_v58 = vpack.c.bf16 %v2534_v9, %v2534_v9 }
 0x9b3   : > { %2573 = vmatmul.mubr.bf16.vlgmr.msra.gmra.mrb[68].mxu0 %v2535_v58  ;;  %2614 = vmatmul.mubr.bf16.vlgmr.msra.gmra.mrb[68].mxu1 %v2535_v58 }
 0x9b4   : > { %2656 = vmatpush1.bf16.msra.mxu0 %v5383_v36  ;;  %2697 = vmatpush1.bf16.msra.mxu1 %v5385_v17 }
 0x9b5   : > { %2657 = vmatprep.subr.bf16.mxu0 %v5391_v18  ;;  %2698 = vmatprep.subr.bf16.mxu1 %v5393_v41 }
 0x9b6   : > { %2687 = vmatprep.mubr.bf16.mxu0 %v6046_v60  ;;  %2728 = vmatprep.mubr.bf16.mxu1 %v6046_v60 }
 0x9b8   : > { %2658 = vmatpush1.bf16.msra.mxu0 %v5395_v61  ;;  %2699 = vmatpush1.bf16.msra.mxu1 %v5397_v47 }
 0x9b9   : > { %2659 = vmatprep.subr.bf16.mxu0 %v5403_v21  ;;  %2700 = vmatprep.subr.bf16.mxu1 %v5405_v22 }
 0x9bc   : > { %2660 = vmatpush1.bf16.msra.mxu0 %v5407_v23  ;;  %2701 = vmatpush1.bf16.msra.mxu1 %v5409_v24 }
 0x9bd   : > { %2661 = vmatprep.subr.bf16.mxu0 %v5415_v27  ;;  %2702 = vmatprep.subr.bf16.mxu1 %v5417_v29 }
 0x9c0   : > { %2662 = vmatpush1.bf16.msra.mxu0 %v5419_v30  ;;  %2703 = vmatpush1.bf16.msra.mxu1 %v5421_v8 }
 0x9c1   : > { %2663 = vmatprep.subr.bf16.mxu0 %v5427_v0  ;;  %2704 = vmatprep.subr.bf16.mxu1 %v5429_v49 }
 0x9c4   : > { %2664 = vmatpush1.bf16.msra.mxu0 %v5431_v32  ;;  %2705 = vmatpush1.bf16.msra.mxu1 %v5433_v50 }
 0x9c5   : > { %2665 = vmatprep.subr.bf16.mxu0 %v5439_v33  ;;  %2706 = vmatprep.subr.bf16.mxu1 %v5441_v51 }
 0x9c8   : > { %2666 = vmatpush1.bf16.msra.mxu0 %v5443_v34  ;;  %2707 = vmatpush1.bf16.msra.mxu1 %v5445_v53 }
 0x9c9   : > { %2667 = vmatprep.subr.bf16.mxu0 %v5451_v42  ;;  %2708 = vmatprep.subr.bf16.mxu1 %v5453_v44 }
 0x9cc   : > { %2668 = vmatpush1.bf16.msra.mxu0 %v5455_v45  ;;  %2709 = vmatpush1.bf16.msra.mxu1 %v5457_v26 }
 0x9cd   : > { %2669 = vmatprep.subr.bf16.mxu0 %v5463_v2  ;;  %2710 = vmatprep.subr.bf16.mxu1 %v5465_v5 }
 0x9d0   : > { %2670 = vmatpush1.bf16.msra.mxu0 %v5467_v1  ;;  %2711 = vmatpush1.bf16.msra.mxu1 %v5469_v19 }
 0x9d1   : > { %2770 = vmatprep.subr.bf16.mxu0 %v5379_v11  ;;  %2811 = vmatprep.subr.bf16.mxu1 %v5381_v15 }
 0xa86   : > { %v2574_v40 = vpop.f32.mrb[68].mxu0  ;;  %v2615_v3 = vpop.f32.mrb[68].mxu1 }
 0xa87   : > { %v2622_v4 = vadd.f32 %v2574_v40, %v2122_v54  ;;  %v2624_v59 = vadd.f32 %v2615_v3, %v2195_v16  ;;  %v2576_v7 = vpop.f32.mrb[69].mxu0  ;;  %v2617_v28 = vpop.f32.mrb[69].mxu1 }
 0xa88   : > { %v2623_v52 = vadd.f32 %v2576_v7, %v2124_v63  ;;  %v2625_v14 = vadd.f32 %v2617_v28, %v2197_v46  ;;  %v2578_v20 = vpop.f32.mrb[70].mxu0  ;;  %v2619_v57 = vpop.f32.mrb[70].mxu1 }
 0xa89   : > { %v3696_v13 = vmul.f32 -1.442695, %v2622_v4  ;;  %v2579_v56 = vpop.f32.mrb[71].mxu0  ;;  %v2620_v25 = vpop.f32.mrb[71].mxu1  ;;  %v3698_v31 = vmul.f32 -1.442695, %v2624_v59 }
 0xa8a   : > { %v3697_v12 = vmul.f32 -1.442695, %v2623_v52  ;;  %v6096_v52 = vld [vmem:[#allocation13_spill] sm:$0xff]  ;;  %v6097_v20 = vld [vmem:[#allocation14_spill] sm:$0xff] }
 0xa8b   : > { %4110 = vpow2.f32 %v3696_v13  ;;  %v2130_v57 = vadd.f32 %v6097_v20, %v5598_v6  ;;  %v6098_v13 = vld [vmem:[#allocation15_spill] sm:$0xff] }
 0xa8c   : > { %4112 = vpow2.f32 %v3697_v12  ;;  %v2203_v56 = vadd.f32 %v6098_v13, %v5602_v35 }
 0xa8d   : > { %4114 = vtanh.f32 %v2625_v14  ;;  %v2201_v14 = vadd.f32 %v6096_v52, %v5590_v62 }
 0xa8e   : > { %4116 = vpow2.f32 %v3698_v31 }
 0xa95   : > { %v4111_v39 = vpop.eup %4110 }
 0xa96   : > { %v2635_v48 = vadd.f32 1.0, %v4111_v39  ;;  %v4113_v37 = vpop.eup %4112 }
 0xa97   : > { %v2636_v38 = vadd.f32 1.0, %v4113_v37  ;;  %v4115_v9 = vpop.eup %4114 }
 0xa98   : > { %4118 = vrcp.f32 %v2635_v48  ;;  %v4117_v58 = vpop.eup %4116 }
 0xa99   : > { %4120 = vrcp.f32 %v2636_v38  ;;  %v2637_v46 = vadd.f32 1.0, %v4117_v58 }
 0xa9b   : > { %4122 = vrcp.f32 %v2637_v46 }
 0xaa2   : > { %v4119_v54 = vpop.eup %4118 }
 0xaa3   : > { %v2646_v16 = vmul.f32 %v4119_v54, %v4115_v9  ;;  %v4121_v63 = vpop.eup %4120 }
 0xaa4   : > { %v2645_v40 = vmul.f32 %v4121_v63, %v5612_v55  ;;  %v2128_v55 = vadd.f32 %v5498_v43, %v5586_v10 }
 0xaa5   : > { %v4123_v4 = vpop.eup %4122 }
 0xaa6   : > { %v5658_v3 = vadd.f32 %v2646_v16, %v2645_v40 }
 0xaa8   : > { %4124 = vtanh.f32 %v5658_v3 }
 0xab2   : > { %v4125_v59 = vpop.eup %4124 }
 0xab3   : > { %v2649_v7 = vmul.f32 %v4125_v59, %v4123_v4 }
 0xab5   : > { %v2650_v28 = vpack.c.bf16 %v2649_v7, %v2649_v7 }
 0xab7   : > { %2688 = vmatmul.mubr.bf16.vlgmr.msra.gmra.mrb[72].mxu0 %v2650_v28  ;;  %2729 = vmatmul.mubr.bf16.vlgmr.msra.gmra.mrb[72].mxu1 %v2650_v28 }
 0xab8   : > { %2771 = vmatpush1.bf16.msra.mxu0 %v5383_v36  ;;  %2812 = vmatpush1.bf16.msra.mxu1 %v5385_v17 }
 0xab9   : > { %2772 = vmatprep.subr.bf16.mxu0 %v5391_v18  ;;  %2813 = vmatprep.subr.bf16.mxu1 %v5393_v41 }
 0xaba   : > { %2802 = vmatprep.mubr.bf16.mxu0 %v6046_v60  ;;  %2843 = vmatprep.mubr.bf16.mxu1 %v6046_v60 }
 0xabc   : > { %2773 = vmatpush1.bf16.msra.mxu0 %v5395_v61  ;;  %2814 = vmatpush1.bf16.msra.mxu1 %v5397_v47 }
 0xabd   : > { %2774 = vmatprep.subr.bf16.mxu0 %v5403_v21  ;;  %2815 = vmatprep.subr.bf16.mxu1 %v5405_v22 }
 0xac0   : > { %2775 = vmatpush1.bf16.msra.mxu0 %v5407_v23  ;;  %2816 = vmatpush1.bf16.msra.mxu1 %v5409_v24 }
 0xac1   : > { %2776 = vmatprep.subr.bf16.mxu0 %v5415_v27  ;;  %2817 = vmatprep.subr.bf16.mxu1 %v5417_v29 }
 0xac4   : > { %2777 = vmatpush1.bf16.msra.mxu0 %v5419_v30  ;;  %2818 = vmatpush1.bf16.msra.mxu1 %v5421_v8 }
 0xac5   : > { %2778 = vmatprep.subr.bf16.mxu0 %v5427_v0  ;;  %2819 = vmatprep.subr.bf16.mxu1 %v5429_v49 }
 0xac8   : > { %2779 = vmatpush1.bf16.msra.mxu0 %v5431_v32  ;;  %2820 = vmatpush1.bf16.msra.mxu1 %v5433_v50 }
 0xac9   : > { %2780 = vmatprep.subr.bf16.mxu0 %v5439_v33  ;;  %2821 = vmatprep.subr.bf16.mxu1 %v5441_v51 }
 0xacc   : > { %2781 = vmatpush1.bf16.msra.mxu0 %v5443_v34  ;;  %2822 = vmatpush1.bf16.msra.mxu1 %v5445_v53 }
 0xacd   : > { %2782 = vmatprep.subr.bf16.mxu0 %v5451_v42  ;;  %2823 = vmatprep.subr.bf16.mxu1 %v5453_v44 }
 0xad0   : > { %2783 = vmatpush1.bf16.msra.mxu0 %v5455_v45  ;;  %2824 = vmatpush1.bf16.msra.mxu1 %v5457_v26 }
 0xad1   : > { %2784 = vmatprep.subr.bf16.mxu0 %v5463_v2  ;;  %2825 = vmatprep.subr.bf16.mxu1 %v5465_v5 }
 0xad4   : > { %2785 = vmatpush1.bf16.msra.mxu0 %v5467_v1  ;;  %2826 = vmatpush1.bf16.msra.mxu1 %v5469_v19 }
 0xad5   : > { %2885 = vmatprep.subr.bf16.mxu0 %v5379_v11  ;;  %2926 = vmatprep.subr.bf16.mxu1 %v5381_v15 }
 0xb8a   : > { %v2689_v25 = vpop.f32.mrb[72].mxu0  ;;  %v2730_v12 = vpop.f32.mrb[72].mxu1 }
 0xb8b   : > { %v2737_v31 = vadd.f32 %v2689_v25, %v2128_v55  ;;  %v2739_v39 = vadd.f32 %v2730_v12, %v2201_v14  ;;  %v2691_v48 = vpop.f32.mrb[73].mxu0  ;;  %v2732_v37 = vpop.f32.mrb[73].mxu1 }
 0xb8c   : > { %v2738_v38 = vadd.f32 %v2691_v48, %v2130_v57  ;;  %v2740_v9 = vadd.f32 %v2732_v37, %v2203_v56  ;;  %v2693_v58 = vpop.f32.mrb[74].mxu0  ;;  %v2734_v54 = vpop.f32.mrb[74].mxu1 }
 0xb8d   : > { %v3699_v43 = vmul.f32 -1.442695, %v2737_v31  ;;  %v2694_v16 = vpop.f32.mrb[75].mxu0  ;;  %v2735_v63 = vpop.f32.mrb[75].mxu1  ;;  %v3701_v40 = vmul.f32 -1.442695, %v2739_v39 }
 0xb8e   : > { %v3700_v46 = vmul.f32 -1.442695, %v2738_v38  ;;  %v6100_v38 = vld [vmem:[#allocation17_spill] sm:$0xff]  ;;  %v6101_v58 = vld [vmem:[#allocation18_spill] sm:$0xff] }
 0xb8f   : > { %4126 = vpow2.f32 %v3699_v43  ;;  %v2134_v54 = vadd.f32 %v6101_v58, %v5598_v6  ;;  %v6102_v43 = vld [vmem:[#allocation19_spill] sm:$0xff] }
 0xb90   : > { %4128 = vpow2.f32 %v3700_v46  ;;  %v2207_v16 = vadd.f32 %v6102_v43, %v5602_v35 }
 0xb91   : > { %4130 = vtanh.f32 %v2740_v9  ;;  %v2205_v9 = vadd.f32 %v6100_v38, %v5590_v62 }
 0xb92   : > { %4132 = vpow2.f32 %v3701_v40 }
 0xb99   : > { %v4127_v4 = vpop.eup %4126 }
 0xb9a   : > { %v2750_v59 = vadd.f32 1.0, %v4127_v4  ;;  %v4129_v7 = vpop.eup %4128 }
 0xb9b   : > { %v2751_v28 = vadd.f32 1.0, %v4129_v7  ;;  %v4131_v55 = vpop.eup %4130 }
 0xb9c   : > { %4134 = vrcp.f32 %v2750_v59  ;;  %v4133_v52 = vpop.eup %4132 }
 0xb9d   : > { %4136 = vrcp.f32 %v2751_v28  ;;  %v2752_v13 = vadd.f32 1.0, %v4133_v52 }
 0xb9f   : > { %4138 = vrcp.f32 %v2752_v13 }
 0xba6   : > { %v4135_v14 = vpop.eup %4134 }
 0xba7   : > { %v2761_v20 = vmul.f32 %v4135_v14, %v4131_v55  ;;  %v4137_v57 = vpop.eup %4136 }
 0xba8   : > { %v2760_v56 = vmul.f32 %v4137_v57, %v5658_v3  ;;  %v6099_v3 = vld [vmem:[#allocation16_spill] sm:$0xff] }
 0xba9   : > { %v4139_v12 = vpop.eup %4138  ;;  %v2132_v37 = vadd.f32 %v6099_v3, %v5586_v10 }
 0xbaa   : > { %v5704_v25 = vadd.f32 %v2761_v20, %v2760_v56 }
 0xbac   : > { %4140 = vtanh.f32 %v5704_v25 }
 0xbb6   : > { %v4141_v31 = vpop.eup %4140 }
 0xbb7   : > { %v2764_v39 = vmul.f32 %v4141_v31, %v4139_v12 }
 0xbb9   : > { %v2765_v48 = vpack.c.bf16 %v2764_v39, %v2764_v39 }
 0xbbb   : > { %2803 = vmatmul.mubr.bf16.vlgmr.msra.gmra.mrb[76].mxu0 %v2765_v48  ;;  %2844 = vmatmul.mubr.bf16.vlgmr.msra.gmra.mrb[76].mxu1 %v2765_v48 }
 0xbbc   : > { %2886 = vmatpush1.bf16.msra.mxu0 %v5383_v36  ;;  %2927 = vmatpush1.bf16.msra.mxu1 %v5385_v17 }
 0xbbd   : > { %2887 = vmatprep.subr.bf16.mxu0 %v5391_v18  ;;  %2928 = vmatprep.subr.bf16.mxu1 %v5393_v41 }
 0xbbe   : > { %2917 = vmatprep.mubr.bf16.mxu0 %v6046_v60  ;;  %2958 = vmatprep.mubr.bf16.mxu1 %v6046_v60 }
 0xbc0   : > { %2888 = vmatpush1.bf16.msra.mxu0 %v5395_v61  ;;  %2929 = vmatpush1.bf16.msra.mxu1 %v5397_v47 }
 0xbc1   : > { %2889 = vmatprep.subr.bf16.mxu0 %v5403_v21  ;;  %2930 = vmatprep.subr.bf16.mxu1 %v5405_v22 }
 0xbc4   : > { %2890 = vmatpush1.bf16.msra.mxu0 %v5407_v23  ;;  %2931 = vmatpush1.bf16.msra.mxu1 %v5409_v24 }
 0xbc5   : > { %2891 = vmatprep.subr.bf16.mxu0 %v5415_v27  ;;  %2932 = vmatprep.subr.bf16.mxu1 %v5417_v29 }
 0xbc8   : > { %2892 = vmatpush1.bf16.msra.mxu0 %v5419_v30  ;;  %2933 = vmatpush1.bf16.msra.mxu1 %v5421_v8 }
 0xbc9   : > { %2893 = vmatprep.subr.bf16.mxu0 %v5427_v0  ;;  %2934 = vmatprep.subr.bf16.mxu1 %v5429_v49 }
 0xbcc   : > { %2894 = vmatpush1.bf16.msra.mxu0 %v5431_v32  ;;  %2935 = vmatpush1.bf16.msra.mxu1 %v5433_v50 }
 0xbcd   : > { %2895 = vmatprep.subr.bf16.mxu0 %v5439_v33  ;;  %2936 = vmatprep.subr.bf16.mxu1 %v5441_v51 }
 0xbd0   : > { %2896 = vmatpush1.bf16.msra.mxu0 %v5443_v34  ;;  %2937 = vmatpush1.bf16.msra.mxu1 %v5445_v53 }
 0xbd1   : > { %2897 = vmatprep.subr.bf16.mxu0 %v5451_v42  ;;  %2938 = vmatprep.subr.bf16.mxu1 %v5453_v44 }
 0xbd4   : > { %2898 = vmatpush1.bf16.msra.mxu0 %v5455_v45  ;;  %2939 = vmatpush1.bf16.msra.mxu1 %v5457_v26 }
 0xbd5   : > { %2899 = vmatprep.subr.bf16.mxu0 %v5463_v2  ;;  %2940 = vmatprep.subr.bf16.mxu1 %v5465_v5 }
 0xbd8   : > { %2900 = vmatpush1.bf16.msra.mxu0 %v5467_v1  ;;  %2941 = vmatpush1.bf16.msra.mxu1 %v5469_v19 }
 0xbd9   : > { %3000 = vmatprep.subr.bf16.mxu0 %v5379_v11  ;;  %3041 = vmatprep.subr.bf16.mxu1 %v5381_v15 }
 0xc8e   : > { %v2804_v63 = vpop.f32.mrb[76].mxu0  ;;  %v2845_v46 = vpop.f32.mrb[76].mxu1 }
 0xc8f   : > { %v2852_v40 = vadd.f32 %v2804_v63, %v2132_v37  ;;  %v2854_v4 = vadd.f32 %v2845_v46, %v2205_v9  ;;  %v2806_v59 = vpop.f32.mrb[77].mxu0  ;;  %v2847_v7 = vpop.f32.mrb[77].mxu1 }
 0xc90   : > { %v2853_v28 = vadd.f32 %v2806_v59, %v2134_v54  ;;  %v2855_v55 = vadd.f32 %v2847_v7, %v2207_v16  ;;  %v2808_v52 = vpop.f32.mrb[78].mxu0  ;;  %v2849_v14 = vpop.f32.mrb[78].mxu1 }
 0xc91   : > { %v3702_v20 = vmul.f32 -1.442695, %v2852_v40  ;;  %v2809_v57 = vpop.f32.mrb[79].mxu0  ;;  %v2850_v13 = vpop.f32.mrb[79].mxu1  ;;  %v3704_v12 = vmul.f32 -1.442695, %v2854_v4 }
 0xc92   : > { %v3703_v56 = vmul.f32 -1.442695, %v2853_v28  ;;  %v5799_v57 = vld [vmem:[#allocation8] ss:$16 sps:$4 sm:$0xff]   ;;  %v5802_v13 = vld [vmem:[#allocation8 + $0x8] ss:$16 sps:$4 sm:$0xff]  }
 0xc93   : > { %4142 = vpow2.f32 %v3702_v20 }
 0xc94   : > { %4144 = vpow2.f32 %v3703_v56  ;;  %v5805_v56 = vld [vmem:[#allocation8 + $0x24] ss:$16 sps:$4 sm:$0xff]  }
 0xc95   : > { %4146 = vtanh.f32 %v2855_v55 }
 0xc96   : > { %4148 = vpow2.f32 %v3704_v12  ;;  %v5808_v12 = vld [vmem:[#allocation8 + $0x2c] ss:$16 sps:$4 sm:$0xff]  }
 0xc9d   : > { %v4143_v31 = vpop.eup %4142 }
 0xc9e   : > { %v2865_v39 = vadd.f32 1.0, %v4143_v31  ;;  %v4145_v48 = vpop.eup %4144  ;;  %v5813_v31 = vld [vmem:[#allocation8 + $0x20] ss:$16 sps:$4 sm:$0xff]  }
 0xc9f   : > { %v2866_v3 = vadd.f32 1.0, %v4145_v48  ;;  %v4147_v37 = vpop.eup %4146  ;;  %v5819_v48 = vld [vmem:[#allocation8 + $0x44] ss:$16 sps:$4 sm:$0xff]  }
 0xca0   : > { %4150 = vrcp.f32 %v2865_v39  ;;  %v4149_v38 = vpop.eup %4148  ;;  %v5816_v39 = vld [vmem:[#allocation8 + $0x28] ss:$16 sps:$4 sm:$0xff]  }
 0xca1   : > { %4152 = vrcp.f32 %v2866_v3  ;;  %v2867_v43 = vadd.f32 1.0, %v4149_v38  ;;  %v5822_v3 = vld [vmem:[#allocation8 + $0x4c] ss:$16 sps:$4 sm:$0xff]   ;;  %v5828_v38 = vld [vmem:[#allocation8 + $0x48] ss:$16 sps:$4 sm:$0xff]  }
 0xca3   : > { %4154 = vrcp.f32 %v2867_v43  ;;  %v5840_v43 = vld [vmem:[#allocation8 + $0x68] ss:$16 sps:$4 sm:$0xff]  }
 0xcaa   : > { %v4151_v9 = vpop.eup %4150 }
 0xcab   : > { %v2876_v58 = vmul.f32 %v4151_v9, %v4147_v37  ;;  %v4153_v54 = vpop.eup %4152  ;;  %v5825_v37 = vld [vmem:[#allocation8 + $0x40] ss:$16 sps:$4 sm:$0xff]   ;;  %v5831_v9 = vld [vmem:[#allocation8 + $0x64] ss:$16 sps:$4 sm:$0xff]  }
 0xcac   : > { %v2875_v16 = vmul.f32 %v4153_v54, %v5704_v25  ;;  %v5837_v54 = vld [vmem:[#allocation8 + $0x60] ss:$16 sps:$4 sm:$0xff]  }
 0xcad   : > { %v4155_v46 = vpop.eup %4154 }
 0xcae   : > { %v5750_v63 = vadd.f32 %v2876_v58, %v2875_v16  ;;  %v5834_v58 = vld [vmem:[#allocation8 + $0x6c] ss:$16 sps:$4 sm:$0xff]   ;;  %v5843_v16 = vld [vmem:[#allocation8 + $0x84] ss:$16 sps:$4 sm:$0xff]  }
 0xcb0   : > { %4156 = vtanh.f32 %v5750_v63 }
 0xcba   : > { %v4157_v40 = vpop.eup %4156 }
 0xcbb   : > { %v2879_v4 = vmul.f32 %v4157_v40, %v4155_v46  ;;  %v5849_v46 = vld [vmem:[#allocation8 + $0x80] ss:$16 sps:$4 sm:$0xff]   ;;  %v5852_v40 = vld [vmem:[#allocation8 + $0x88] ss:$16 sps:$4 sm:$0xff]  }
 0xcbd   : > { %v2880_v59 = vpack.c.bf16 %v2879_v4, %v2879_v4  ;;  %v5855_v4 = vld [vmem:[#allocation8 + $0xa4] ss:$16 sps:$4 sm:$0xff]  }
 0xcbf   : > { %2918 = vmatmul.mubr.bf16.vlgmr.msra.gmra.mrb[80].mxu0 %v2880_v59  ;;  %2959 = vmatmul.mubr.bf16.vlgmr.msra.gmra.mrb[80].mxu1 %v2880_v59  ;;  %v5858_v59 = vld [vmem:[#allocation8 + $0xac] ss:$16 sps:$4 sm:$0xff]  }
 0xcc0   : > { %3001 = vmatpush1.bf16.msra.mxu0 %v5383_v36  ;;  %3042 = vmatpush1.bf16.msra.mxu1 %v5385_v17  ;;  %v6103_v36 = vld [vmem:[#allocation20_spill] sm:$0xff] }
 0xcc1   : > { %3002 = vmatprep.subr.bf16.mxu0 %v5391_v18  ;;  %3043 = vmatprep.subr.bf16.mxu1 %v5393_v41  ;;  %v2138_v17 = vadd.f32 %v6103_v36, %v5586_v10  ;;  %v6104_v18 = vld [vmem:[#allocation21_spill] sm:$0xff]  ;;  %v5861_v36 = vld [vmem:[#allocation8 + $0xa0] ss:$16 sps:$4 sm:$0xff]  }
 0xcc2   : > { %3032 = vmatprep.mubr.bf16.mxu0 %v6046_v60  ;;  %3073 = vmatprep.mubr.bf16.mxu1 %v6046_v60  ;;  %v2211_v41 = vadd.f32 %v6104_v18, %v5590_v62  ;;  %v5867_v18 = vld [vmem:[#allocation8 + $0xc4] ss:$16 sps:$4 sm:$0xff]  }
 0xcc4   : > { %3003 = vmatpush1.bf16.msra.mxu0 %v5395_v61  ;;  %3044 = vmatpush1.bf16.msra.mxu1 %v5397_v47  ;;  %v6105_v61 = vld [vmem:[#allocation22_spill] sm:$0xff] }
 0xcc5   : > { %3004 = vmatprep.subr.bf16.mxu0 %v5403_v21  ;;  %3045 = vmatprep.subr.bf16.mxu1 %v5405_v22  ;;  %v2140_v47 = vadd.f32 %v6105_v61, %v5598_v6  ;;  %v6106_v21 = vld [vmem:[#allocation23_spill] sm:$0xff]  ;;  %v5873_v61 = vld [vmem:[#allocation8 + $0xc0] ss:$16 sps:$4 sm:$0xff]  }
 0xcc6   : > { %v2213_v22 = vadd.f32 %v6106_v21, %v5602_v35  ;;  %v5879_v21 = vld [vmem:[#allocation8 + $0xe4] ss:$16 sps:$4 sm:$0xff]  }
 0xcc8   : > { %3005 = vmatpush1.bf16.msra.mxu0 %v5407_v23  ;;  %3046 = vmatpush1.bf16.msra.mxu1 %v5409_v24 }
 0xcc9   : > { %3006 = vmatprep.subr.bf16.mxu0 %v5415_v27  ;;  %3047 = vmatprep.subr.bf16.mxu1 %v5417_v29 }
 0xccc   : > { %3007 = vmatpush1.bf16.msra.mxu0 %v5419_v30  ;;  %3048 = vmatpush1.bf16.msra.mxu1 %v5421_v8 }
 0xccd   : > { %3008 = vmatprep.subr.bf16.mxu0 %v5427_v0  ;;  %3049 = vmatprep.subr.bf16.mxu1 %v5429_v49 }
 0xcd0   : > { %3009 = vmatpush1.bf16.msra.mxu0 %v5431_v32  ;;  %3050 = vmatpush1.bf16.msra.mxu1 %v5433_v50 }
 0xcd1   : > { %3010 = vmatprep.subr.bf16.mxu0 %v5439_v33  ;;  %3051 = vmatprep.subr.bf16.mxu1 %v5441_v51 }
 0xcd4   : > { %3011 = vmatpush1.bf16.msra.mxu0 %v5443_v34  ;;  %3052 = vmatpush1.bf16.msra.mxu1 %v5445_v53 }
 0xcd5   : > { %3012 = vmatprep.subr.bf16.mxu0 %v5451_v42  ;;  %3053 = vmatprep.subr.bf16.mxu1 %v5453_v44 }
 0xcd8   : > { %3013 = vmatpush1.bf16.msra.mxu0 %v5455_v45  ;;  %3054 = vmatpush1.bf16.msra.mxu1 %v5457_v26 }
 0xcd9   : > { %3014 = vmatprep.subr.bf16.mxu0 %v5463_v2  ;;  %3055 = vmatprep.subr.bf16.mxu1 %v5465_v5 }
 0xcdc   : > { %3015 = vmatpush1.bf16.msra.mxu0 %v5467_v1  ;;  %3056 = vmatpush1.bf16.msra.mxu1 %v5469_v19 }
 0xcdd   : > { %3115 = vmatprep.subr.bf16.mxu0 %v5379_v11  ;;  %3156 = vmatprep.subr.bf16.mxu1 %v5381_v15 }
 0xd92   : > { %v2919_v23 = vpop.f32.mrb[80].mxu0  ;;  %v2960_v24 = vpop.f32.mrb[80].mxu1 }
 0xd93   : > { %v2967_v27 = vadd.f32 %v2919_v23, %v2138_v17  ;;  %v2969_v29 = vadd.f32 %v2960_v24, %v2211_v41  ;;  %v2921_v30 = vpop.f32.mrb[81].mxu0  ;;  %v2962_v11 = vpop.f32.mrb[81].mxu1  ;;  %v5864_v17 = vld [vmem:[#allocation8 + $0xa8] ss:$16 sps:$4 sm:$0xff]   ;;  %v5870_v41 = vld [vmem:[#allocation8 + $0xcc] ss:$16 sps:$4 sm:$0xff]  }
 0xd94   : > { %v2968_v8 = vadd.f32 %v2921_v30, %v2140_v47  ;;  %v2970_v15 = vadd.f32 %v2962_v11, %v2213_v22  ;;  %v2923_v0 = vpop.f32.mrb[82].mxu0  ;;  %v2964_v49 = vpop.f32.mrb[82].mxu1  ;;  %v5876_v47 = vld [vmem:[#allocation8 + $0xc8] ss:$16 sps:$4 sm:$0xff]   ;;  %v5882_v22 = vld [vmem:[#allocation8 + $0xec] ss:$16 sps:$4 sm:$0xff]  }
 0xd95   : > { %v3705_v32 = vmul.f32 -1.442695, %v2967_v27  ;;  %v2924_v50 = vpop.f32.mrb[83].mxu0  ;;  %v2965_v33 = vpop.f32.mrb[83].mxu1  ;;  %v3707_v34 = vmul.f32 -1.442695, %v2969_v29 }
 0xd96   : > { %v3706_v51 = vmul.f32 -1.442695, %v2968_v8  ;;  %v5885_v23 = vld [vmem:[#allocation8 + $0xe0] ss:$16 sps:$4 sm:$0xff]   ;;  %v5888_v24 = vld [vmem:[#allocation8 + $0xe8] ss:$16 sps:$4 sm:$0xff]  }
 0xd97   : > { %4158 = vpow2.f32 %v3705_v32  ;;  %v4288_v27 = vld [vmem:[#allocation8 + $0x4] ss:$16 sps:$4 sm:$0xff]   ;;  %v4289_v29 = vld [vmem:[#allocation8 + $0xc] ss:$16 sps:$4 sm:$0xff]  }
 0xd98   : > { %4160 = vpow2.f32 %v3706_v51  ;;  %v6107_v30 = vld [vmem:[#allocation24_spill] sm:$0xff]  ;;  %v6108_v8 = vld [vmem:[#allocation25_spill] sm:$0xff]  ;;  %v6109_v0 = vld [vmem:[#allocation26_spill] sm:$0xff] }
 0xd99   : > { %4162 = vtanh.f32 %v2970_v15  ;;  %v2142_v11 = vadd.f32 %v6107_v30, %v5586_v10  ;;  %v2215_v15 = vadd.f32 %v6108_v8, %v5590_v62  ;;  %v2144_v49 = vadd.f32 %v6109_v0, %v5598_v6  ;;  %v6110_v32 = vld [vmem:[#allocation27_spill] sm:$0xff] }
 0xd9a   : > { %4164 = vpow2.f32 %v3707_v34  ;;  %v2217_v50 = vadd.f32 %v6110_v32, %v5602_v35 }
 0xda1   : > { %v4159_v53 = vpop.eup %4158 }
 0xda2   : > { %v2980_v42 = vadd.f32 1.0, %v4159_v53  ;;  %v4161_v44 = vpop.eup %4160 }
 0xda3   : > { %v2981_v45 = vadd.f32 1.0, %v4161_v44  ;;  %v4163_v26 = vpop.eup %4162 }
 0xda4   : > { %4166 = vrcp.f32 %v2980_v42  ;;  %v4165_v2 = vpop.eup %4164 }
 0xda5   : > { %4168 = vrcp.f32 %v2981_v45  ;;  %v2982_v25 = vadd.f32 1.0, %v4165_v2 }
 0xda7   : > { %4170 = vrcp.f32 %v2982_v25 }
 0xdae   : > { %v4167_v5 = vpop.eup %4166 }
 0xdaf   : > { %v2991_v1 = vmul.f32 %v4167_v5, %v4163_v26  ;;  %v4169_v19 = vpop.eup %4168 }
 0xdb0   : > { %v2990_v7 = vmul.f32 %v4169_v19, %v5750_v63  ;;  %v5846_v63 = vld [vmem:[#allocation8 + $0x8c] ss:$16 sps:$4 sm:$0xff]  }
 0xdb1   : > { %v4171_v55 = vpop.eup %4170 }
 0xdb2   : > { %v5796_v28 = vadd.f32 %v2991_v1, %v2990_v7 }
 0xdb4   : > { %4172 = vtanh.f32 %v5796_v28 }
 0xdbe   : > { %v4173_v52 = vpop.eup %4172 }
 0xdbf   : > { %v2994_v14 = vmul.f32 %v4173_v52, %v4171_v55 }
 0xdc1   : > { %v2995_v20 = vpack.c.bf16 %v2994_v14, %v2994_v14 }
 0xdc3   : > { %3033 = vmatmul.mubr.bf16.vlgmr.msra.gmra.mrb[84].mxu0 %v2995_v20  ;;  %3074 = vmatmul.mubr.bf16.vlgmr.msra.gmra.mrb[84].mxu1 %v2995_v20 }
 0xdc4   : > { %3116 = vmatpush1.bf16.msra.mxu0 %v5799_v57  ;;  %3157 = vmatpush1.bf16.msra.mxu1 %v5802_v13 }
 0xdc5   : > { %3117 = vmatprep.subr.bf16.mxu0 %v5805_v56  ;;  %3158 = vmatprep.subr.bf16.mxu1 %v5808_v12 }
 0xdc6   : > { %3147 = vmatprep.mubr.bf16.mxu0 %v6046_v60  ;;  %3188 = vmatprep.mubr.bf16.mxu1 %v6046_v60 }
 0xdc8   : > { %3118 = vmatpush1.bf16.msra.mxu0 %v5813_v31  ;;  %3159 = vmatpush1.bf16.msra.mxu1 %v5816_v39 }
 0xdc9   : > { %3119 = vmatprep.subr.bf16.mxu0 %v5819_v48  ;;  %3160 = vmatprep.subr.bf16.mxu1 %v5822_v3 }
 0xdcc   : > { %3120 = vmatpush1.bf16.msra.mxu0 %v5825_v37  ;;  %3161 = vmatpush1.bf16.msra.mxu1 %v5828_v38 }
 0xdcd   : > { %3121 = vmatprep.subr.bf16.mxu0 %v5831_v9  ;;  %3162 = vmatprep.subr.bf16.mxu1 %v5834_v58 }
 0xdd0   : > { %3122 = vmatpush1.bf16.msra.mxu0 %v5837_v54  ;;  %3163 = vmatpush1.bf16.msra.mxu1 %v5840_v43 }
 0xdd1   : > { %3123 = vmatprep.subr.bf16.mxu0 %v5843_v16  ;;  %3164 = vmatprep.subr.bf16.mxu1 %v5846_v63 }
 0xdd4   : > { %3124 = vmatpush1.bf16.msra.mxu0 %v5849_v46  ;;  %3165 = vmatpush1.bf16.msra.mxu1 %v5852_v40 }
 0xdd5   : > { %3125 = vmatprep.subr.bf16.mxu0 %v5855_v4  ;;  %3166 = vmatprep.subr.bf16.mxu1 %v5858_v59 }
 0xdd8   : > { %3126 = vmatpush1.bf16.msra.mxu0 %v5861_v36  ;;  %3167 = vmatpush1.bf16.msra.mxu1 %v5864_v17 }
 0xdd9   : > { %3127 = vmatprep.subr.bf16.mxu0 %v5867_v18  ;;  %3168 = vmatprep.subr.bf16.mxu1 %v5870_v41 }
 0xddc   : > { %3128 = vmatpush1.bf16.msra.mxu0 %v5873_v61  ;;  %3169 = vmatpush1.bf16.msra.mxu1 %v5876_v47 }
 0xddd   : > { %3129 = vmatprep.subr.bf16.mxu0 %v5879_v21  ;;  %3170 = vmatprep.subr.bf16.mxu1 %v5882_v22 }
 0xde0   : > { %3130 = vmatpush1.bf16.msra.mxu0 %v5885_v23  ;;  %3171 = vmatpush1.bf16.msra.mxu1 %v5888_v24 }
 0xde1   : > { %3230 = vmatprep.subr.bf16.mxu0 %v4288_v27  ;;  %3271 = vmatprep.subr.bf16.mxu1 %v4289_v29 }
 0xe96   : > { %v3034_v33 = vpop.f32.mrb[84].mxu0  ;;  %v3075_v51 = vpop.f32.mrb[84].mxu1 }
 0xe97   : > { %v3082_v34 = vadd.f32 %v3034_v33, %v2142_v11  ;;  %v3084_v53 = vadd.f32 %v3075_v51, %v2215_v15  ;;  %v3036_v42 = vpop.f32.mrb[85].mxu0  ;;  %v3077_v44 = vpop.f32.mrb[85].mxu1 }
 0xe98   : > { %v3083_v45 = vadd.f32 %v3036_v42, %v2144_v49  ;;  %v3085_v26 = vadd.f32 %v3077_v44, %v2217_v50  ;;  %v3038_v2 = vpop.f32.mrb[86].mxu0  ;;  %v3079_v5 = vpop.f32.mrb[86].mxu1 }
 0xe99   : > { %v3708_v1 = vmul.f32 -1.442695, %v3082_v34  ;;  %v3039_v19 = vpop.f32.mrb[87].mxu0  ;;  %v3080_v25 = vpop.f32.mrb[87].mxu1  ;;  %v3710_v55 = vmul.f32 -1.442695, %v3084_v53 }
 0xe9a   : > { %v3709_v7 = vmul.f32 -1.442695, %v3083_v45  ;;  %v4383_v19 = vmov 0.0   ;;  %v3959_v25 = vld [vmem:[%s6002_s7 + $0x8] sm:$0xff]  }
 0xe9b   : > { %4174 = vpow2.f32 %v3708_v1  ;;  %v3958_v1 = vld [vmem:[%s6002_s7] sm:$0xff]  }
 0xe9c   : > { %4176 = vpow2.f32 %v3709_v7  ;;  %v3960_v7 = vld [vmem:[%s6002_s7 + $0x10] sm:$0xff]  }
 0xe9d   : > { %4178 = vtanh.f32 %v3085_v26 }
 0xe9e   : > { %4180 = vpow2.f32 %v3710_v55  ;;  %v3961_v55 = vld [vmem:[%s6002_s7 + $0x18] sm:$0xff]  }
 0xea5   : > { %v4175_v52 = vpop.eup %4174 }
 0xea6   : > { %v3095_v14 = vadd.f32 1.0, %v4175_v52  ;;  %v4177_v20 = vpop.eup %4176  ;;  %v3962_v52 = vld [vmem:[%s6002_s7 + $0x20] sm:$0xff]  }
 0xea7   : > { %v3096_v27 = vadd.f32 1.0, %v4177_v20  ;;  %v4179_v29 = vpop.eup %4178  ;;  %v3964_v20 = vld [vmem:[%s6002_s7 + $0x30] sm:$0xff]  }
 0xea8   : > { %4182 = vrcp.f32 %v3095_v14  ;;  %v4181_v30 = vpop.eup %4180  ;;  %v3963_v14 = vld [vmem:[%s6002_s7 + $0x28] sm:$0xff]  }
 0xea9   : > { %4184 = vrcp.f32 %v3096_v27  ;;  %v3097_v0 = vadd.f32 1.0, %v4181_v30  ;;  %v3965_v27 = vld [vmem:[%s6002_s7 + $0x38] sm:$0xff]  }
 0xeab   : > { %4186 = vrcp.f32 %v3097_v0 }
 0xeb2   : > { %v4183_v11 = vpop.eup %4182 }
 0xeb3   : > { %v3106_v8 = vmul.f32 %v4183_v11, %v4179_v29  ;;  %v4185_v15 = vpop.eup %4184  ;;  %v6115_v29 = vld [vmem:[#allocation32_spill] sm:$0xff]  ;;  %v6116_v11 = vld [vmem:[#allocation33_spill] sm:$0xff] }
 0xeb4   : > { %v3105_v49 = vmul.f32 %v4185_v15, %v5796_v28  ;;  %v2152_v30 = vadd.f32 %v6115_v29, %v5586_v10  ;;  %v6117_v15 = vld [vmem:[#allocation12_spill] sm:$0xff] }
 0xeb5   : > { %v4187_v50 = vpop.eup %4186  ;;  %v2154_v0 = vadd.f32 %v6117_v15, %v5598_v6 }
 0xeb6   : > { %v5900_v32 = vadd.f32 %v3106_v8, %v3105_v49  ;;  %v2225_v8 = vadd.f32 %v6116_v11, %v5590_v62  ;;  %v6118_v49 = vld [vmem:[#allocation34_spill] sm:$0xff] }
 0xeb8   : > { %4188 = vtanh.f32 %v5900_v32 }
 0xec2   : > { %v4189_v33 = vpop.eup %4188 }
 0xec3   : > { %v3109_v51 = vmul.f32 %v4189_v33, %v4187_v50 }
 0xec5   : > { %v3110_v34 = vpack.c.bf16 %v3109_v51, %v3109_v51 }
 0xec7   : > { %3148 = vmatmul.mubr.bf16.vlgmr.msra.gmra.mrb[88].mxu0 %v3110_v34  ;;  %3189 = vmatmul.mubr.bf16.vlgmr.msra.gmra.mrb[88].mxu1 %v3110_v34 }
 0xec8   : > { %3231 = vmatpush1.bf16.msra.mxu0 %v5799_v57  ;;  %3272 = vmatpush1.bf16.msra.mxu1 %v5802_v13  ;;  %v6112_v57 = vld [vmem:[#allocation29_spill] sm:$0xff] }
 0xec9   : > { %3232 = vmatprep.subr.bf16.mxu0 %v5805_v56  ;;  %3273 = vmatprep.subr.bf16.mxu1 %v5808_v12  ;;  %v2221_v13 = vadd.f32 %v6112_v57, %v5590_v62  ;;  %v6113_v56 = vld [vmem:[#allocation30_spill] sm:$0xff] }
 0xeca   : > { %3262 = vmatprep.mubr.bf16.mxu0 %v6046_v60  ;;  %3303 = vmatprep.mubr.bf16.mxu1 %v6046_v60  ;;  %v6111_v60 = vld [vmem:[#allocation28_spill] sm:$0xff]  ;;  %v2150_v12 = vadd.f32 %v6113_v56, %v5598_v6 }
 0xecb   : > { %v2148_v28 = vadd.f32 %v6111_v60, %v5586_v10 }
 0xecc   : > { %3233 = vmatpush1.bf16.msra.mxu0 %v5813_v31  ;;  %3274 = vmatpush1.bf16.msra.mxu1 %v5816_v39  ;;  %v6114_v31 = vld [vmem:[#allocation31_spill] sm:$0xff] }
 0xecd   : > { %3234 = vmatprep.subr.bf16.mxu0 %v5819_v48  ;;  %3275 = vmatprep.subr.bf16.mxu1 %v5822_v3  ;;  %v2223_v39 = vadd.f32 %v6114_v31, %v5602_v35 }
 0xed0   : > { %3235 = vmatpush1.bf16.msra.mxu0 %v5825_v37  ;;  %3276 = vmatpush1.bf16.msra.mxu1 %v5828_v38 }
 0xed1   : > { %3236 = vmatprep.subr.bf16.mxu0 %v5831_v9  ;;  %3277 = vmatprep.subr.bf16.mxu1 %v5834_v58 }
 0xed4   : > { %3237 = vmatpush1.bf16.msra.mxu0 %v5837_v54  ;;  %3278 = vmatpush1.bf16.msra.mxu1 %v5840_v43 }
 0xed5   : > { %3238 = vmatprep.subr.bf16.mxu0 %v5843_v16  ;;  %3279 = vmatprep.subr.bf16.mxu1 %v5846_v63 }
 0xed8   : > { %3239 = vmatpush1.bf16.msra.mxu0 %v5849_v46  ;;  %3280 = vmatpush1.bf16.msra.mxu1 %v5852_v40 }
 0xed9   : > { %3240 = vmatprep.subr.bf16.mxu0 %v5855_v4  ;;  %3281 = vmatprep.subr.bf16.mxu1 %v5858_v59 }
 0xedc   : > { %3241 = vmatpush1.bf16.msra.mxu0 %v5861_v36  ;;  %3282 = vmatpush1.bf16.msra.mxu1 %v5864_v17 }
 0xedd   : > { %3242 = vmatprep.subr.bf16.mxu0 %v5867_v18  ;;  %3283 = vmatprep.subr.bf16.mxu1 %v5870_v41 }
 0xee0   : > { %3243 = vmatpush1.bf16.msra.mxu0 %v5873_v61  ;;  %3284 = vmatpush1.bf16.msra.mxu1 %v5876_v47 }
 0xee1   : > { %3244 = vmatprep.subr.bf16.mxu0 %v5879_v21  ;;  %3285 = vmatprep.subr.bf16.mxu1 %v5882_v22 }
 0xee4   : > { %3245 = vmatpush1.bf16.msra.mxu0 %v5885_v23  ;;  %3286 = vmatpush1.bf16.msra.mxu1 %v5888_v24 }
 0xee5   : > { %3738 = vmatprep.subr.bf16.mxu0 %v4383_v19 }
 0xf9a   : > { %v3149_v48 = vpop.f32.mrb[88].mxu0  ;;  %v3190_v3 = vpop.f32.mrb[88].mxu1 }
 0xf9b   : > { %v3197_v37 = vadd.f32 %v3149_v48, %v2148_v28  ;;  %v3199_v38 = vadd.f32 %v3190_v3, %v2221_v13  ;;  %v3151_v9 = vpop.f32.mrb[89].mxu0  ;;  %v3192_v58 = vpop.f32.mrb[89].mxu1 }
 0xf9c   : > { %v3198_v54 = vadd.f32 %v3151_v9, %v2150_v12  ;;  %v3200_v43 = vadd.f32 %v3192_v58, %v2223_v39  ;;  %v3153_v16 = vpop.f32.mrb[90].mxu0  ;;  %v3194_v63 = vpop.f32.mrb[90].mxu1 }
 0xf9d   : > { %v3711_v46 = vmul.f32 -1.442695, %v3197_v37  ;;  %v3154_v40 = vpop.f32.mrb[91].mxu0  ;;  %v3195_v4 = vpop.f32.mrb[91].mxu1  ;;  %v3713_v36 = vmul.f32 -1.442695, %v3199_v38 }
 0xf9e   : > { %v3712_v59 = vmul.f32 -1.442695, %v3198_v54 }
 0xf9f   : > { %4190 = vpow2.f32 %v3711_v46 }
 0xfa0   : > { %4192 = vpow2.f32 %v3712_v59 }
 0xfa1   : > { %4194 = vtanh.f32 %v3200_v43 }
 0xfa2   : > { %4196 = vpow2.f32 %v3713_v36 }
 0xfa9   : > { %v4191_v17 = vpop.eup %4190 }
 0xfaa   : > { %v3210_v18 = vadd.f32 1.0, %v4191_v17  ;;  %v4193_v41 = vpop.eup %4192  ;;  %v3717_v17 = vld [vmem:[#allocation4] ss:$0 sm:$0xff] }
 0xfab   : > { %v3211_v61 = vadd.f32 1.0, %v4193_v41  ;;  %v4195_v47 = vpop.eup %4194 }
 0xfac   : > { %4198 = vrcp.f32 %v3210_v18  ;;  %v4197_v21 = vpop.eup %4196 }
 0xfad   : > { %4200 = vrcp.f32 %v3211_v61  ;;  %v3212_v53 = vadd.f32 1.0, %v4197_v21 }
 0xfaf   : > { %4202 = vrcp.f32 %v3212_v53 }
 0xfb6   : > { %v4199_v22 = vpop.eup %4198 }
 0xfb7   : > { %v3221_v23 = vmul.f32 %v4199_v22, %v4195_v47  ;;  %v4201_v24 = vpop.eup %4200 }
 0xfb8   : > { %v3220_v42 = vmul.f32 %v4201_v24, %v5900_v32  ;;  %v2227_v32 = vadd.f32 %v6118_v49, %v5602_v35 }
 0xfb9   : > { %v4203_v45 = vpop.eup %4202 }
 0xfba   : > { %v5944_v44 = vadd.f32 %v3221_v23, %v3220_v42 }
 0xfbc   : > { %4204 = vtanh.f32 %v5944_v44 }
 0xfc6   : > { %v4205_v26 = vpop.eup %4204 }
 0xfc7   : > { %v3224_v2 = vmul.f32 %v4205_v26, %v4203_v45 }
 0xfc9   : > { %v3225_v5 = vpack.c.bf16 %v3224_v2, %v3224_v2 }
 0xfcb   : > { %3263 = vmatmul.mubr.bf16.vlgmr.msra.gmra.mrb[92].mxu0 %v3225_v5  ;;  %3304 = vmatmul.mubr.bf16.vlgmr.msra.gmra.mrb[92].mxu1 %v3225_v5 }
 0xfcc   : > { %3739 = vmatpush3.bf16.msra.mxu0 %v3958_v1  ;;  %3754 = vmatprep.mubr.msk.bf16.mxu0 %vm4384_vm1, %v4383_v19 }
 0xfcd   : > { %3740 = vmatprep.subr.bf16.mxu0 %v4383_v19 }
 0xfd0   : > { %3741 = vmatpush3.bf16.msra.mxu0 %v3959_v25 }
 0xfd1   : > { %3742 = vmatprep.subr.bf16.mxu0 %v4383_v19 }
 0xfd4   : > { %3743 = vmatpush3.bf16.msra.mxu0 %v3960_v7 }
 0xfd5   : > { %3744 = vmatprep.subr.bf16.mxu0 %v4383_v19 }
 0xfd8   : > { %3745 = vmatpush3.bf16.msra.mxu0 %v3961_v55 }
 0xfd9   : > { %3746 = vmatprep.subr.bf16.mxu0 %v4383_v19 }
 0xfdc   : > { %3747 = vmatpush3.bf16.msra.mxu0 %v3962_v52 }
 0xfdd   : > { %3748 = vmatprep.subr.bf16.mxu0 %v4383_v19 }
 0xfe0   : > { %3749 = vmatpush3.bf16.msra.mxu0 %v3963_v14 }
 0xfe1   : > { %3750 = vmatprep.subr.bf16.mxu0 %v4383_v19 }
 0xfe4   : > { %3751 = vmatpush3.bf16.msra.mxu0 %v3964_v20 }
 0xfe5   : > { %3752 = vmatprep.subr.bf16.mxu0 %v4383_v19 }
 0xfe8   : > { %3753 = vmatpush3.bf16.msra.mxu0 %v3965_v27 }
0x109e   : > { %v3264_v50 = vpop.f32.mrb[92].mxu0  ;;  %v3305_v33 = vpop.f32.mrb[92].mxu1 }
0x109f   : > { %v3312_v51 = vadd.f32 %v3264_v50, %v2152_v30  ;;  %v3314_v34 = vadd.f32 %v3305_v33, %v2225_v8  ;;  %v3266_v60 = vpop.f32.mrb[93].mxu0  ;;  %v3307_v28 = vpop.f32.mrb[93].mxu1 }
0x10a0   : > { %v3313_v57 = vadd.f32 %v3266_v60, %v2154_v0  ;;  %v3315_v13 = vadd.f32 %v3307_v28, %v2227_v32  ;;  %v3268_v56 = vpop.f32.mrb[94].mxu0  ;;  %v3309_v12 = vpop.f32.mrb[94].mxu1 }
0x10a1   : > { %v3714_v10 = vmul.f32 -1.442695, %v3312_v51  ;;  %v3269_v31 = vpop.f32.mrb[95].mxu0  ;;  %v3310_v39 = vpop.f32.mrb[95].mxu1  ;;  %v3716_v6 = vmul.f32 -1.442695, %v3314_v34 }
0x10a2   : > { %v3715_v62 = vmul.f32 -1.442695, %v3313_v57 }
0x10a3   : > { %4206 = vpow2.f32 %v3714_v10 }
0x10a4   : > { %4208 = vpow2.f32 %v3715_v62 }
0x10a5   : > { %4210 = vtanh.f32 %v3315_v13 }
0x10a6   : > { %4212 = vpow2.f32 %v3716_v6 }
0x10ad   : > { %v4207_v48 = vpop.eup %4206 }
0x10ae   : > { %v3325_v3 = vadd.f32 1.0, %v4207_v48  ;;  %v4209_v35 = vpop.eup %4208 }
0x10af   : > { %v3326_v37 = vadd.f32 1.0, %v4209_v35  ;;  %v4211_v38 = vpop.eup %4210 }
0x10b0   : > { %4214 = vrcp.f32 %v3325_v3  ;;  %v4213_v9 = vpop.eup %4212 }
0x10b1   : > { %4216 = vrcp.f32 %v3326_v37  ;;  %v3327_v16 = vadd.f32 1.0, %v4213_v9 }
0x10b3   : > { %4218 = vrcp.f32 %v3327_v16 }
0x10ba   : > { %v4215_v58 = vpop.eup %4214 }
0x10bb   : > { %v3336_v54 = vmul.f32 %v4215_v58, %v4211_v38  ;;  %v4217_v43 = vpop.eup %4216 }
0x10bc   : > { %v3335_v63 = vmul.f32 %v4217_v43, %v5944_v44 }
0x10bd   : > { %v4219_v40 = vpop.eup %4218 }
0x10be   : > { %v3337_v46 = vadd.f32 %v3336_v54, %v3335_v63 }
0x10c0   : > { %4220 = vtanh.f32 %v3337_v46 }
0x10ca   : > { %v4221_v4 = vpop.eup %4220 }
0x10cb   : > { %v3339_v59 = vmul.f32 %v4221_v4, %v4219_v40 }
0x10cd   : > { %v3340_v36 = vpack.c.bf16 %v3339_v59, %v3339_v59 }
0x10cf   : > { %3755 = vmatmul.mubr.bf16.vlgmr.msra.gmra.mrb[96].mxu0 %v3340_v36 }
0x11a2   : > { %v3446_v18 = vpop.f32.mrb[96].mxu0 }
0x11a3   : > { %v3447_v41 = vadd.f32 %v3717_v17, %v3446_v18  ;;  %v3756_v61 = vpop.f32.mrb[97].mxu0 }
0x11a4   : > { %v3449_v47 = vpop.f32.mrb[98].mxu0 }
0x11a5   : > { %v3726_v21 = vmul.f32 -1.442695, %v3447_v41  ;;  %v3757_v22 = vpop.f32.mrb[99].mxu0 }
0x11a7   : > { %4222 = vpow2.f32 %v3726_v21 }
0x11b1   : > { %v4223_v23 = vpop.eup %4222 }
0x11b2   : > { %v3455_v24 = vadd.f32 1.0, %v4223_v23 }
0x11b4   : > { %4224 = vrcp.f32 %v3455_v24 }
0x11be   : > { %v4225_v53 = vpop.eup %4224 }
0x11bf   : > { %3459 = vst.msk [vmem:[%s424_s11] sm:$0xff] %vm3458_vm2, %v4225_v53 }
0x11c0 PF: > { %p20_p0 = scmp.ge.s32.totalorder %s4457_s14, 4   ;;  %s6119_s11 = smov %s4372_s12 }
0x11c1   : > { %s6120_s12 = smov %s4467_s17  ;;  %s6121_s13 = smov %s4457_s14 }
0x11c2   :  { %22 = sbr.rel (!%p20_p0) target bundleno = 6 (0x6), region = 153 }
0x11c9   :  { %3479 = vsyncpa [#allocation7], 1 }
0x11ca   :  { %3481 = vsyncpa [#allocation7 + $0x1], 1 }
0x11cb   :  { %3482 = vsyncpa [#allocation9], 1 }

</bundles_post_ra>
